<compile_context>
chip_gen: v5e
topology: v5e:2x2
jax: 0.10.0
libtpu: 0.0.40
codegen_flags: <defaults>
</compile_context>

<pallas_src>
import functools

import jax
import jax.numpy as jnp
from jax import lax
from jax.experimental import pallas as pl
from jax.experimental.pallas import tpu as pltpu

# ----- model hyper-parameters (mirroring SGFormer defaults / GraphGym cfg) -----
NUM_TRANS_LAYERS = 2      # cfg.gt.layers
HIDDEN = 32               # cfg.gt.dim_hidden
ALPHA = 0.5               # TransConv residual weight
GRAPH_WEIGHT = 0.5        # cfg.gt.graph_weight  (aggregate == 'add')
LN_EPS = 1e-5

MAX_FEAT_TILE = 2048      # row tile for the narrow (32-wide) feature kernels K1-K3
GCN_ROW_TILE = 512        # K4 output-row tile
GCN_COL_TILE = 2048       # K4 contraction (A_hat column) tile


def _round_up(x, m):
    return -(-x // m) * m


def _choose_tiling(n):
    """Padded node count + tiles; everything a multiple of 16 (bf16 sublane packing).

    Returns (n_pad, tile_feat, tile_r, tile_k); all tiles divide n_pad exactly.
    """
    n16 = max(16, _round_up(n, 16))
    if n16 <= GCN_ROW_TILE:
        return n16, n16, n16, n16
    if n16 <= MAX_FEAT_TILE:
        n_pad = _round_up(n16, GCN_ROW_TILE)
        return n_pad, n_pad, GCN_ROW_TILE, n_pad
    n_pad = _round_up(n16, GCN_COL_TILE)
    return n_pad, MAX_FEAT_TILE, GCN_ROW_TILE, GCN_COL_TILE


# --- BlockSpecs for the 1-D row grid + 1 scalar-prefetch arg kernels (K1-K3).
#     index_maps receive the SMEM prefetch ref as a trailing positional arg.
def _rows_spec(tile, width):
    return pl.BlockSpec((tile, width), lambda i, n: (i, 0))


def _const_spec(shape):
    return pl.BlockSpec(shape, lambda i, n: (0, 0))


# ------------------------------ shared kernel helpers ------------------------------
def _layernorm(x, g, b):
    mu = jnp.mean(x, axis=-1, keepdims=True)
    xc = x - mu
    var = jnp.mean(xc * xc, axis=-1, keepdims=True)
    return xc * lax.rsqrt(var + LN_EPS) * g + b


def _valid_rows(tile, n_scalar):
    row = lax.broadcasted_iota(jnp.int32, (tile, 1), 0) + pl.program_id(0) * tile
    return row < n_scalar


def _zero_stats(kv_ref, ksum_ref, sq_ref, sk_ref):
    kv_ref[...] = jnp.zeros_like(kv_ref)
    ksum_ref[...] = jnp.zeros_like(ksum_ref)
    sq_ref[...] = jnp.zeros_like(sq_ref)
    sk_ref[...] = jnp.zeros_like(sk_ref)


def _accum_stats(h, valid, wq_ref, wk_ref, wv_ref, bq_ref, bk_ref, bv_ref,
                 kv_ref, ksum_ref, sq_ref, sk_ref):
    """Accumulate whole-graph reductions K^T V, sum(K), ||Q||_F^2, ||K||_F^2.

    h is rounded through bf16 so the stats match exactly the Q/K/V the next
    kernel recomputes from the bf16 copy of h it reads back from HBM.
    Separate Wq/Wk/Wv matmuls avoid lane-slicing a (tile, 96) activation.
    """
    hq = h.astype(jnp.bfloat16).astype(jnp.float32)
    q = jnp.dot(hq, wq_ref[...], preferred_element_type=jnp.float32) + bq_ref[...]
    k = jnp.dot(hq, wk_ref[...], preferred_element_type=jnp.float32) + bk_ref[...]
    v = jnp.dot(hq, wv_ref[...], preferred_element_type=jnp.float32) + bv_ref[...]
    q = jnp.where(valid, q, 0.0)        # mask padded rows out of the global reductions
    k = jnp.where(valid, k, 0.0)
    v = jnp.where(valid, v, 0.0)
    # K^T V without materializing a transpose: contract the node axis of both.
    kv_ref[...] += lax.dot_general(k, v, (((0,), (0,)), ((), ())),
                                   preferred_element_type=jnp.float32)
    ksum_ref[...] += jnp.sum(k, axis=0, keepdims=True)
    sq_ref[...] += jnp.sum(q * q, axis=(0, 1), keepdims=True)   # ||Q||_F^2
    sk_ref[...] += jnp.sum(k * k, axis=(0, 1), keepdims=True)   # ||K||_F^2


def _apply_attention(h, q, v, kv_ref, ksum_ref, sq_ref, sk_ref, g_ref, b_ref,
                     n_real, alpha):
    """SGFormer full_attention_conv (num_heads == 1) + residual + LayerNorm."""
    # TODO(synk): multi-head (H>1) path not implemented; SGFormer default is H=1.
    # Global Frobenius-norm factors (torch.norm); rsqrt(0)=inf, 0*inf=nan reproduces
    # the reference's 0/0 behavior for an exactly-zero Q or K.
    inv_q = lax.rsqrt(sq_ref[...])          # (1, 1)
    inv_k = lax.rsqrt(sk_ref[...])          # (1, 1)
    qn = q * inv_q
    kv = kv_ref[...] * inv_k                # (K/||K||)^T V
    ksum = ksum_ref[...] * inv_k            # sum_rows(K/||K||)
    num = jnp.dot(qn, kv, preferred_element_type=jnp.float32) + n_real * v
    den = jnp.sum(qn * ksum, axis=-1, keepdims=True) + n_real
    attn = num / den                        # exact division (matches reference)
    x = alpha * attn + (1.0 - alpha) * h    # residual mix, then bns[i+1]
    return _layernorm(x, g_ref[...], b_ref[...])


# ==================== K1: encoder + fc/LN/ReLU + x0@Wgcn + layer-0 stats ====================
def _encoder_kernel(n_ref, x_ref, ew_ref, eb_ref, fw_ref, fb_ref, gcw_ref, g_ref, b_ref,
                    wq_ref, wk_ref, wv_ref, bq_ref, bk_ref, bv_ref,
                    h_ref, xw_ref, kv_ref, ksum_ref, sq_ref, sk_ref):
    @pl.when(pl.program_id(0) == 0)
    def _():
        _zero_stats(kv_ref, ksum_ref, sq_ref, sk_ref)

    x0 = jnp.dot(x_ref[...], ew_ref[...], preferred_element_type=jnp.float32) + eb_ref[...]
    hfc = jnp.dot(x0, fw_ref[...], preferred_element_type=jnp.float32) + fb_ref[...]
    h = jnp.maximum(_layernorm(hfc, g_ref[...], b_ref[...]), 0.0)   # bns[0] + ReLU (dropout: eval)
    h_ref[...] = h.astype(jnp.bfloat16)
    # GCN branch pre-projection x0 @ W_gcn, stored bf16 (MXU-native, half HBM traffic).
    xw_ref[...] = jnp.dot(x0, gcw_ref[...],
                          preferred_element_type=jnp.float32).astype(jnp.bfloat16)

    # Layer-0 attention statistics, padded rows masked via in-kernel iota vs SMEM n.
    # TODO(synk): on v7x (2 TCs) a leading size-2 "parallel" axis with per-core partial
    # stats would double this reduction's throughput; single-core kept for simplicity.
    valid = _valid_rows(h.shape[0], n_ref[0])
    _accum_stats(h, valid, wq_ref, wk_ref, wv_ref, bq_ref, bk_ref, bv_ref,
                 kv_ref, ksum_ref, sq_ref, sk_ref)


def encoder_fused(n_arr, x, enc_w, enc_b, fc_w, fc_b, gcn_w, ln_g, ln_b,
                  wq, wk, wv, bq, bk, bv, tile):
    n_pad, dim_in = x.shape
    return pl.pallas_call(
        _encoder_kernel,
        grid_spec=pltpu.PrefetchScalarGridSpec(
            num_scalar_prefetch=1,
            grid=(n_pad // tile,),
            in_specs=[_rows_spec(tile, dim_in),
                      _const_spec(enc_w.shape), _const_spec(enc_b.shape),
                      _const_spec(fc_w.shape), _const_spec(fc_b.shape),
                      _const_spec(gcn_w.shape),
                      _const_spec(ln_g.shape), _const_spec(ln_b.shape),
                      _const_spec(wq.shape), _const_spec(wk.shape), _const_spec(wv.shape),
                      _const_spec(bq.shape), _const_spec(bk.shape), _const_spec(bv.shape)],
            out_specs=[_rows_spec(tile, HIDDEN), _rows_spec(tile, HIDDEN),
                       _const_spec((HIDDEN, HIDDEN)), _const_spec((1, HIDDEN)),
                       _const_spec((1, 1)), _const_spec((1, 1))]),
        out_shape=[jax.ShapeDtypeStruct((n_pad, HIDDEN), jnp.bfloat16),
                   jax.ShapeDtypeStruct((n_pad, HIDDEN), jnp.bfloat16),
                   jax.ShapeDtypeStruct((HIDDEN, HIDDEN), jnp.float32),
                   jax.ShapeDtypeStruct((1, HIDDEN), jnp.float32),
                   jax.ShapeDtypeStruct((1, 1), jnp.float32),
                   jax.ShapeDtypeStruct((1, 1), jnp.float32)],
        compiler_params=pltpu.CompilerParams(dimension_semantics=("arbitrary",)),
    )(n_arr, x, enc_w, enc_b, fc_w, fc_b, gcn_w, ln_g, ln_b, wq, wk, wv, bq, bk, bv)


# ============ K2: attention apply (layer i) fused with stats of layer i+1 ============
def _attn_apply_stats_kernel(n_ref, h_ref,
                             wq_ref, wk_ref, wv_ref, bq_ref, bk_ref, bv_ref,
                             kv_ref, ksum_ref, sq_ref, sk_ref, g_ref, b_ref,
                             wq2_ref, wk2_ref, wv2_ref, bq2_ref, bk2_ref, bv2_ref,
                             h_out_ref, kv2_ref, ksum2_ref, sq2_ref, sk2_ref, *, alpha):
    @pl.when(pl.program_id(0) == 0)
    def _():
        _zero_stats(kv2_ref, ksum2_ref, sq2_ref, sk2_ref)

    h = h_ref[...].astype(jnp.float32)
    n_real = n_ref[0].astype(jnp.float32)
    q = jnp.dot(h, wq_ref[...], preferred_element_type=jnp.float32) + bq_ref[...]
    v = jnp.dot(h, wv_ref[...], preferred_element_type=jnp.float32) + bv_ref[...]
    h_new = _apply_attention(h, q, v, kv_ref, ksum_ref, sq_ref, sk_ref,
                             g_ref, b_ref, n_real, alpha)
    h_out_ref[...] = h_new.astype(jnp.bfloat16)

    # Next layer's whole-graph reductions, while h_new is still in VMEM.
    valid = _valid_rows(h.shape[0], n_ref[0])
    _accum_stats(h_new, valid, wq2_ref, wk2_ref, wv2_ref, bq2_ref, bk2_ref, bv2_ref,
                 kv2_ref, ksum2_ref, sq2_ref, sk2_ref)


def attention_apply_stats(n_arr, h, wq, wk, wv, bq, bk, bv, kv, ksum, sq, sk,
                          ln_g, ln_b, wq2, wk2, wv2, bq2, bk2, bv2, *, alpha, tile):
    n_pad, hidden = h.shape
    return pl.pallas_call(
        functools.partial(_attn_apply_stats_kernel, alpha=alpha),
        grid_spec=pltpu.PrefetchScalarGridSpec(
            num_scalar_prefetch=1,
            grid=(n_pad // tile,),
            in_specs=[_rows_spec(tile, hidden),
                      _const_spec(wq.shape), _const_spec(wk.shape), _const_spec(wv.shape),
                      _const_spec(bq.shape), _const_spec(bk.shape), _const_spec(bv.shape),
                      _const_spec(kv.shape), _const_spec(ksum.shape),
                      _const_spec(sq.shape), _const_spec(sk.shape),
                      _const_spec(ln_g.shape), _const_spec(ln_b.shape),
                      _const_spec(wq2.shape), _const_spec(wk2.shape), _const_spec(wv2.shape),
                      _const_spec(bq2.shape), _const_spec(bk2.shape), _const_spec(bv2.shape)],
            out_specs=[_rows_spec(tile, hidden),
                       _const_spec((hidden, hidden)), _const_spec((1, hidden)),
                       _const_spec((1, 1)), _const_spec((1, 1))]),
        out_shape=[jax.ShapeDtypeStruct((n_pad, hidden), jnp.bfloat16),
                   jax.ShapeDtypeStruct((hidden, hidden), jnp.float32),
                   jax.ShapeDtypeStruct((1, hidden), jnp.float32),
                   jax.ShapeDtypeStruct((1, 1), jnp.float32),
                   jax.ShapeDtypeStruct((1, 1), jnp.float32)],
        compiler_params=pltpu.CompilerParams(dimension_semantics=("arbitrary",)),
    )(n_arr, h, wq, wk, wv, bq, bk, bv, kv, ksum, sq, sk, ln_g, ln_b,
      wq2, wk2, wv2, bq2, bk2, bv2)


# ==================== K3: final attention apply (no next-layer stats) ====================
def _attn_apply_final_kernel(n_ref, h_ref, wq_ref, wk_ref, wv_ref, bq_ref, bk_ref, bv_ref,
                             kv_ref, ksum_ref, sq_ref, sk_ref, g_ref, b_ref,
                             h_out_ref, *, alpha):
    h = h_ref[...].astype(jnp.float32)
    n_real = n_ref[0].astype(jnp.float32)
    q = jnp.dot(h, wq_ref[...], preferred_element_type=jnp.float32) + bq_ref[...]
    v = jnp.dot(h, wv_ref[...], preferred_element_type=jnp.float32) + bv_ref[...]
    h_new = _apply_attention(h, q, v, kv_ref, ksum_ref, sq_ref, sk_ref,
                             g_ref, b_ref, n_real, alpha)
    h_out_ref[...] = h_new.astype(jnp.bfloat16)


def attention_apply_final(n_arr, h, wq, wk, wv, bq, bk, bv, kv, ksum, sq, sk,
                          ln_g, ln_b, *, alpha, tile):
    n_pad, hidden = h.shape
    return pl.pallas_call(
        functools.partial(_attn_apply_final_kernel, alpha=alpha),
        grid_spec=pltpu.PrefetchScalarGridSpec(
            num_scalar_prefetch=1,
            grid=(n_pad // tile,),
            in_specs=[_rows_spec(tile, hidden),
                      _const_spec(wq.shape), _const_spec(wk.shape), _const_spec(wv.shape),
                      _const_spec(bq.shape), _const_spec(bk.shape), _const_spec(bv.shape),
                      _const_spec(kv.shape), _const_spec(ksum.shape),
                      _const_spec(sq.shape), _const_spec(sk.shape),
                      _const_spec(ln_g.shape), _const_spec(ln_b.shape)],
            out_specs=_rows_spec(tile, hidden)),
        out_shape=jax.ShapeDtypeStruct((n_pad, hidden), jnp.bfloat16),
        compiler_params=pltpu.CompilerParams(dimension_semantics=("parallel",)),
    )(n_arr, h, wq, wk, wv, bq, bk, bv, kv, ksum, sq, sk, ln_g, ln_b)


# ========== K4: column-tiled GCN + 'add' aggregation + post_mp head (fused) ==========
def _gcn_head_kernel(a_ref, xw_ref, x1_ref, gb_ref, hw_ref, hb_ref, o_ref, acc_ref,
                     *, graph_weight):
    @pl.when(pl.program_id(1) == 0)
    def _():
        acc_ref[...] = jnp.zeros_like(acc_ref)

    # gcn accumulation: A_hat (tile_r, tile_k) bf16 @ xw (tile_k, H) bf16 -> f32 scratch.
    acc_ref[...] += jnp.dot(a_ref[...], xw_ref[...], preferred_element_type=jnp.float32)

    @pl.when(pl.program_id(1) == pl.num_programs(1) - 1)
    def _():
        gcn = acc_ref[...] + gb_ref[...]
        x = graph_weight * gcn + (1.0 - graph_weight) * x1_ref[...].astype(jnp.float32)
        o_ref[...] = jnp.dot(x, hw_ref[...], preferred_element_type=jnp.float32) + hb_ref[...]


def gcn_head(a_hat, xw, x1, gcn_b, head_w, head_b, graph_weight, tile_r, tile_k):
    n_pad, hidden = x1.shape
    dim_out = head_w.shape[1]
    return pl.pallas_call(
        functools.partial(_gcn_head_kernel, graph_weight=graph_weight),
        grid=(n_pad // tile_r, n_pad // tile_k),
        in_specs=[pl.BlockSpec((tile_r, tile_k), lambda i, j: (i, j)),   # A_hat tiles
                  pl.BlockSpec((tile_k, hidden), lambda i, j: (j, 0)),   # xw column block
                  pl.BlockSpec((tile_r, hidden), lambda i, j: (i, 0)),   # x1 (resident over j)
                  pl.BlockSpec(gcn_b.shape, lambda i, j: (0, 0)),
                  pl.BlockSpec(head_w.shape, lambda i, j: (0, 0)),
                  pl.BlockSpec(head_b.shape, lambda i, j: (0, 0))],
        out_specs=pl.BlockSpec((tile_r, dim_out), lambda i, j: (i, 0)),
        out_shape=jax.ShapeDtypeStruct((n_pad, dim_out), jnp.float32),
        scratch_shapes=[pltpu.VMEM((tile_r, hidden), jnp.float32)],
        compiler_params=pltpu.CompilerParams(
            dimension_semantics=("parallel", "arbitrary")),
    )(a_hat, xw, x1, gcn_b, head_w, head_b)


# ----------------------------- glue (plain JAX) -----------------------------
def normalized_adjacency(edge_index, num_nodes, n_pad):
    """Dense PyG-style GCN propagation matrix M[dst, src] = d_src^-1/2 d_dst^-1/2, built bf16."""
    # TODO(synk): for large graphs replace this dense O(N^2) matrix with a CSR formulation
    #             fed via PrefetchScalarGridSpec + manual DMA row gather; on v7x the A_hat
    #             stream could additionally be stored fp8 (int8 on v5e/v6e) for the MXU.
    src, dst = edge_index[0], edge_index[1]
    loop = jnp.arange(num_nodes, dtype=src.dtype)
    src = jnp.concatenate([src, loop])
    dst = jnp.concatenate([dst, loop])
    ew = jnp.ones(src.shape[0], jnp.float32)
    deg = jnp.zeros((n_pad,), jnp.float32).at[dst].add(ew)
    dinv = jnp.where(deg > 0, lax.rsqrt(deg), 0.0)
    norm = (dinv[src] * ew * dinv[dst]).astype(jnp.bfloat16)
    # Build directly in bf16: avoids an O(N^2) f32 write + read + bf16 rewrite.
    return jnp.zeros((n_pad, n_pad), jnp.bfloat16).at[dst, src].add(norm)


def init_params(key, dim_in, hidden, dim_out, num_layers):
    keys = iter(jax.random.split(key, 64))

    def lin(fan_in, fan_out):
        w = jax.random.normal(next(keys), (fan_in, fan_out), jnp.float32) * 0.1
        b = jax.random.normal(next(keys), (1, fan_out), jnp.float32) * 0.01
        return w, b

    p = {}
    # TODO(synk): GraphGym FeatureEncoder depends on cfg.dataset.* encoders;
    #             modeled here as a deterministic linear node encoder dim_in -> hidden.
    p["enc_w"], p["enc_b"] = lin(dim_in, hidden)
    p["fc_w"], p["fc_b"] = lin(hidden, hidden)                 # TransConv.fcs[0]
    p["ln_g"] = [jnp.ones((1, hidden), jnp.float32) for _ in range(num_layers + 1)]
    p["ln_b"] = [jnp.zeros((1, hidden), jnp.float32) for _ in range(num_layers + 1)]
    # Separate Wq/Wk/Wv (no lane-slicing of a fused 96-wide QKV activation in-kernel).
    for name in ("wq", "wk", "wv", "bq", "bk", "bv"):
        p[name] = []
    for _ in range(num_layers):
        wq, bq = lin(hidden, hidden)
        wk, bk = lin(hidden, hidden)
        wv, bv = lin(hidden, hidden)
        p["wq"].append(wq); p["wk"].append(wk); p["wv"].append(wv)
        p["bq"].append(bq); p["bk"].append(bk); p["bv"].append(bv)
    p["gcn_w"], p["gcn_b"] = lin(hidden, hidden)               # GCNConv
    p["head_w"], p["head_b"] = lin(hidden, dim_out)            # post_mp node head
    return p


def sgformer_forward(params, x, edge_index):
    n = x.shape[0]
    n_pad, tile_feat, tile_r, tile_k = _choose_tiling(n)
    xp = jnp.pad(x, ((0, n_pad - n), (0, 0)))
    n_arr = jnp.array([n], jnp.int32)       # node count lives in SMEM (scalar prefetch)

    # K1: FeatureEncoder + TransConv.fcs[0]/LN/ReLU + x0 @ W_gcn + layer-0 attention stats
    h, xw, kv, ksum, sq, sk = encoder_fused(
        n_arr, xp, params["enc_w"], params["enc_b"], params["fc_w"], params["fc_b"],
        params["gcn_w"], params["ln_g"][0], params["ln_b"][0],
        params["wq"][0], params["wk"][0], params["wv"][0],
        params["bq"][0], params["bk"][0], params["bv"][0], tile_feat)

    # ---- TransConv branch 'x -> x1': fused apply(i) + stats(i+1) per layer ----
    for i in range(NUM_TRANS_LAYERS):
        if i < NUM_TRANS_LAYERS - 1:
            h, kv, ksum, sq, sk = attention_apply_stats(
                n_arr, h,
                params["wq"][i], params["wk"][i], params["wv"][i],
                params["bq"][i], params["bk"][i], params["bv"][i],
                kv, ksum, sq, sk,
                params["ln_g"][i + 1], params["ln_b"][i + 1],
                params["wq"][i + 1], params["wk"][i + 1], params["wv"][i + 1],
                params["bq"][i + 1], params["bk"][i + 1], params["bv"][i + 1],
                alpha=ALPHA, tile=tile_feat)                                     # K2
        else:
            h = attention_apply_final(
                n_arr, h,
                params["wq"][i], params["wk"][i], params["wv"][i],
                params["bq"][i], params["bk"][i], params["bv"][i],
                kv, ksum, sq, sk,
                params["ln_g"][i + 1], params["ln_b"][i + 1],
                alpha=ALPHA, tile=tile_feat)                                     # K3
    x1 = h

    # ---- GCN branch + aggregate 'add' + post_mp head (K4, column-tiled) ----
    a_hat = normalized_adjacency(edge_index, n, n_pad)
    out = gcn_head(a_hat, xw, x1, params["gcn_b"], params["head_w"], params["head_b"],
                   GRAPH_WEIGHT, tile_r, tile_k)
    return out[:n]


if __name__ == "__main__":
    key = jax.random.PRNGKey(0)
    k_x, k_e, k_p = jax.random.split(key, 3)

    N, DIM_IN, DIM_OUT, E = 16, 12, 4, 40
    x = jax.random.normal(k_x, (N, DIM_IN), jnp.float32)
    edge_index = jax.random.randint(k_e, (2, E), 0, N, dtype=jnp.int32)

    params = init_params(k_p, DIM_IN, HIDDEN, DIM_OUT, NUM_TRANS_LAYERS)

    out = jax.jit(sgformer_forward)(params, x, edge_index)
    jax.block_until_ready(out)
    assert out.shape == (N, DIM_OUT) and out.dtype == jnp.float32
    print("KERNEL_OK")
</pallas_src>

<mosaic_0001>
module attributes {stable_mosaic.version = 11 : i64} {
  func.func @_encoder_kernel(%arg0: i32, %arg1: memref<1xi32, #tpu.memory_space<smem>>, %arg2: memref<16x12xf32, #tpu.memory_space<vmem>>, %arg3: memref<12x32xf32, #tpu.memory_space<vmem>>, %arg4: memref<1x32xf32, #tpu.memory_space<vmem>>, %arg5: memref<32x32xf32, #tpu.memory_space<vmem>>, %arg6: memref<1x32xf32, #tpu.memory_space<vmem>>, %arg7: memref<32x32xf32, #tpu.memory_space<vmem>>, %arg8: memref<1x32xf32, #tpu.memory_space<vmem>>, %arg9: memref<1x32xf32, #tpu.memory_space<vmem>>, %arg10: memref<32x32xf32, #tpu.memory_space<vmem>>, %arg11: memref<32x32xf32, #tpu.memory_space<vmem>>, %arg12: memref<32x32xf32, #tpu.memory_space<vmem>>, %arg13: memref<1x32xf32, #tpu.memory_space<vmem>>, %arg14: memref<1x32xf32, #tpu.memory_space<vmem>>, %arg15: memref<1x32xf32, #tpu.memory_space<vmem>>, %arg16: memref<16x32xbf16, #tpu.memory_space<vmem>>, %arg17: memref<16x32xbf16, #tpu.memory_space<vmem>>, %arg18: memref<32x32xf32, #tpu.memory_space<vmem>>, %arg19: memref<1x32xf32, #tpu.memory_space<vmem>>, %arg20: memref<1x1xf32, #tpu.memory_space<vmem>>, %arg21: memref<1x1xf32, #tpu.memory_space<vmem>>) attributes {dimension_semantics = [#tpu.dimension_semantics<arbitrary>], iteration_bounds = array<i64: 1>, scalar_prefetch = 1 : i64, scratch_operands = 0 : i64, tpu.core_type = #tpu.core_type<tc>, window_params = [{transform_indices = @transform_0, window_bounds = array<i64: 16, 12>}, {pipeline_mode = #tpu.pipeline_mode<synchronous>, transform_indices = @transform_1, window_bounds = array<i64: 12, 32>}, {pipeline_mode = #tpu.pipeline_mode<synchronous>, transform_indices = @transform_2, window_bounds = array<i64: 1, 32>}, {pipeline_mode = #tpu.pipeline_mode<synchronous>, transform_indices = @transform_3, window_bounds = array<i64: 32, 32>}, {pipeline_mode = #tpu.pipeline_mode<synchronous>, transform_indices = @transform_4, window_bounds = array<i64: 1, 32>}, {pipeline_mode = #tpu.pipeline_mode<synchronous>, transform_indices = @transform_5, window_bounds = array<i64: 32, 32>}, {pipeline_mode = #tpu.pipeline_mode<synchronous>, transform_indices = @transform_6, window_bounds = array<i64: 1, 32>}, {pipeline_mode = #tpu.pipeline_mode<synchronous>, transform_indices = @transform_7, window_bounds = array<i64: 1, 32>}, {pipeline_mode = #tpu.pipeline_mode<synchronous>, transform_indices = @transform_8, window_bounds = array<i64: 32, 32>}, {pipeline_mode = #tpu.pipeline_mode<synchronous>, transform_indices = @transform_9, window_bounds = array<i64: 32, 32>}, {pipeline_mode = #tpu.pipeline_mode<synchronous>, transform_indices = @transform_10, window_bounds = array<i64: 32, 32>}, {pipeline_mode = #tpu.pipeline_mode<synchronous>, transform_indices = @transform_11, window_bounds = array<i64: 1, 32>}, {pipeline_mode = #tpu.pipeline_mode<synchronous>, transform_indices = @transform_12, window_bounds = array<i64: 1, 32>}, {pipeline_mode = #tpu.pipeline_mode<synchronous>, transform_indices = @transform_13, window_bounds = array<i64: 1, 32>}, {transform_indices = @transform_14, window_bounds = array<i64: 16, 32>}, {transform_indices = @transform_15, window_bounds = array<i64: 16, 32>}, {pipeline_mode = #tpu.pipeline_mode<synchronous>, transform_indices = @transform_16, window_bounds = array<i64: 32, 32>}, {pipeline_mode = #tpu.pipeline_mode<synchronous>, transform_indices = @transform_17, window_bounds = array<i64: 1, 32>}, {pipeline_mode = #tpu.pipeline_mode<synchronous>, transform_indices = @transform_18, window_bounds = array<i64: 1, 1>}, {pipeline_mode = #tpu.pipeline_mode<synchronous>, transform_indices = @transform_19, window_bounds = array<i64: 1, 1>}]} {
    %c0_i32 = arith.constant 0 : i32
    %0 = arith.cmpi eq, %arg0, %c0_i32 : i32
    %1 = arith.extui %0 : i1 to i32
    %c0_i32_0 = arith.constant 0 : i32
    %2 = arith.cmpi ne, %1, %c0_i32_0 : i32
    scf.if %2 {
      %cst_67 = arith.constant 0.000000e+00 : f32
      %107 = vector.broadcast %cst_67 : f32 to vector<32x32xf32>
      %c0_68 = arith.constant 0 : index
      %c0_69 = arith.constant 0 : index
      %108 = vector.load %arg18[%c0_68, %c0_69] : memref<32x32xf32, #tpu.memory_space<vmem>>, vector<32x32xf32>
      tpu.vector_store %arg18[%c0_68, %c0_69], %107 {strides = array<i32>} : memref<32x32xf32, #tpu.memory_space<vmem>>, vector<32x32xf32>,
      %cst_70 = arith.constant 0.000000e+00 : f32
      %109 = vector.broadcast %cst_70 : f32 to vector<1x32xf32>
      %c0_71 = arith.constant 0 : index
      %c0_72 = arith.constant 0 : index
      %110 = vector.load %arg19[%c0_71, %c0_72] : memref<1x32xf32, #tpu.memory_space<vmem>>, vector<1x32xf32>
      tpu.vector_store %arg19[%c0_71, %c0_72], %109 {strides = array<i32>} : memref<1x32xf32, #tpu.memory_space<vmem>>, vector<1x32xf32>,
      %cst_73 = arith.constant 0.000000e+00 : f32
      %111 = vector.broadcast %cst_73 : f32 to vector<1x1xf32>
      %c0_74 = arith.constant 0 : index
      %c0_75 = arith.constant 0 : index
      %112 = vector.load %arg20[%c0_74, %c0_75] : memref<1x1xf32, #tpu.memory_space<vmem>>, vector<1x1xf32>
      tpu.vector_store %arg20[%c0_74, %c0_75], %111 {strides = array<i32>} : memref<1x1xf32, #tpu.memory_space<vmem>>, vector<1x1xf32>,
      %cst_76 = arith.constant 0.000000e+00 : f32
      %113 = vector.broadcast %cst_76 : f32 to vector<1x1xf32>
      %c0_77 = arith.constant 0 : index
      %c0_78 = arith.constant 0 : index
      %114 = vector.load %arg21[%c0_77, %c0_78] : memref<1x1xf32, #tpu.memory_space<vmem>>, vector<1x1xf32>
      tpu.vector_store %arg21[%c0_77, %c0_78], %113 {strides = array<i32>} : memref<1x1xf32, #tpu.memory_space<vmem>>, vector<1x1xf32>,
    } else {
    }
    %c0 = arith.constant 0 : index
    %c0_1 = arith.constant 0 : index
    %3 = vector.load %arg2[%c0, %c0_1] : memref<16x12xf32, #tpu.memory_space<vmem>>, vector<16x12xf32>
    %c0_2 = arith.constant 0 : index
    %c0_3 = arith.constant 0 : index
    %4 = vector.load %arg3[%c0_2, %c0_3] : memref<12x32xf32, #tpu.memory_space<vmem>>, vector<12x32xf32>
    %cst = arith.constant dense<0.000000e+00> : vector<16x32xf32>
    %5 = tpu.matmul %3, %4, %cst {dimension_numbers = #tpu.dot_dimension_numbers<[1], [0], [0], [1], [0, 0, 1, 1], [], []>} : vector<16x12xf32>, vector<12x32xf32>, vector<16x32xf32> -> vector<16x32xf32>
    %c0_4 = arith.constant 0 : index
    %c0_5 = arith.constant 0 : index
    %6 = vector.load %arg4[%c0_4, %c0_5] : memref<1x32xf32, #tpu.memory_space<vmem>>, vector<1x32xf32>
    %7 = vector.broadcast %6 : vector<1x32xf32> to vector<16x32xf32>
    %8 = arith.addf %5, %7 : vector<16x32xf32>
    %c0_6 = arith.constant 0 : index
    %c0_7 = arith.constant 0 : index
    %9 = vector.load %arg5[%c0_6, %c0_7] : memref<32x32xf32, #tpu.memory_space<vmem>>, vector<32x32xf32>
    %cst_8 = arith.constant dense<0.000000e+00> : vector<16x32xf32>
    %10 = tpu.matmul %8, %9, %cst_8 {dimension_numbers = #tpu.dot_dimension_numbers<[1], [0], [0], [1], [0, 0, 1, 1], [], []>} : vector<16x32xf32>, vector<32x32xf32>, vector<16x32xf32> -> vector<16x32xf32>
    %c0_9 = arith.constant 0 : index
    %c0_10 = arith.constant 0 : index
    %11 = vector.load %arg6[%c0_9, %c0_10] : memref<1x32xf32, #tpu.memory_space<vmem>>, vector<1x32xf32>
    %12 = vector.broadcast %11 : vector<1x32xf32> to vector<16x32xf32>
    %13 = arith.addf %10, %12 : vector<16x32xf32>
    %c0_11 = arith.constant 0 : index
    %c0_12 = arith.constant 0 : index
    %14 = vector.load %arg8[%c0_11, %c0_12] : memref<1x32xf32, #tpu.memory_space<vmem>>, vector<1x32xf32>
    %c0_13 = arith.constant 0 : index
    %c0_14 = arith.constant 0 : index
    %15 = vector.load %arg9[%c0_13, %c0_14] : memref<1x32xf32, #tpu.memory_space<vmem>>, vector<1x32xf32>
    %cst_15 = arith.constant dense<0.000000e+00> : vector<16xf32>
    %16 = vector.multi_reduction <add>, %13, %cst_15 [1] : vector<16x32xf32> to vector<16xf32>
    %17 = vector.shape_cast %16 : vector<16xf32> to vector<16x1xf32>
    %cst_16 = arith.constant 3.200000e+01 : f32
    %18 = vector.broadcast %cst_16 : f32 to vector<16x1xf32>
    %19 = arith.divf %17, %18 : vector<16x1xf32>
    %20 = vector.broadcast %19 : vector<16x1xf32> to vector<16x32xf32>
    %21 = arith.subf %13, %20 : vector<16x32xf32>
    %22 = arith.mulf %21, %21 : vector<16x32xf32>
    %cst_17 = arith.constant dense<0.000000e+00> : vector<16xf32>
    %23 = vector.multi_reduction <add>, %22, %cst_17 [1] : vector<16x32xf32> to vector<16xf32>
    %24 = vector.shape_cast %23 : vector<16xf32> to vector<16x1xf32>
    %cst_18 = arith.constant 3.200000e+01 : f32
    %25 = vector.broadcast %cst_18 : f32 to vector<16x1xf32>
    %26 = arith.divf %24, %25 : vector<16x1xf32>
    %cst_19 = arith.constant 9.99999974E-6 : f32
    %27 = vector.broadcast %cst_19 : f32 to vector<16x1xf32>
    %28 = arith.addf %26, %27 : vector<16x1xf32>
    %29 = math.rsqrt %28 : vector<16x1xf32>
    %30 = vector.broadcast %29 : vector<16x1xf32> to vector<16x32xf32>
    %31 = arith.mulf %21, %30 : vector<16x32xf32>
    %32 = vector.broadcast %14 : vector<1x32xf32> to vector<16x32xf32>
    %33 = arith.mulf %31, %32 : vector<16x32xf32>
    %34 = vector.broadcast %15 : vector<1x32xf32> to vector<16x32xf32>
    %35 = arith.addf %33, %34 : vector<16x32xf32>
    %cst_20 = arith.constant 0.000000e+00 : f32
    %36 = vector.broadcast %cst_20 : f32 to vector<16x32xf32>
    %37 = arith.maximumf %35, %36 : vector<16x32xf32>
    %38 = arith.truncf %37 : vector<16x32xf32> to vector<16x32xbf16>
    %c0_21 = arith.constant 0 : index
    %c0_22 = arith.constant 0 : index
    %39 = vector.load %arg16[%c0_21, %c0_22] : memref<16x32xbf16, #tpu.memory_space<vmem>>, vector<16x32xbf16>
    tpu.vector_store %arg16[%c0_21, %c0_22], %38 {strides = array<i32>} : memref<16x32xbf16, #tpu.memory_space<vmem>>, vector<16x32xbf16>,
    %c0_23 = arith.constant 0 : index
    %c0_24 = arith.constant 0 : index
    %40 = vector.load %arg7[%c0_23, %c0_24] : memref<32x32xf32, #tpu.memory_space<vmem>>, vector<32x32xf32>
    %cst_25 = arith.constant dense<0.000000e+00> : vector<16x32xf32>
    %41 = tpu.matmul %8, %40, %cst_25 {dimension_numbers = #tpu.dot_dimension_numbers<[1], [0], [0], [1], [0, 0, 1, 1], [], []>} : vector<16x32xf32>, vector<32x32xf32>, vector<16x32xf32> -> vector<16x32xf32>
    %42 = arith.truncf %41 : vector<16x32xf32> to vector<16x32xbf16>
    %c0_26 = arith.constant 0 : index
    %c0_27 = arith.constant 0 : index
    %43 = vector.load %arg17[%c0_26, %c0_27] : memref<16x32xbf16, #tpu.memory_space<vmem>>, vector<16x32xbf16>
    tpu.vector_store %arg17[%c0_26, %c0_27], %42 {strides = array<i32>} : memref<16x32xbf16, #tpu.memory_space<vmem>>, vector<16x32xbf16>,
    %c0_28 = arith.constant 0 : index
    %44 = memref.load %arg1[%c0_28] : memref<1xi32, #tpu.memory_space<smem>>
    %45 = tpu.iota {dimensions = array<i32: 0>} : vector<16x1xi32>
    %c16_i32 = arith.constant 16 : i32
    %46 = arith.muli %arg0, %c16_i32 : i32
    %47 = vector.broadcast %46 : i32 to vector<16x1xi32>
    %48 = arith.addi %45, %47 : vector<16x1xi32>
    %49 = vector.broadcast %44 : i32 to vector<16x1xi32>
    %50 = arith.cmpi slt, %48, %49 : vector<16x1xi32>
    %51 = arith.truncf %37 : vector<16x32xf32> to vector<16x32xbf16>
    %52 = arith.extf %51 : vector<16x32xbf16> to vector<16x32xf32>
    %c0_29 = arith.constant 0 : index
    %c0_30 = arith.constant 0 : index
    %53 = vector.load %arg10[%c0_29, %c0_30] : memref<32x32xf32, #tpu.memory_space<vmem>>, vector<32x32xf32>
    %cst_31 = arith.constant dense<0.000000e+00> : vector<16x32xf32>
    %54 = tpu.matmul %52, %53, %cst_31 {dimension_numbers = #tpu.dot_dimension_numbers<[1], [0], [0], [1], [0, 0, 1, 1], [], []>} : vector<16x32xf32>, vector<32x32xf32>, vector<16x32xf32> -> vector<16x32xf32>
    %c0_32 = arith.constant 0 : index
    %c0_33 = arith.constant 0 : index
    %55 = vector.load %arg13[%c0_32, %c0_33] : memref<1x32xf32, #tpu.memory_space<vmem>>, vector<1x32xf32>
    %56 = vector.broadcast %55 : vector<1x32xf32> to vector<16x32xf32>
    %57 = arith.addf %54, %56 : vector<16x32xf32>
    %c0_34 = arith.constant 0 : index
    %c0_35 = arith.constant 0 : index
    %58 = vector.load %arg11[%c0_34, %c0_35] : memref<32x32xf32, #tpu.memory_space<vmem>>, vector<32x32xf32>
    %cst_36 = arith.constant dense<0.000000e+00> : vector<16x32xf32>
    %59 = tpu.matmul %52, %58, %cst_36 {dimension_numbers = #tpu.dot_dimension_numbers<[1], [0], [0], [1], [0, 0, 1, 1], [], []>} : vector<16x32xf32>, vector<32x32xf32>, vector<16x32xf32> -> vector<16x32xf32>
    %c0_37 = arith.constant 0 : index
    %c0_38 = arith.constant 0 : index
    %60 = vector.load %arg14[%c0_37, %c0_38] : memref<1x32xf32, #tpu.memory_space<vmem>>, vector<1x32xf32>
    %61 = vector.broadcast %60 : vector<1x32xf32> to vector<16x32xf32>
    %62 = arith.addf %59, %61 : vector<16x32xf32>
    %c0_39 = arith.constant 0 : index
    %c0_40 = arith.constant 0 : index
    %63 = vector.load %arg12[%c0_39, %c0_40] : memref<32x32xf32, #tpu.memory_space<vmem>>, vector<32x32xf32>
    %cst_41 = arith.constant dense<0.000000e+00> : vector<16x32xf32>
    %64 = tpu.matmul %52, %63, %cst_41 {dimension_numbers = #tpu.dot_dimension_numbers<[1], [0], [0], [1], [0, 0, 1, 1], [], []>} : vector<16x32xf32>, vector<32x32xf32>, vector<16x32xf32> -> vector<16x32xf32>
    %c0_42 = arith.constant 0 : index
    %c0_43 = arith.constant 0 : index
    %65 = vector.load %arg15[%c0_42, %c0_43] : memref<1x32xf32, #tpu.memory_space<vmem>>, vector<1x32xf32>
    %66 = vector.broadcast %65 : vector<1x32xf32> to vector<16x32xf32>
    %67 = arith.addf %64, %66 : vector<16x32xf32>
    %cst_44 = arith.constant 0.000000e+00 : f32
    %68 = vector.shape_cast %50 : vector<16x1xi1> to vector<16x1xi1>
    %69 = vector.broadcast %68 : vector<16x1xi1> to vector<16x32xi1>
    %70 = vector.broadcast %cst_44 : f32 to vector<16x32xf32>
    %71 = arith.select %69, %57, %70 : vector<16x32xi1>, vector<16x32xf32>
    %cst_45 = arith.constant 0.000000e+00 : f32
    %72 = vector.shape_cast %50 : vector<16x1xi1> to vector<16x1xi1>
    %73 = vector.broadcast %72 : vector<16x1xi1> to vector<16x32xi1>
    %74 = vector.broadcast %cst_45 : f32 to vector<16x32xf32>
    %75 = arith.select %73, %62, %74 : vector<16x32xi1>, vector<16x32xf32>
    %cst_46 = arith.constant 0.000000e+00 : f32
    %76 = vector.shape_cast %50 : vector<16x1xi1> to vector<16x1xi1>
    %77 = vector.broadcast %76 : vector<16x1xi1> to vector<16x32xi1>
    %78 = vector.broadcast %cst_46 : f32 to vector<16x32xf32>
    %79 = arith.select %77, %67, %78 : vector<16x32xi1>, vector<16x32xf32>
    %c0_47 = arith.constant 0 : index
    %c0_48 = arith.constant 0 : index
    %80 = vector.load %arg18[%c0_47, %c0_48] : memref<32x32xf32, #tpu.memory_space<vmem>>, vector<32x32xf32>
    %cst_49 = arith.constant dense<0.000000e+00> : vector<32x32xf32>
    %81 = tpu.matmul %75, %79, %cst_49 {dimension_numbers = #tpu.dot_dimension_numbers<[0], [0], [1], [1], [0, 1, 1, 1], [], []>} : vector<16x32xf32>, vector<16x32xf32>, vector<32x32xf32> -> vector<32x32xf32>
    %82 = arith.addf %80, %81 : vector<32x32xf32>
    %c0_50 = arith.constant 0 : index
    %c0_51 = arith.constant 0 : index
    %83 = vector.load %arg18[%c0_50, %c0_51] : memref<32x32xf32, #tpu.memory_space<vmem>>, vector<32x32xf32>
    tpu.vector_store %arg18[%c0_50, %c0_51], %82 {strides = array<i32>} : memref<32x32xf32, #tpu.memory_space<vmem>>, vector<32x32xf32>,
    %c0_52 = arith.constant 0 : index
    %c0_53 = arith.constant 0 : index
    %84 = vector.load %arg19[%c0_52, %c0_53] : memref<1x32xf32, #tpu.memory_space<vmem>>, vector<1x32xf32>
    %cst_54 = arith.constant dense<0.000000e+00> : vector<32xf32>
    %85 = vector.multi_reduction <add>, %75, %cst_54 [0] : vector<16x32xf32> to vector<32xf32>
    %86 = vector.shape_cast %85 : vector<32xf32> to vector<1x32xf32>
    %87 = arith.addf %84, %86 : vector<1x32xf32>
    %c0_55 = arith.constant 0 : index
    %c0_56 = arith.constant 0 : index
    %88 = vector.load %arg19[%c0_55, %c0_56] : memref<1x32xf32, #tpu.memory_space<vmem>>, vector<1x32xf32>
    tpu.vector_store %arg19[%c0_55, %c0_56], %87 {strides = array<i32>} : memref<1x32xf32, #tpu.memory_space<vmem>>, vector<1x32xf32>,
    %c0_57 = arith.constant 0 : index
    %c0_58 = arith.constant 0 : index
    %89 = vector.load %arg20[%c0_57, %c0_58] : memref<1x1xf32, #tpu.memory_space<vmem>>, vector<1x1xf32>
    %90 = arith.mulf %71, %71 : vector<16x32xf32>
    %91 = vector.shape_cast %90 : vector<16x32xf32> to vector<1x16x32xf32>
    %cst_59 = arith.constant dense<0.000000e+00> : vector<1xf32>
    %92 = vector.multi_reduction <add>, %91, %cst_59 [1, 2] : vector<1x16x32xf32> to vector<1xf32>
    %93 = vector.shape_cast %92 : vector<1xf32> to vector<1x1x1xf32>
    %94 = vector.extract %93[0, 0, 0] : f32 from vector<1x1x1xf32>
    %95 = vector.broadcast %94 : f32 to vector<1x1xf32>
    %96 = arith.addf %89, %95 : vector<1x1xf32>
    %c0_60 = arith.constant 0 : index
    %c0_61 = arith.constant 0 : index
    %97 = vector.load %arg20[%c0_60, %c0_61] : memref<1x1xf32, #tpu.memory_space<vmem>>, vector<1x1xf32>
    tpu.vector_store %arg20[%c0_60, %c0_61], %96 {strides = array<i32>} : memref<1x1xf32, #tpu.memory_space<vmem>>, vector<1x1xf32>,
    %c0_62 = arith.constant 0 : index
    %c0_63 = arith.constant 0 : index
    %98 = vector.load %arg21[%c0_62, %c0_63] : memref<1x1xf32, #tpu.memory_space<vmem>>, vector<1x1xf32>
    %99 = arith.mulf %75, %75 : vector<16x32xf32>
    %100 = vector.shape_cast %99 : vector<16x32xf32> to vector<1x16x32xf32>
    %cst_64 = arith.constant dense<0.000000e+00> : vector<1xf32>
    %101 = vector.multi_reduction <add>, %100, %cst_64 [1, 2] : vector<1x16x32xf32> to vector<1xf32>
    %102 = vector.shape_cast %101 : vector<1xf32> to vector<1x1x1xf32>
    %103 = vector.extract %102[0, 0, 0] : f32 from vector<1x1x1xf32>
    %104 = vector.broadcast %103 : f32 to vector<1x1xf32>
    %105 = arith.addf %98, %104 : vector<1x1xf32>
    %c0_65 = arith.constant 0 : index
    %c0_66 = arith.constant 0 : index
    %106 = vector.load %arg21[%c0_65, %c0_66] : memref<1x1xf32, #tpu.memory_space<vmem>>, vector<1x1xf32>
    tpu.vector_store %arg21[%c0_65, %c0_66], %105 {strides = array<i32>} : memref<1x1xf32, #tpu.memory_space<vmem>>, vector<1x1xf32>,
    return
  }
  func.func @transform_0(%arg0: i32, %arg1: memref<1xi32, #tpu.memory_space<smem>>) -> (i32, i32) {
    %c0_i32 = arith.constant 0 : i32
    %c0_i32_0 = arith.constant 0 : i32
    return %arg0, %c0_i32 : i32, i32
  }
  func.func @transform_1(%arg0: i32, %arg1: memref<1xi32, #tpu.memory_space<smem>>) -> (i32, i32) {
    %c0_i32 = arith.constant 0 : i32
    %c0_i32_0 = arith.constant 0 : i32
    %c0_i32_1 = arith.constant 0 : i32
    return %c0_i32, %c0_i32_0 : i32, i32
  }
  func.func @transform_2(%arg0: i32, %arg1: memref<1xi32, #tpu.memory_space<smem>>) -> (i32, i32) {
    %c0_i32 = arith.constant 0 : i32
    %c0_i32_0 = arith.constant 0 : i32
    %c0_i32_1 = arith.constant 0 : i32
    return %c0_i32, %c0_i32_0 : i32, i32
  }
  func.func @transform_3(%arg0: i32, %arg1: memref<1xi32, #tpu.memory_space<smem>>) -> (i32, i32) {
    %c0_i32 = arith.constant 0 : i32
    %c0_i32_0 = arith.constant 0 : i32
    %c0_i32_1 = arith.constant 0 : i32
    return %c0_i32, %c0_i32_0 : i32, i32
  }
  func.func @transform_4(%arg0: i32, %arg1: memref<1xi32, #tpu.memory_space<smem>>) -> (i32, i32) {
    %c0_i32 = arith.constant 0 : i32
    %c0_i32_0 = arith.constant 0 : i32
    %c0_i32_1 = arith.constant 0 : i32
    return %c0_i32, %c0_i32_0 : i32, i32
  }
  func.func @transform_5(%arg0: i32, %arg1: memref<1xi32, #tpu.memory_space<smem>>) -> (i32, i32) {
    %c0_i32 = arith.constant 0 : i32
    %c0_i32_0 = arith.constant 0 : i32
    %c0_i32_1 = arith.constant 0 : i32
    return %c0_i32, %c0_i32_0 : i32, i32
  }
  func.func @transform_6(%arg0: i32, %arg1: memref<1xi32, #tpu.memory_space<smem>>) -> (i32, i32) {
    %c0_i32 = arith.constant 0 : i32
    %c0_i32_0 = arith.constant 0 : i32
    %c0_i32_1 = arith.constant 0 : i32
    return %c0_i32, %c0_i32_0 : i32, i32
  }
  func.func @transform_7(%arg0: i32, %arg1: memref<1xi32, #tpu.memory_space<smem>>) -> (i32, i32) {
    %c0_i32 = arith.constant 0 : i32
    %c0_i32_0 = arith.constant 0 : i32
    %c0_i32_1 = arith.constant 0 : i32
    return %c0_i32, %c0_i32_0 : i32, i32
  }
  func.func @transform_8(%arg0: i32, %arg1: memref<1xi32, #tpu.memory_space<smem>>) -> (i32, i32) {
    %c0_i32 = arith.constant 0 : i32
    %c0_i32_0 = arith.constant 0 : i32
    %c0_i32_1 = arith.constant 0 : i32
    return %c0_i32, %c0_i32_0 : i32, i32
  }
  func.func @transform_9(%arg0: i32, %arg1: memref<1xi32, #tpu.memory_space<smem>>) -> (i32, i32) {
    %c0_i32 = arith.constant 0 : i32
    %c0_i32_0 = arith.constant 0 : i32
    %c0_i32_1 = arith.constant 0 : i32
    return %c0_i32, %c0_i32_0 : i32, i32
  }
  func.func @transform_10(%arg0: i32, %arg1: memref<1xi32, #tpu.memory_space<smem>>) -> (i32, i32) {
    %c0_i32 = arith.constant 0 : i32
    %c0_i32_0 = arith.constant 0 : i32
    %c0_i32_1 = arith.constant 0 : i32
    return %c0_i32, %c0_i32_0 : i32, i32
  }
  func.func @transform_11(%arg0: i32, %arg1: memref<1xi32, #tpu.memory_space<smem>>) -> (i32, i32) {
    %c0_i32 = arith.constant 0 : i32
    %c0_i32_0 = arith.constant 0 : i32
    %c0_i32_1 = arith.constant 0 : i32
    return %c0_i32, %c0_i32_0 : i32, i32
  }
  func.func @transform_12(%arg0: i32, %arg1: memref<1xi32, #tpu.memory_space<smem>>) -> (i32, i32) {
    %c0_i32 = arith.constant 0 : i32
    %c0_i32_0 = arith.constant 0 : i32
    %c0_i32_1 = arith.constant 0 : i32
    return %c0_i32, %c0_i32_0 : i32, i32
  }
  func.func @transform_13(%arg0: i32, %arg1: memref<1xi32, #tpu.memory_space<smem>>) -> (i32, i32) {
    %c0_i32 = arith.constant 0 : i32
    %c0_i32_0 = arith.constant 0 : i32
    %c0_i32_1 = arith.constant 0 : i32
    return %c0_i32, %c0_i32_0 : i32, i32
  }
  func.func @transform_14(%arg0: i32, %arg1: memref<1xi32, #tpu.memory_space<smem>>) -> (i32, i32) {
    %c0_i32 = arith.constant 0 : i32
    %c0_i32_0 = arith.constant 0 : i32
    return %arg0, %c0_i32 : i32, i32
  }
  func.func @transform_15(%arg0: i32, %arg1: memref<1xi32, #tpu.memory_space<smem>>) -> (i32, i32) {
    %c0_i32 = arith.constant 0 : i32
    %c0_i32_0 = arith.constant 0 : i32
    return %arg0, %c0_i32 : i32, i32
  }
  func.func @transform_16(%arg0: i32, %arg1: memref<1xi32, #tpu.memory_space<smem>>) -> (i32, i32) {
    %c0_i32 = arith.constant 0 : i32
    %c0_i32_0 = arith.constant 0 : i32
    %c0_i32_1 = arith.constant 0 : i32
    return %c0_i32, %c0_i32_0 : i32, i32
  }
  func.func @transform_17(%arg0: i32, %arg1: memref<1xi32, #tpu.memory_space<smem>>) -> (i32, i32) {
    %c0_i32 = arith.constant 0 : i32
    %c0_i32_0 = arith.constant 0 : i32
    %c0_i32_1 = arith.constant 0 : i32
    return %c0_i32, %c0_i32_0 : i32, i32
  }
  func.func @transform_18(%arg0: i32, %arg1: memref<1xi32, #tpu.memory_space<smem>>) -> (i32, i32) {
    %c0_i32 = arith.constant 0 : i32
    %c0_i32_0 = arith.constant 0 : i32
    %c0_i32_1 = arith.constant 0 : i32
    return %c0_i32, %c0_i32_0 : i32, i32
  }
  func.func @transform_19(%arg0: i32, %arg1: memref<1xi32, #tpu.memory_space<smem>>) -> (i32, i32) {
    %c0_i32 = arith.constant 0 : i32
    %c0_i32_0 = arith.constant 0 : i32
    %c0_i32_1 = arith.constant 0 : i32
    return %c0_i32, %c0_i32_0 : i32, i32
  }
}

module attributes {stable_mosaic.version = 11 : i64} {
  func.func @_attn_apply_final_kernel(%arg0: i32, %arg1: memref<1xi32, #tpu.memory_space<smem>>, %arg2: memref<16x32xbf16, #tpu.memory_space<vmem>>, %arg3: memref<32x32xf32, #tpu.memory_space<vmem>>, %arg4: memref<32x32xf32, #tpu.memory_space<vmem>>, %arg5: memref<32x32xf32, #tpu.memory_space<vmem>>, %arg6: memref<1x32xf32, #tpu.memory_space<vmem>>, %arg7: memref<1x32xf32, #tpu.memory_space<vmem>>, %arg8: memref<1x32xf32, #tpu.memory_space<vmem>>, %arg9: memref<32x32xf32, #tpu.memory_space<vmem>>, %arg10: memref<1x32xf32, #tpu.memory_space<vmem>>, %arg11: memref<1x1xf32, #tpu.memory_space<vmem>>, %arg12: memref<1x1xf32, #tpu.memory_space<vmem>>, %arg13: memref<1x32xf32, #tpu.memory_space<vmem>>, %arg14: memref<1x32xf32, #tpu.memory_space<vmem>>, %arg15: memref<16x32xbf16, #tpu.memory_space<vmem>>) attributes {dimension_semantics = [#tpu.dimension_semantics<parallel>], iteration_bounds = array<i64: 1>, scalar_prefetch = 1 : i64, scratch_operands = 0 : i64, tpu.core_type = #tpu.core_type<tc>, window_params = [{transform_indices = @transform_0, window_bounds = array<i64: 16, 32>}, {pipeline_mode = #tpu.pipeline_mode<synchronous>, transform_indices = @transform_1, window_bounds = array<i64: 32, 32>}, {pipeline_mode = #tpu.pipeline_mode<synchronous>, transform_indices = @transform_2, window_bounds = array<i64: 32, 32>}, {pipeline_mode = #tpu.pipeline_mode<synchronous>, transform_indices = @transform_3, window_bounds = array<i64: 32, 32>}, {pipeline_mode = #tpu.pipeline_mode<synchronous>, transform_indices = @transform_4, window_bounds = array<i64: 1, 32>}, {pipeline_mode = #tpu.pipeline_mode<synchronous>, transform_indices = @transform_5, window_bounds = array<i64: 1, 32>}, {pipeline_mode = #tpu.pipeline_mode<synchronous>, transform_indices = @transform_6, window_bounds = array<i64: 1, 32>}, {pipeline_mode = #tpu.pipeline_mode<synchronous>, transform_indices = @transform_7, window_bounds = array<i64: 32, 32>}, {pipeline_mode = #tpu.pipeline_mode<synchronous>, transform_indices = @transform_8, window_bounds = array<i64: 1, 32>}, {pipeline_mode = #tpu.pipeline_mode<synchronous>, transform_indices = @transform_9, window_bounds = array<i64: 1, 1>}, {pipeline_mode = #tpu.pipeline_mode<synchronous>, transform_indices = @transform_10, window_bounds = array<i64: 1, 1>}, {pipeline_mode = #tpu.pipeline_mode<synchronous>, transform_indices = @transform_11, window_bounds = array<i64: 1, 32>}, {pipeline_mode = #tpu.pipeline_mode<synchronous>, transform_indices = @transform_12, window_bounds = array<i64: 1, 32>}, {transform_indices = @transform_13, window_bounds = array<i64: 16, 32>}]} {
    %c0 = arith.constant 0 : index
    %c0_0 = arith.constant 0 : index
    %0 = vector.load %arg2[%c0, %c0_0] : memref<16x32xbf16, #tpu.memory_space<vmem>>, vector<16x32xbf16>
    %1 = arith.extf %0 : vector<16x32xbf16> to vector<16x32xf32>
    %c0_1 = arith.constant 0 : index
    %2 = memref.load %arg1[%c0_1] : memref<1xi32, #tpu.memory_space<smem>>
    %3 = arith.sitofp %2 : i32 to f32
    %c0_2 = arith.constant 0 : index
    %c0_3 = arith.constant 0 : index
    %4 = vector.load %arg3[%c0_2, %c0_3] : memref<32x32xf32, #tpu.memory_space<vmem>>, vector<32x32xf32>
    %cst = arith.constant dense<0.000000e+00> : vector<16x32xf32>
    %5 = tpu.matmul %1, %4, %cst {dimension_numbers = #tpu.dot_dimension_numbers<[1], [0], [0], [1], [0, 0, 1, 1], [], []>} : vector<16x32xf32>, vector<32x32xf32>, vector<16x32xf32> -> vector<16x32xf32>
    %c0_4 = arith.constant 0 : index
    %c0_5 = arith.constant 0 : index
    %6 = vector.load %arg6[%c0_4, %c0_5] : memref<1x32xf32, #tpu.memory_space<vmem>>, vector<1x32xf32>
    %7 = vector.broadcast %6 : vector<1x32xf32> to vector<16x32xf32>
    %8 = arith.addf %5, %7 : vector<16x32xf32>
    %c0_6 = arith.constant 0 : index
    %c0_7 = arith.constant 0 : index
    %9 = vector.load %arg5[%c0_6, %c0_7] : memref<32x32xf32, #tpu.memory_space<vmem>>, vector<32x32xf32>
    %cst_8 = arith.constant dense<0.000000e+00> : vector<16x32xf32>
    %10 = tpu.matmul %1, %9, %cst_8 {dimension_numbers = #tpu.dot_dimension_numbers<[1], [0], [0], [1], [0, 0, 1, 1], [], []>} : vector<16x32xf32>, vector<32x32xf32>, vector<16x32xf32> -> vector<16x32xf32>
    %c0_9 = arith.constant 0 : index
    %c0_10 = arith.constant 0 : index
    %11 = vector.load %arg8[%c0_9, %c0_10] : memref<1x32xf32, #tpu.memory_space<vmem>>, vector<1x32xf32>
    %12 = vector.broadcast %11 : vector<1x32xf32> to vector<16x32xf32>
    %13 = arith.addf %10, %12 : vector<16x32xf32>
    %c0_11 = arith.constant 0 : index
    %c0_12 = arith.constant 0 : index
    %14 = vector.load %arg11[%c0_11, %c0_12] : memref<1x1xf32, #tpu.memory_space<vmem>>, vector<1x1xf32>
    %15 = math.rsqrt %14 : vector<1x1xf32>
    %c0_13 = arith.constant 0 : index
    %c0_14 = arith.constant 0 : index
    %16 = vector.load %arg12[%c0_13, %c0_14] : memref<1x1xf32, #tpu.memory_space<vmem>>, vector<1x1xf32>
    %17 = math.rsqrt %16 : vector<1x1xf32>
    %18 = vector.broadcast %15 : vector<1x1xf32> to vector<16x32xf32>
    %19 = arith.mulf %8, %18 : vector<16x32xf32>
    %c0_15 = arith.constant 0 : index
    %c0_16 = arith.constant 0 : index
    %20 = vector.load %arg9[%c0_15, %c0_16] : memref<32x32xf32, #tpu.memory_space<vmem>>, vector<32x32xf32>
    %21 = vector.broadcast %17 : vector<1x1xf32> to vector<32x32xf32>
    %22 = arith.mulf %20, %21 : vector<32x32xf32>
    %c0_17 = arith.constant 0 : index
    %c0_18 = arith.constant 0 : index
    %23 = vector.load %arg10[%c0_17, %c0_18] : memref<1x32xf32, #tpu.memory_space<vmem>>, vector<1x32xf32>
    %24 = vector.broadcast %17 : vector<1x1xf32> to vector<1x32xf32>
    %25 = arith.mulf %23, %24 : vector<1x32xf32>
    %cst_19 = arith.constant dense<0.000000e+00> : vector<16x32xf32>
    %26 = tpu.matmul %19, %22, %cst_19 {dimension_numbers = #tpu.dot_dimension_numbers<[1], [0], [0], [1], [0, 0, 1, 1], [], []>} : vector<16x32xf32>, vector<32x32xf32>, vector<16x32xf32> -> vector<16x32xf32>
    %27 = vector.broadcast %3 : f32 to vector<16x32xf32>
    %28 = arith.mulf %27, %13 : vector<16x32xf32>
    %29 = arith.addf %26, %28 : vector<16x32xf32>
    %30 = vector.broadcast %25 : vector<1x32xf32> to vector<16x32xf32>
    %31 = arith.mulf %19, %30 : vector<16x32xf32>
    %cst_20 = arith.constant dense<0.000000e+00> : vector<16xf32>
    %32 = vector.multi_reduction <add>, %31, %cst_20 [1] : vector<16x32xf32> to vector<16xf32>
    %33 = vector.shape_cast %32 : vector<16xf32> to vector<16x1xf32>
    %34 = vector.broadcast %3 : f32 to vector<16x1xf32>
    %35 = arith.addf %33, %34 : vector<16x1xf32>
    %36 = vector.broadcast %35 : vector<16x1xf32> to vector<16x32xf32>
    %37 = arith.divf %29, %36 : vector<16x32xf32>
    %cst_21 = arith.constant 5.000000e-01 : f32
    %38 = vector.broadcast %cst_21 : f32 to vector<16x32xf32>
    %39 = arith.mulf %38, %37 : vector<16x32xf32>
    %cst_22 = arith.constant 5.000000e-01 : f32
    %40 = vector.broadcast %cst_22 : f32 to vector<16x32xf32>
    %41 = arith.mulf %40, %1 : vector<16x32xf32>
    %42 = arith.addf %39, %41 : vector<16x32xf32>
    %c0_23 = arith.constant 0 : index
    %c0_24 = arith.constant 0 : index
    %43 = vector.load %arg13[%c0_23, %c0_24] : memref<1x32xf32, #tpu.memory_space<vmem>>, vector<1x32xf32>
    %c0_25 = arith.constant 0 : index
    %c0_26 = arith.constant 0 : index
    %44 = vector.load %arg14[%c0_25, %c0_26] : memref<1x32xf32, #tpu.memory_space<vmem>>, vector<1x32xf32>
    %cst_27 = arith.constant dense<0.000000e+00> : vector<16xf32>
    %45 = vector.multi_reduction <add>, %42, %cst_27 [1] : vector<16x32xf32> to vector<16xf32>
    %46 = vector.shape_cast %45 : vector<16xf32> to vector<16x1xf32>
    %cst_28 = arith.constant 3.200000e+01 : f32
    %47 = vector.broadcast %cst_28 : f32 to vector<16x1xf32>
    %48 = arith.divf %46, %47 : vector<16x1xf32>
    %49 = vector.broadcast %48 : vector<16x1xf32> to vector<16x32xf32>
    %50 = arith.subf %42, %49 : vector<16x32xf32>
    %51 = arith.mulf %50, %50 : vector<16x32xf32>
    %cst_29 = arith.constant dense<0.000000e+00> : vector<16xf32>
    %52 = vector.multi_reduction <add>, %51, %cst_29 [1] : vector<16x32xf32> to vector<16xf32>
    %53 = vector.shape_cast %52 : vector<16xf32> to vector<16x1xf32>
    %cst_30 = arith.constant 3.200000e+01 : f32
    %54 = vector.broadcast %cst_30 : f32 to vector<16x1xf32>
    %55 = arith.divf %53, %54 : vector<16x1xf32>
    %cst_31 = arith.constant 9.99999974E-6 : f32
    %56 = vector.broadcast %cst_31 : f32 to vector<16x1xf32>
    %57 = arith.addf %55, %56 : vector<16x1xf32>
    %58 = math.rsqrt %57 : vector<16x1xf32>
    %59 = vector.broadcast %58 : vector<16x1xf32> to vector<16x32xf32>
    %60 = arith.mulf %50, %59 : vector<16x32xf32>
    %61 = vector.broadcast %43 : vector<1x32xf32> to vector<16x32xf32>
    %62 = arith.mulf %60, %61 : vector<16x32xf32>
    %63 = vector.broadcast %44 : vector<1x32xf32> to vector<16x32xf32>
    %64 = arith.addf %62, %63 : vector<16x32xf32>
    %65 = arith.truncf %64 : vector<16x32xf32> to vector<16x32xbf16>
    %c0_32 = arith.constant 0 : index
    %c0_33 = arith.constant 0 : index
    %66 = vector.load %arg15[%c0_32, %c0_33] : memref<16x32xbf16, #tpu.memory_space<vmem>>, vector<16x32xbf16>
    tpu.vector_store %arg15[%c0_32, %c0_33], %65 {strides = array<i32>} : memref<16x32xbf16, #tpu.memory_space<vmem>>, vector<16x32xbf16>,
    return
  }
  func.func @transform_0(%arg0: i32, %arg1: memref<1xi32, #tpu.memory_space<smem>>) -> (i32, i32) {
    %c0_i32 = arith.constant 0 : i32
    %c0_i32_0 = arith.constant 0 : i32
    return %arg0, %c0_i32 : i32, i32
  }
  func.func @transform_1(%arg0: i32, %arg1: memref<1xi32, #tpu.memory_space<smem>>) -> (i32, i32) {
    %c0_i32 = arith.constant 0 : i32
    %c0_i32_0 = arith.constant 0 : i32
    %c0_i32_1 = arith.constant 0 : i32
    return %c0_i32, %c0_i32_0 : i32, i32
  }
  func.func @transform_2(%arg0: i32, %arg1: memref<1xi32, #tpu.memory_space<smem>>) -> (i32, i32) {
    %c0_i32 = arith.constant 0 : i32
    %c0_i32_0 = arith.constant 0 : i32
    %c0_i32_1 = arith.constant 0 : i32
    return %c0_i32, %c0_i32_0 : i32, i32
  }
  func.func @transform_3(%arg0: i32, %arg1: memref<1xi32, #tpu.memory_space<smem>>) -> (i32, i32) {
    %c0_i32 = arith.constant 0 : i32
    %c0_i32_0 = arith.constant 0 : i32
    %c0_i32_1 = arith.constant 0 : i32
    return %c0_i32, %c0_i32_0 : i32, i32
  }
  func.func @transform_4(%arg0: i32, %arg1: memref<1xi32, #tpu.memory_space<smem>>) -> (i32, i32) {
    %c0_i32 = arith.constant 0 : i32
    %c0_i32_0 = arith.constant 0 : i32
    %c0_i32_1 = arith.constant 0 : i32
    return %c0_i32, %c0_i32_0 : i32, i32
  }
  func.func @transform_5(%arg0: i32, %arg1: memref<1xi32, #tpu.memory_space<smem>>) -> (i32, i32) {
    %c0_i32 = arith.constant 0 : i32
    %c0_i32_0 = arith.constant 0 : i32
    %c0_i32_1 = arith.constant 0 : i32
    return %c0_i32, %c0_i32_0 : i32, i32
  }
  func.func @transform_6(%arg0: i32, %arg1: memref<1xi32, #tpu.memory_space<smem>>) -> (i32, i32) {
    %c0_i32 = arith.constant 0 : i32
    %c0_i32_0 = arith.constant 0 : i32
    %c0_i32_1 = arith.constant 0 : i32
    return %c0_i32, %c0_i32_0 : i32, i32
  }
  func.func @transform_7(%arg0: i32, %arg1: memref<1xi32, #tpu.memory_space<smem>>) -> (i32, i32) {
    %c0_i32 = arith.constant 0 : i32
    %c0_i32_0 = arith.constant 0 : i32
    %c0_i32_1 = arith.constant 0 : i32
    return %c0_i32, %c0_i32_0 : i32, i32
  }
  func.func @transform_8(%arg0: i32, %arg1: memref<1xi32, #tpu.memory_space<smem>>) -> (i32, i32) {
    %c0_i32 = arith.constant 0 : i32
    %c0_i32_0 = arith.constant 0 : i32
    %c0_i32_1 = arith.constant 0 : i32
    return %c0_i32, %c0_i32_0 : i32, i32
  }
  func.func @transform_9(%arg0: i32, %arg1: memref<1xi32, #tpu.memory_space<smem>>) -> (i32, i32) {
    %c0_i32 = arith.constant 0 : i32
    %c0_i32_0 = arith.constant 0 : i32
    %c0_i32_1 = arith.constant 0 : i32
    return %c0_i32, %c0_i32_0 : i32, i32
  }
  func.func @transform_10(%arg0: i32, %arg1: memref<1xi32, #tpu.memory_space<smem>>) -> (i32, i32) {
    %c0_i32 = arith.constant 0 : i32
    %c0_i32_0 = arith.constant 0 : i32
    %c0_i32_1 = arith.constant 0 : i32
    return %c0_i32, %c0_i32_0 : i32, i32
  }
  func.func @transform_11(%arg0: i32, %arg1: memref<1xi32, #tpu.memory_space<smem>>) -> (i32, i32) {
    %c0_i32 = arith.constant 0 : i32
    %c0_i32_0 = arith.constant 0 : i32
    %c0_i32_1 = arith.constant 0 : i32
    return %c0_i32, %c0_i32_0 : i32, i32
  }
  func.func @transform_12(%arg0: i32, %arg1: memref<1xi32, #tpu.memory_space<smem>>) -> (i32, i32) {
    %c0_i32 = arith.constant 0 : i32
    %c0_i32_0 = arith.constant 0 : i32
    %c0_i32_1 = arith.constant 0 : i32
    return %c0_i32, %c0_i32_0 : i32, i32
  }
  func.func @transform_13(%arg0: i32, %arg1: memref<1xi32, #tpu.memory_space<smem>>) -> (i32, i32) {
    %c0_i32 = arith.constant 0 : i32
    %c0_i32_0 = arith.constant 0 : i32
    return %arg0, %c0_i32 : i32, i32
  }
}

module attributes {stable_mosaic.version = 11 : i64} {
  func.func @_attn_apply_stats_kernel(%arg0: i32, %arg1: memref<1xi32, #tpu.memory_space<smem>>, %arg2: memref<16x32xbf16, #tpu.memory_space<vmem>>, %arg3: memref<32x32xf32, #tpu.memory_space<vmem>>, %arg4: memref<32x32xf32, #tpu.memory_space<vmem>>, %arg5: memref<32x32xf32, #tpu.memory_space<vmem>>, %arg6: memref<1x32xf32, #tpu.memory_space<vmem>>, %arg7: memref<1x32xf32, #tpu.memory_space<vmem>>, %arg8: memref<1x32xf32, #tpu.memory_space<vmem>>, %arg9: memref<32x32xf32, #tpu.memory_space<vmem>>, %arg10: memref<1x32xf32, #tpu.memory_space<vmem>>, %arg11: memref<1x1xf32, #tpu.memory_space<vmem>>, %arg12: memref<1x1xf32, #tpu.memory_space<vmem>>, %arg13: memref<1x32xf32, #tpu.memory_space<vmem>>, %arg14: memref<1x32xf32, #tpu.memory_space<vmem>>, %arg15: memref<32x32xf32, #tpu.memory_space<vmem>>, %arg16: memref<32x32xf32, #tpu.memory_space<vmem>>, %arg17: memref<32x32xf32, #tpu.memory_space<vmem>>, %arg18: memref<1x32xf32, #tpu.memory_space<vmem>>, %arg19: memref<1x32xf32, #tpu.memory_space<vmem>>, %arg20: memref<1x32xf32, #tpu.memory_space<vmem>>, %arg21: memref<16x32xbf16, #tpu.memory_space<vmem>>, %arg22: memref<32x32xf32, #tpu.memory_space<vmem>>, %arg23: memref<1x32xf32, #tpu.memory_space<vmem>>, %arg24: memref<1x1xf32, #tpu.memory_space<vmem>>, %arg25: memref<1x1xf32, #tpu.memory_space<vmem>>) attributes {dimension_semantics = [#tpu.dimension_semantics<arbitrary>], iteration_bounds = array<i64: 1>, scalar_prefetch = 1 : i64, scratch_operands = 0 : i64, tpu.core_type = #tpu.core_type<tc>, window_params = [{transform_indices = @transform_0, window_bounds = array<i64: 16, 32>}, {pipeline_mode = #tpu.pipeline_mode<synchronous>, transform_indices = @transform_1, window_bounds = array<i64: 32, 32>}, {pipeline_mode = #tpu.pipeline_mode<synchronous>, transform_indices = @transform_2, window_bounds = array<i64: 32, 32>}, {pipeline_mode = #tpu.pipeline_mode<synchronous>, transform_indices = @transform_3, window_bounds = array<i64: 32, 32>}, {pipeline_mode = #tpu.pipeline_mode<synchronous>, transform_indices = @transform_4, window_bounds = array<i64: 1, 32>}, {pipeline_mode = #tpu.pipeline_mode<synchronous>, transform_indices = @transform_5, window_bounds = array<i64: 1, 32>}, {pipeline_mode = #tpu.pipeline_mode<synchronous>, transform_indices = @transform_6, window_bounds = array<i64: 1, 32>}, {pipeline_mode = #tpu.pipeline_mode<synchronous>, transform_indices = @transform_7, window_bounds = array<i64: 32, 32>}, {pipeline_mode = #tpu.pipeline_mode<synchronous>, transform_indices = @transform_8, window_bounds = array<i64: 1, 32>}, {pipeline_mode = #tpu.pipeline_mode<synchronous>, transform_indices = @transform_9, window_bounds = array<i64: 1, 1>}, {pipeline_mode = #tpu.pipeline_mode<synchronous>, transform_indices = @transform_10, window_bounds = array<i64: 1, 1>}, {pipeline_mode = #tpu.pipeline_mode<synchronous>, transform_indices = @transform_11, window_bounds = array<i64: 1, 32>}, {pipeline_mode = #tpu.pipeline_mode<synchronous>, transform_indices = @transform_12, window_bounds = array<i64: 1, 32>}, {pipeline_mode = #tpu.pipeline_mode<synchronous>, transform_indices = @transform_13, window_bounds = array<i64: 32, 32>}, {pipeline_mode = #tpu.pipeline_mode<synchronous>, transform_indices = @transform_14, window_bounds = array<i64: 32, 32>}, {pipeline_mode = #tpu.pipeline_mode<synchronous>, transform_indices = @transform_15, window_bounds = array<i64: 32, 32>}, {pipeline_mode = #tpu.pipeline_mode<synchronous>, transform_indices = @transform_16, window_bounds = array<i64: 1, 32>}, {pipeline_mode = #tpu.pipeline_mode<synchronous>, transform_indices = @transform_17, window_bounds = array<i64: 1, 32>}, {pipeline_mode = #tpu.pipeline_mode<synchronous>, transform_indices = @transform_18, window_bounds = array<i64: 1, 32>}, {transform_indices = @transform_19, window_bounds = array<i64: 16, 32>}, {pipeline_mode = #tpu.pipeline_mode<synchronous>, transform_indices = @transform_20, window_bounds = array<i64: 32, 32>}, {pipeline_mode = #tpu.pipeline_mode<synchronous>, transform_indices = @transform_21, window_bounds = array<i64: 1, 32>}, {pipeline_mode = #tpu.pipeline_mode<synchronous>, transform_indices = @transform_22, window_bounds = array<i64: 1, 1>}, {pipeline_mode = #tpu.pipeline_mode<synchronous>, transform_indices = @transform_23, window_bounds = array<i64: 1, 1>}]} {
    %c0_i32 = arith.constant 0 : i32
    %0 = arith.cmpi eq, %arg0, %c0_i32 : i32
    %1 = arith.extui %0 : i1 to i32
    %c0_i32_0 = arith.constant 0 : i32
    %2 = arith.cmpi ne, %1, %c0_i32_0 : i32
    scf.if %2 {
      %cst_74 = arith.constant 0.000000e+00 : f32
      %133 = vector.broadcast %cst_74 : f32 to vector<32x32xf32>
      %c0_75 = arith.constant 0 : index
      %c0_76 = arith.constant 0 : index
      %134 = vector.load %arg22[%c0_75, %c0_76] : memref<32x32xf32, #tpu.memory_space<vmem>>, vector<32x32xf32>
      tpu.vector_store %arg22[%c0_75, %c0_76], %133 {strides = array<i32>} : memref<32x32xf32, #tpu.memory_space<vmem>>, vector<32x32xf32>,
      %cst_77 = arith.constant 0.000000e+00 : f32
      %135 = vector.broadcast %cst_77 : f32 to vector<1x32xf32>
      %c0_78 = arith.constant 0 : index
      %c0_79 = arith.constant 0 : index
      %136 = vector.load %arg23[%c0_78, %c0_79] : memref<1x32xf32, #tpu.memory_space<vmem>>, vector<1x32xf32>
      tpu.vector_store %arg23[%c0_78, %c0_79], %135 {strides = array<i32>} : memref<1x32xf32, #tpu.memory_space<vmem>>, vector<1x32xf32>,
      %cst_80 = arith.constant 0.000000e+00 : f32
      %137 = vector.broadcast %cst_80 : f32 to vector<1x1xf32>
      %c0_81 = arith.constant 0 : index
      %c0_82 = arith.constant 0 : index
      %138 = vector.load %arg24[%c0_81, %c0_82] : memref<1x1xf32, #tpu.memory_space<vmem>>, vector<1x1xf32>
      tpu.vector_store %arg24[%c0_81, %c0_82], %137 {strides = array<i32>} : memref<1x1xf32, #tpu.memory_space<vmem>>, vector<1x1xf32>,
      %cst_83 = arith.constant 0.000000e+00 : f32
      %139 = vector.broadcast %cst_83 : f32 to vector<1x1xf32>
      %c0_84 = arith.constant 0 : index
      %c0_85 = arith.constant 0 : index
      %140 = vector.load %arg25[%c0_84, %c0_85] : memref<1x1xf32, #tpu.memory_space<vmem>>, vector<1x1xf32>
      tpu.vector_store %arg25[%c0_84, %c0_85], %139 {strides = array<i32>} : memref<1x1xf32, #tpu.memory_space<vmem>>, vector<1x1xf32>,
    } else {
    }
    %c0 = arith.constant 0 : index
    %c0_1 = arith.constant 0 : index
    %3 = vector.load %arg2[%c0, %c0_1] : memref<16x32xbf16, #tpu.memory_space<vmem>>, vector<16x32xbf16>
    %4 = arith.extf %3 : vector<16x32xbf16> to vector<16x32xf32>
    %c0_2 = arith.constant 0 : index
    %5 = memref.load %arg1[%c0_2] : memref<1xi32, #tpu.memory_space<smem>>
    %6 = arith.sitofp %5 : i32 to f32
    %c0_3 = arith.constant 0 : index
    %c0_4 = arith.constant 0 : index
    %7 = vector.load %arg3[%c0_3, %c0_4] : memref<32x32xf32, #tpu.memory_space<vmem>>, vector<32x32xf32>
    %cst = arith.constant dense<0.000000e+00> : vector<16x32xf32>
    %8 = tpu.matmul %4, %7, %cst {dimension_numbers = #tpu.dot_dimension_numbers<[1], [0], [0], [1], [0, 0, 1, 1], [], []>} : vector<16x32xf32>, vector<32x32xf32>, vector<16x32xf32> -> vector<16x32xf32>
    %c0_5 = arith.constant 0 : index
    %c0_6 = arith.constant 0 : index
    %9 = vector.load %arg6[%c0_5, %c0_6] : memref<1x32xf32, #tpu.memory_space<vmem>>, vector<1x32xf32>
    %10 = vector.broadcast %9 : vector<1x32xf32> to vector<16x32xf32>
    %11 = arith.addf %8, %10 : vector<16x32xf32>
    %c0_7 = arith.constant 0 : index
    %c0_8 = arith.constant 0 : index
    %12 = vector.load %arg5[%c0_7, %c0_8] : memref<32x32xf32, #tpu.memory_space<vmem>>, vector<32x32xf32>
    %cst_9 = arith.constant dense<0.000000e+00> : vector<16x32xf32>
    %13 = tpu.matmul %4, %12, %cst_9 {dimension_numbers = #tpu.dot_dimension_numbers<[1], [0], [0], [1], [0, 0, 1, 1], [], []>} : vector<16x32xf32>, vector<32x32xf32>, vector<16x32xf32> -> vector<16x32xf32>
    %c0_10 = arith.constant 0 : index
    %c0_11 = arith.constant 0 : index
    %14 = vector.load %arg8[%c0_10, %c0_11] : memref<1x32xf32, #tpu.memory_space<vmem>>, vector<1x32xf32>
    %15 = vector.broadcast %14 : vector<1x32xf32> to vector<16x32xf32>
    %16 = arith.addf %13, %15 : vector<16x32xf32>
    %c0_12 = arith.constant 0 : index
    %c0_13 = arith.constant 0 : index
    %17 = vector.load %arg11[%c0_12, %c0_13] : memref<1x1xf32, #tpu.memory_space<vmem>>, vector<1x1xf32>
    %18 = math.rsqrt %17 : vector<1x1xf32>
    %c0_14 = arith.constant 0 : index
    %c0_15 = arith.constant 0 : index
    %19 = vector.load %arg12[%c0_14, %c0_15] : memref<1x1xf32, #tpu.memory_space<vmem>>, vector<1x1xf32>
    %20 = math.rsqrt %19 : vector<1x1xf32>
    %21 = vector.broadcast %18 : vector<1x1xf32> to vector<16x32xf32>
    %22 = arith.mulf %11, %21 : vector<16x32xf32>
    %c0_16 = arith.constant 0 : index
    %c0_17 = arith.constant 0 : index
    %23 = vector.load %arg9[%c0_16, %c0_17] : memref<32x32xf32, #tpu.memory_space<vmem>>, vector<32x32xf32>
    %24 = vector.broadcast %20 : vector<1x1xf32> to vector<32x32xf32>
    %25 = arith.mulf %23, %24 : vector<32x32xf32>
    %c0_18 = arith.constant 0 : index
    %c0_19 = arith.constant 0 : index
    %26 = vector.load %arg10[%c0_18, %c0_19] : memref<1x32xf32, #tpu.memory_space<vmem>>, vector<1x32xf32>
    %27 = vector.broadcast %20 : vector<1x1xf32> to vector<1x32xf32>
    %28 = arith.mulf %26, %27 : vector<1x32xf32>
    %cst_20 = arith.constant dense<0.000000e+00> : vector<16x32xf32>
    %29 = tpu.matmul %22, %25, %cst_20 {dimension_numbers = #tpu.dot_dimension_numbers<[1], [0], [0], [1], [0, 0, 1, 1], [], []>} : vector<16x32xf32>, vector<32x32xf32>, vector<16x32xf32> -> vector<16x32xf32>
    %30 = vector.broadcast %6 : f32 to vector<16x32xf32>
    %31 = arith.mulf %30, %16 : vector<16x32xf32>
    %32 = arith.addf %29, %31 : vector<16x32xf32>
    %33 = vector.broadcast %28 : vector<1x32xf32> to vector<16x32xf32>
    %34 = arith.mulf %22, %33 : vector<16x32xf32>
    %cst_21 = arith.constant dense<0.000000e+00> : vector<16xf32>
    %35 = vector.multi_reduction <add>, %34, %cst_21 [1] : vector<16x32xf32> to vector<16xf32>
    %36 = vector.shape_cast %35 : vector<16xf32> to vector<16x1xf32>
    %37 = vector.broadcast %6 : f32 to vector<16x1xf32>
    %38 = arith.addf %36, %37 : vector<16x1xf32>
    %39 = vector.broadcast %38 : vector<16x1xf32> to vector<16x32xf32>
    %40 = arith.divf %32, %39 : vector<16x32xf32>
    %cst_22 = arith.constant 5.000000e-01 : f32
    %41 = vector.broadcast %cst_22 : f32 to vector<16x32xf32>
    %42 = arith.mulf %41, %40 : vector<16x32xf32>
    %cst_23 = arith.constant 5.000000e-01 : f32
    %43 = vector.broadcast %cst_23 : f32 to vector<16x32xf32>
    %44 = arith.mulf %43, %4 : vector<16x32xf32>
    %45 = arith.addf %42, %44 : vector<16x32xf32>
    %c0_24 = arith.constant 0 : index
    %c0_25 = arith.constant 0 : index
    %46 = vector.load %arg13[%c0_24, %c0_25] : memref<1x32xf32, #tpu.memory_space<vmem>>, vector<1x32xf32>
    %c0_26 = arith.constant 0 : index
    %c0_27 = arith.constant 0 : index
    %47 = vector.load %arg14[%c0_26, %c0_27] : memref<1x32xf32, #tpu.memory_space<vmem>>, vector<1x32xf32>
    %cst_28 = arith.constant dense<0.000000e+00> : vector<16xf32>
    %48 = vector.multi_reduction <add>, %45, %cst_28 [1] : vector<16x32xf32> to vector<16xf32>
    %49 = vector.shape_cast %48 : vector<16xf32> to vector<16x1xf32>
    %cst_29 = arith.constant 3.200000e+01 : f32
    %50 = vector.broadcast %cst_29 : f32 to vector<16x1xf32>
    %51 = arith.divf %49, %50 : vector<16x1xf32>
    %52 = vector.broadcast %51 : vector<16x1xf32> to vector<16x32xf32>
    %53 = arith.subf %45, %52 : vector<16x32xf32>
    %54 = arith.mulf %53, %53 : vector<16x32xf32>
    %cst_30 = arith.constant dense<0.000000e+00> : vector<16xf32>
    %55 = vector.multi_reduction <add>, %54, %cst_30 [1] : vector<16x32xf32> to vector<16xf32>
    %56 = vector.shape_cast %55 : vector<16xf32> to vector<16x1xf32>
    %cst_31 = arith.constant 3.200000e+01 : f32
    %57 = vector.broadcast %cst_31 : f32 to vector<16x1xf32>
    %58 = arith.divf %56, %57 : vector<16x1xf32>
    %cst_32 = arith.constant 9.99999974E-6 : f32
    %59 = vector.broadcast %cst_32 : f32 to vector<16x1xf32>
    %60 = arith.addf %58, %59 : vector<16x1xf32>
    %61 = math.rsqrt %60 : vector<16x1xf32>
    %62 = vector.broadcast %61 : vector<16x1xf32> to vector<16x32xf32>
    %63 = arith.mulf %53, %62 : vector<16x32xf32>
    %64 = vector.broadcast %46 : vector<1x32xf32> to vector<16x32xf32>
    %65 = arith.mulf %63, %64 : vector<16x32xf32>
    %66 = vector.broadcast %47 : vector<1x32xf32> to vector<16x32xf32>
    %67 = arith.addf %65, %66 : vector<16x32xf32>
    %68 = arith.truncf %67 : vector<16x32xf32> to vector<16x32xbf16>
    %c0_33 = arith.constant 0 : index
    %c0_34 = arith.constant 0 : index
    %69 = vector.load %arg21[%c0_33, %c0_34] : memref<16x32xbf16, #tpu.memory_space<vmem>>, vector<16x32xbf16>
    tpu.vector_store %arg21[%c0_33, %c0_34], %68 {strides = array<i32>} : memref<16x32xbf16, #tpu.memory_space<vmem>>, vector<16x32xbf16>,
    %c0_35 = arith.constant 0 : index
    %70 = memref.load %arg1[%c0_35] : memref<1xi32, #tpu.memory_space<smem>>
    %71 = tpu.iota {dimensions = array<i32: 0>} : vector<16x1xi32>
    %c16_i32 = arith.constant 16 : i32
    %72 = arith.muli %arg0, %c16_i32 : i32
    %73 = vector.broadcast %72 : i32 to vector<16x1xi32>
    %74 = arith.addi %71, %73 : vector<16x1xi32>
    %75 = vector.broadcast %70 : i32 to vector<16x1xi32>
    %76 = arith.cmpi slt, %74, %75 : vector<16x1xi32>
    %77 = arith.truncf %67 : vector<16x32xf32> to vector<16x32xbf16>
    %78 = arith.extf %77 : vector<16x32xbf16> to vector<16x32xf32>
    %c0_36 = arith.constant 0 : index
    %c0_37 = arith.constant 0 : index
    %79 = vector.load %arg15[%c0_36, %c0_37] : memref<32x32xf32, #tpu.memory_space<vmem>>, vector<32x32xf32>
    %cst_38 = arith.constant dense<0.000000e+00> : vector<16x32xf32>
    %80 = tpu.matmul %78, %79, %cst_38 {dimension_numbers = #tpu.dot_dimension_numbers<[1], [0], [0], [1], [0, 0, 1, 1], [], []>} : vector<16x32xf32>, vector<32x32xf32>, vector<16x32xf32> -> vector<16x32xf32>
    %c0_39 = arith.constant 0 : index
    %c0_40 = arith.constant 0 : index
    %81 = vector.load %arg18[%c0_39, %c0_40] : memref<1x32xf32, #tpu.memory_space<vmem>>, vector<1x32xf32>
    %82 = vector.broadcast %81 : vector<1x32xf32> to vector<16x32xf32>
    %83 = arith.addf %80, %82 : vector<16x32xf32>
    %c0_41 = arith.constant 0 : index
    %c0_42 = arith.constant 0 : index
    %84 = vector.load %arg16[%c0_41, %c0_42] : memref<32x32xf32, #tpu.memory_space<vmem>>, vector<32x32xf32>
    %cst_43 = arith.constant dense<0.000000e+00> : vector<16x32xf32>
    %85 = tpu.matmul %78, %84, %cst_43 {dimension_numbers = #tpu.dot_dimension_numbers<[1], [0], [0], [1], [0, 0, 1, 1], [], []>} : vector<16x32xf32>, vector<32x32xf32>, vector<16x32xf32> -> vector<16x32xf32>
    %c0_44 = arith.constant 0 : index
    %c0_45 = arith.constant 0 : index
    %86 = vector.load %arg19[%c0_44, %c0_45] : memref<1x32xf32, #tpu.memory_space<vmem>>, vector<1x32xf32>
    %87 = vector.broadcast %86 : vector<1x32xf32> to vector<16x32xf32>
    %88 = arith.addf %85, %87 : vector<16x32xf32>
    %c0_46 = arith.constant 0 : index
    %c0_47 = arith.constant 0 : index
    %89 = vector.load %arg17[%c0_46, %c0_47] : memref<32x32xf32, #tpu.memory_space<vmem>>, vector<32x32xf32>
    %cst_48 = arith.constant dense<0.000000e+00> : vector<16x32xf32>
    %90 = tpu.matmul %78, %89, %cst_48 {dimension_numbers = #tpu.dot_dimension_numbers<[1], [0], [0], [1], [0, 0, 1, 1], [], []>} : vector<16x32xf32>, vector<32x32xf32>, vector<16x32xf32> -> vector<16x32xf32>
    %c0_49 = arith.constant 0 : index
    %c0_50 = arith.constant 0 : index
    %91 = vector.load %arg20[%c0_49, %c0_50] : memref<1x32xf32, #tpu.memory_space<vmem>>, vector<1x32xf32>
    %92 = vector.broadcast %91 : vector<1x32xf32> to vector<16x32xf32>
    %93 = arith.addf %90, %92 : vector<16x32xf32>
    %cst_51 = arith.constant 0.000000e+00 : f32
    %94 = vector.shape_cast %76 : vector<16x1xi1> to vector<16x1xi1>
    %95 = vector.broadcast %94 : vector<16x1xi1> to vector<16x32xi1>
    %96 = vector.broadcast %cst_51 : f32 to vector<16x32xf32>
    %97 = arith.select %95, %83, %96 : vector<16x32xi1>, vector<16x32xf32>
    %cst_52 = arith.constant 0.000000e+00 : f32
    %98 = vector.shape_cast %76 : vector<16x1xi1> to vector<16x1xi1>
    %99 = vector.broadcast %98 : vector<16x1xi1> to vector<16x32xi1>
    %100 = vector.broadcast %cst_52 : f32 to vector<16x32xf32>
    %101 = arith.select %99, %88, %100 : vector<16x32xi1>, vector<16x32xf32>
    %cst_53 = arith.constant 0.000000e+00 : f32
    %102 = vector.shape_cast %76 : vector<16x1xi1> to vector<16x1xi1>
    %103 = vector.broadcast %102 : vector<16x1xi1> to vector<16x32xi1>
    %104 = vector.broadcast %cst_53 : f32 to vector<16x32xf32>
    %105 = arith.select %103, %93, %104 : vector<16x32xi1>, vector<16x32xf32>
    %c0_54 = arith.constant 0 : index
    %c0_55 = arith.constant 0 : index
    %106 = vector.load %arg22[%c0_54, %c0_55] : memref<32x32xf32, #tpu.memory_space<vmem>>, vector<32x32xf32>
    %cst_56 = arith.constant dense<0.000000e+00> : vector<32x32xf32>
    %107 = tpu.matmul %101, %105, %cst_56 {dimension_numbers = #tpu.dot_dimension_numbers<[0], [0], [1], [1], [0, 1, 1, 1], [], []>} : vector<16x32xf32>, vector<16x32xf32>, vector<32x32xf32> -> vector<32x32xf32>
    %108 = arith.addf %106, %107 : vector<32x32xf32>
    %c0_57 = arith.constant 0 : index
    %c0_58 = arith.constant 0 : index
    %109 = vector.load %arg22[%c0_57, %c0_58] : memref<32x32xf32, #tpu.memory_space<vmem>>, vector<32x32xf32>
    tpu.vector_store %arg22[%c0_57, %c0_58], %108 {strides = array<i32>} : memref<32x32xf32, #tpu.memory_space<vmem>>, vector<32x32xf32>,
    %c0_59 = arith.constant 0 : index
    %c0_60 = arith.constant 0 : index
    %110 = vector.load %arg23[%c0_59, %c0_60] : memref<1x32xf32, #tpu.memory_space<vmem>>, vector<1x32xf32>
    %cst_61 = arith.constant dense<0.000000e+00> : vector<32xf32>
    %111 = vector.multi_reduction <add>, %101, %cst_61 [0] : vector<16x32xf32> to vector<32xf32>
    %112 = vector.shape_cast %111 : vector<32xf32> to vector<1x32xf32>
    %113 = arith.addf %110, %112 : vector<1x32xf32>
    %c0_62 = arith.constant 0 : index
    %c0_63 = arith.constant 0 : index
    %114 = vector.load %arg23[%c0_62, %c0_63] : memref<1x32xf32, #tpu.memory_space<vmem>>, vector<1x32xf32>
    tpu.vector_store %arg23[%c0_62, %c0_63], %113 {strides = array<i32>} : memref<1x32xf32, #tpu.memory_space<vmem>>, vector<1x32xf32>,
    %c0_64 = arith.constant 0 : index
    %c0_65 = arith.constant 0 : index
    %115 = vector.load %arg24[%c0_64, %c0_65] : memref<1x1xf32, #tpu.memory_space<vmem>>, vector<1x1xf32>
    %116 = arith.mulf %97, %97 : vector<16x32xf32>
    %117 = vector.shape_cast %116 : vector<16x32xf32> to vector<1x16x32xf32>
    %cst_66 = arith.constant dense<0.000000e+00> : vector<1xf32>
    %118 = vector.multi_reduction <add>, %117, %cst_66 [1, 2] : vector<1x16x32xf32> to vector<1xf32>
    %119 = vector.shape_cast %118 : vector<1xf32> to vector<1x1x1xf32>
    %120 = vector.extract %119[0, 0, 0] : f32 from vector<1x1x1xf32>
    %121 = vector.broadcast %120 : f32 to vector<1x1xf32>
    %122 = arith.addf %115, %121 : vector<1x1xf32>
    %c0_67 = arith.constant 0 : index
    %c0_68 = arith.constant 0 : index
    %123 = vector.load %arg24[%c0_67, %c0_68] : memref<1x1xf32, #tpu.memory_space<vmem>>, vector<1x1xf32>
    tpu.vector_store %arg24[%c0_67, %c0_68], %122 {strides = array<i32>} : memref<1x1xf32, #tpu.memory_space<vmem>>, vector<1x1xf32>,
    %c0_69 = arith.constant 0 : index
    %c0_70 = arith.constant 0 : index
    %124 = vector.load %arg25[%c0_69, %c0_70] : memref<1x1xf32, #tpu.memory_space<vmem>>, vector<1x1xf32>
    %125 = arith.mulf %101, %101 : vector<16x32xf32>
    %126 = vector.shape_cast %125 : vector<16x32xf32> to vector<1x16x32xf32>
    %cst_71 = arith.constant dense<0.000000e+00> : vector<1xf32>
    %127 = vector.multi_reduction <add>, %126, %cst_71 [1, 2] : vector<1x16x32xf32> to vector<1xf32>
    %128 = vector.shape_cast %127 : vector<1xf32> to vector<1x1x1xf32>
    %129 = vector.extract %128[0, 0, 0] : f32 from vector<1x1x1xf32>
    %130 = vector.broadcast %129 : f32 to vector<1x1xf32>
    %131 = arith.addf %124, %130 : vector<1x1xf32>
    %c0_72 = arith.constant 0 : index
    %c0_73 = arith.constant 0 : index
    %132 = vector.load %arg25[%c0_72, %c0_73] : memref<1x1xf32, #tpu.memory_space<vmem>>, vector<1x1xf32>
    tpu.vector_store %arg25[%c0_72, %c0_73], %131 {strides = array<i32>} : memref<1x1xf32, #tpu.memory_space<vmem>>, vector<1x1xf32>,
    return
  }
  func.func @transform_0(%arg0: i32, %arg1: memref<1xi32, #tpu.memory_space<smem>>) -> (i32, i32) {
    %c0_i32 = arith.constant 0 : i32
    %c0_i32_0 = arith.constant 0 : i32
    return %arg0, %c0_i32 : i32, i32
  }
  func.func @transform_1(%arg0: i32, %arg1: memref<1xi32, #tpu.memory_space<smem>>) -> (i32, i32) {
    %c0_i32 = arith.constant 0 : i32
    %c0_i32_0 = arith.constant 0 : i32
    %c0_i32_1 = arith.constant 0 : i32
    return %c0_i32, %c0_i32_0 : i32, i32
  }
  func.func @transform_2(%arg0: i32, %arg1: memref<1xi32, #tpu.memory_space<smem>>) -> (i32, i32) {
    %c0_i32 = arith.constant 0 : i32
    %c0_i32_0 = arith.constant 0 : i32
    %c0_i32_1 = arith.constant 0 : i32
    return %c0_i32, %c0_i32_0 : i32, i32
  }
  func.func @transform_3(%arg0: i32, %arg1: memref<1xi32, #tpu.memory_space<smem>>) -> (i32, i32) {
    %c0_i32 = arith.constant 0 : i32
    %c0_i32_0 = arith.constant 0 : i32
    %c0_i32_1 = arith.constant 0 : i32
    return %c0_i32, %c0_i32_0 : i32, i32
  }
  func.func @transform_4(%arg0: i32, %arg1: memref<1xi32, #tpu.memory_space<smem>>) -> (i32, i32) {
    %c0_i32 = arith.constant 0 : i32
    %c0_i32_0 = arith.constant 0 : i32
    %c0_i32_1 = arith.constant 0 : i32
    return %c0_i32, %c0_i32_0 : i32, i32
  }
  func.func @transform_5(%arg0: i32, %arg1: memref<1xi32, #tpu.memory_space<smem>>) -> (i32, i32) {
    %c0_i32 = arith.constant 0 : i32
    %c0_i32_0 = arith.constant 0 : i32
    %c0_i32_1 = arith.constant 0 : i32
    return %c0_i32, %c0_i32_0 : i32, i32
  }
  func.func @transform_6(%arg0: i32, %arg1: memref<1xi32, #tpu.memory_space<smem>>) -> (i32, i32) {
    %c0_i32 = arith.constant 0 : i32
    %c0_i32_0 = arith.constant 0 : i32
    %c0_i32_1 = arith.constant 0 : i32
    return %c0_i32, %c0_i32_0 : i32, i32
  }
  func.func @transform_7(%arg0: i32, %arg1: memref<1xi32, #tpu.memory_space<smem>>) -> (i32, i32) {
    %c0_i32 = arith.constant 0 : i32
    %c0_i32_0 = arith.constant 0 : i32
    %c0_i32_1 = arith.constant 0 : i32
    return %c0_i32, %c0_i32_0 : i32, i32
  }
  func.func @transform_8(%arg0: i32, %arg1: memref<1xi32, #tpu.memory_space<smem>>) -> (i32, i32) {
    %c0_i32 = arith.constant 0 : i32
    %c0_i32_0 = arith.constant 0 : i32
    %c0_i32_1 = arith.constant 0 : i32
    return %c0_i32, %c0_i32_0 : i32, i32
  }
  func.func @transform_9(%arg0: i32, %arg1: memref<1xi32, #tpu.memory_space<smem>>) -> (i32, i32) {
    %c0_i32 = arith.constant 0 : i32
    %c0_i32_0 = arith.constant 0 : i32
    %c0_i32_1 = arith.constant 0 : i32
    return %c0_i32, %c0_i32_0 : i32, i32
  }
  func.func @transform_10(%arg0: i32, %arg1: memref<1xi32, #tpu.memory_space<smem>>) -> (i32, i32) {
    %c0_i32 = arith.constant 0 : i32
    %c0_i32_0 = arith.constant 0 : i32
    %c0_i32_1 = arith.constant 0 : i32
    return %c0_i32, %c0_i32_0 : i32, i32
  }
  func.func @transform_11(%arg0: i32, %arg1: memref<1xi32, #tpu.memory_space<smem>>) -> (i32, i32) {
    %c0_i32 = arith.constant 0 : i32
    %c0_i32_0 = arith.constant 0 : i32
    %c0_i32_1 = arith.constant 0 : i32
    return %c0_i32, %c0_i32_0 : i32, i32
  }
  func.func @transform_12(%arg0: i32, %arg1: memref<1xi32, #tpu.memory_space<smem>>) -> (i32, i32) {
    %c0_i32 = arith.constant 0 : i32
    %c0_i32_0 = arith.constant 0 : i32
    %c0_i32_1 = arith.constant 0 : i32
    return %c0_i32, %c0_i32_0 : i32, i32
  }
  func.func @transform_13(%arg0: i32, %arg1: memref<1xi32, #tpu.memory_space<smem>>) -> (i32, i32) {
    %c0_i32 = arith.constant 0 : i32
    %c0_i32_0 = arith.constant 0 : i32
    %c0_i32_1 = arith.constant 0 : i32
    return %c0_i32, %c0_i32_0 : i32, i32
  }
  func.func @transform_14(%arg0: i32, %arg1: memref<1xi32, #tpu.memory_space<smem>>) -> (i32, i32) {
    %c0_i32 = arith.constant 0 : i32
    %c0_i32_0 = arith.constant 0 : i32
    %c0_i32_1 = arith.constant 0 : i32
    return %c0_i32, %c0_i32_0 : i32, i32
  }
  func.func @transform_15(%arg0: i32, %arg1: memref<1xi32, #tpu.memory_space<smem>>) -> (i32, i32) {
    %c0_i32 = arith.constant 0 : i32
    %c0_i32_0 = arith.constant 0 : i32
    %c0_i32_1 = arith.constant 0 : i32
    return %c0_i32, %c0_i32_0 : i32, i32
  }
  func.func @transform_16(%arg0: i32, %arg1: memref<1xi32, #tpu.memory_space<smem>>) -> (i32, i32) {
    %c0_i32 = arith.constant 0 : i32
    %c0_i32_0 = arith.constant 0 : i32
    %c0_i32_1 = arith.constant 0 : i32
    return %c0_i32, %c0_i32_0 : i32, i32
  }
  func.func @transform_17(%arg0: i32, %arg1: memref<1xi32, #tpu.memory_space<smem>>) -> (i32, i32) {
    %c0_i32 = arith.constant 0 : i32
    %c0_i32_0 = arith.constant 0 : i32
    %c0_i32_1 = arith.constant 0 : i32
    return %c0_i32, %c0_i32_0 : i32, i32
  }
  func.func @transform_18(%arg0: i32, %arg1: memref<1xi32, #tpu.memory_space<smem>>) -> (i32, i32) {
    %c0_i32 = arith.constant 0 : i32
    %c0_i32_0 = arith.constant 0 : i32
    %c0_i32_1 = arith.constant 0 : i32
    return %c0_i32, %c0_i32_0 : i32, i32
  }
  func.func @transform_19(%arg0: i32, %arg1: memref<1xi32, #tpu.memory_space<smem>>) -> (i32, i32) {
    %c0_i32 = arith.constant 0 : i32
    %c0_i32_0 = arith.constant 0 : i32
    return %arg0, %c0_i32 : i32, i32
  }
  func.func @transform_20(%arg0: i32, %arg1: memref<1xi32, #tpu.memory_space<smem>>) -> (i32, i32) {
    %c0_i32 = arith.constant 0 : i32
    %c0_i32_0 = arith.constant 0 : i32
    %c0_i32_1 = arith.constant 0 : i32
    return %c0_i32, %c0_i32_0 : i32, i32
  }
  func.func @transform_21(%arg0: i32, %arg1: memref<1xi32, #tpu.memory_space<smem>>) -> (i32, i32) {
    %c0_i32 = arith.constant 0 : i32
    %c0_i32_0 = arith.constant 0 : i32
    %c0_i32_1 = arith.constant 0 : i32
    return %c0_i32, %c0_i32_0 : i32, i32
  }
  func.func @transform_22(%arg0: i32, %arg1: memref<1xi32, #tpu.memory_space<smem>>) -> (i32, i32) {
    %c0_i32 = arith.constant 0 : i32
    %c0_i32_0 = arith.constant 0 : i32
    %c0_i32_1 = arith.constant 0 : i32
    return %c0_i32, %c0_i32_0 : i32, i32
  }
  func.func @transform_23(%arg0: i32, %arg1: memref<1xi32, #tpu.memory_space<smem>>) -> (i32, i32) {
    %c0_i32 = arith.constant 0 : i32
    %c0_i32_0 = arith.constant 0 : i32
    %c0_i32_1 = arith.constant 0 : i32
    return %c0_i32, %c0_i32_0 : i32, i32
  }
}

module attributes {stable_mosaic.version = 11 : i64} {
  func.func @_gcn_head_kernel(%arg0: i32, %arg1: i32, %arg2: memref<16x16xbf16, #tpu.memory_space<vmem>>, %arg3: memref<16x32xbf16, #tpu.memory_space<vmem>>, %arg4: memref<16x32xbf16, #tpu.memory_space<vmem>>, %arg5: memref<1x32xf32, #tpu.memory_space<vmem>>, %arg6: memref<32x4xf32, #tpu.memory_space<vmem>>, %arg7: memref<1x4xf32, #tpu.memory_space<vmem>>, %arg8: memref<16x4xf32, #tpu.memory_space<vmem>>, %arg9: memref<16x32xf32, #tpu.memory_space<vmem>>) attributes {dimension_semantics = [#tpu.dimension_semantics<parallel>, #tpu.dimension_semantics<arbitrary>], iteration_bounds = array<i64: 1, 1>, scalar_prefetch = 0 : i64, scratch_operands = 1 : i64, tpu.core_type = #tpu.core_type<tc>, window_params = [{transform_indices = @transform_0, window_bounds = array<i64: 16, 16>}, {transform_indices = @transform_1, window_bounds = array<i64: 16, 32>}, {transform_indices = @transform_2, window_bounds = array<i64: 16, 32>}, {pipeline_mode = #tpu.pipeline_mode<synchronous>, transform_indices = @transform_3, window_bounds = array<i64: 1, 32>}, {pipeline_mode = #tpu.pipeline_mode<synchronous>, transform_indices = @transform_4, window_bounds = array<i64: 32, 4>}, {pipeline_mode = #tpu.pipeline_mode<synchronous>, transform_indices = @transform_5, window_bounds = array<i64: 1, 4>}, {transform_indices = @transform_6, window_bounds = array<i64: 16, 4>}]} {
    %c0_i32 = arith.constant 0 : i32
    %0 = arith.cmpi eq, %arg1, %c0_i32 : i32
    %1 = arith.extui %0 : i1 to i32
    %c0_i32_0 = arith.constant 0 : i32
    %2 = arith.cmpi ne, %1, %c0_i32_0 : i32
    scf.if %2 {
      %cst_10 = arith.constant 0.000000e+00 : f32
      %12 = vector.broadcast %cst_10 : f32 to vector<16x32xf32>
      %c0_11 = arith.constant 0 : index
      %c0_12 = arith.constant 0 : index
      %13 = vector.load %arg9[%c0_11, %c0_12] : memref<16x32xf32, #tpu.memory_space<vmem>>, vector<16x32xf32>
      tpu.vector_store %arg9[%c0_11, %c0_12], %12 {strides = array<i32>} : memref<16x32xf32, #tpu.memory_space<vmem>>, vector<16x32xf32>,
    } else {
    }
    %c0 = arith.constant 0 : index
    %c0_1 = arith.constant 0 : index
    %3 = vector.load %arg9[%c0, %c0_1] : memref<16x32xf32, #tpu.memory_space<vmem>>, vector<16x32xf32>
    %c0_2 = arith.constant 0 : index
    %c0_3 = arith.constant 0 : index
    %4 = vector.load %arg2[%c0_2, %c0_3] : memref<16x16xbf16, #tpu.memory_space<vmem>>, vector<16x16xbf16>
    %c0_4 = arith.constant 0 : index
    %c0_5 = arith.constant 0 : index
    %5 = vector.load %arg3[%c0_4, %c0_5] : memref<16x32xbf16, #tpu.memory_space<vmem>>, vector<16x32xbf16>
    %cst = arith.constant dense<0.000000e+00> : vector<16x32xf32>
    %6 = tpu.matmul %4, %5, %cst {dimension_numbers = #tpu.dot_dimension_numbers<[1], [0], [0], [1], [0, 0, 1, 1], [], []>} : vector<16x16xbf16>, vector<16x32xbf16>, vector<16x32xf32> -> vector<16x32xf32>
    %7 = arith.addf %3, %6 : vector<16x32xf32>
    %c0_6 = arith.constant 0 : index
    %c0_7 = arith.constant 0 : index
    %8 = vector.load %arg9[%c0_6, %c0_7] : memref<16x32xf32, #tpu.memory_space<vmem>>, vector<16x32xf32>
    tpu.vector_store %arg9[%c0_6, %c0_7], %7 {strides = array<i32>} : memref<16x32xf32, #tpu.memory_space<vmem>>, vector<16x32xf32>,
    %c0_i32_8 = arith.constant 0 : i32
    %9 = arith.cmpi eq, %arg1, %c0_i32_8 : i32
    %10 = arith.extui %9 : i1 to i32
    %c0_i32_9 = arith.constant 0 : i32
    %11 = arith.cmpi ne, %10, %c0_i32_9 : i32
    scf.if %11 {
      %c0_10 = arith.constant 0 : index
      %c0_11 = arith.constant 0 : index
      %12 = vector.load %arg9[%c0_10, %c0_11] : memref<16x32xf32, #tpu.memory_space<vmem>>, vector<16x32xf32>
      %c0_12 = arith.constant 0 : index
      %c0_13 = arith.constant 0 : index
      %13 = vector.load %arg5[%c0_12, %c0_13] : memref<1x32xf32, #tpu.memory_space<vmem>>, vector<1x32xf32>
      %14 = vector.broadcast %13 : vector<1x32xf32> to vector<16x32xf32>
      %15 = arith.addf %12, %14 : vector<16x32xf32>
      %cst_14 = arith.constant 5.000000e-01 : f32
      %16 = vector.broadcast %cst_14 : f32 to vector<16x32xf32>
      %17 = arith.mulf %16, %15 : vector<16x32xf32>
      %c0_15 = arith.constant 0 : index
      %c0_16 = arith.constant 0 : index
      %18 = vector.load %arg4[%c0_15, %c0_16] : memref<16x32xbf16, #tpu.memory_space<vmem>>, vector<16x32xbf16>
      %19 = arith.extf %18 : vector<16x32xbf16> to vector<16x32xf32>
      %cst_17 = arith.constant 5.000000e-01 : f32
      %20 = vector.broadcast %cst_17 : f32 to vector<16x32xf32>
      %21 = arith.mulf %20, %19 : vector<16x32xf32>
      %22 = arith.addf %17, %21 : vector<16x32xf32>
      %c0_18 = arith.constant 0 : index
      %c0_19 = arith.constant 0 : index
      %23 = vector.load %arg6[%c0_18, %c0_19] : memref<32x4xf32, #tpu.memory_space<vmem>>, vector<32x4xf32>
      %cst_20 = arith.constant dense<0.000000e+00> : vector<16x4xf32>
      %24 = tpu.matmul %22, %23, %cst_20 {dimension_numbers = #tpu.dot_dimension_numbers<[1], [0], [0], [1], [0, 0, 1, 1], [], []>} : vector<16x32xf32>, vector<32x4xf32>, vector<16x4xf32> -> vector<16x4xf32>
      %c0_21 = arith.constant 0 : index
      %c0_22 = arith.constant 0 : index
      %25 = vector.load %arg7[%c0_21, %c0_22] : memref<1x4xf32, #tpu.memory_space<vmem>>, vector<1x4xf32>
      %26 = vector.broadcast %25 : vector<1x4xf32> to vector<16x4xf32>
      %27 = arith.addf %24, %26 : vector<16x4xf32>
      %c0_23 = arith.constant 0 : index
      %c0_24 = arith.constant 0 : index
      %28 = vector.load %arg8[%c0_23, %c0_24] : memref<16x4xf32, #tpu.memory_space<vmem>>, vector<16x4xf32>
      tpu.vector_store %arg8[%c0_23, %c0_24], %27 {strides = array<i32>} : memref<16x4xf32, #tpu.memory_space<vmem>>, vector<16x4xf32>,
    } else {
    }
    return
  }
  func.func @transform_0(%arg0: i32, %arg1: i32) -> (i32, i32) {
    %c0_i32 = arith.constant 0 : i32
    return %arg0, %arg1 : i32, i32
  }
  func.func @transform_1(%arg0: i32, %arg1: i32) -> (i32, i32) {
    %c0_i32 = arith.constant 0 : i32
    %c0_i32_0 = arith.constant 0 : i32
    return %arg1, %c0_i32 : i32, i32
  }
  func.func @transform_2(%arg0: i32, %arg1: i32) -> (i32, i32) {
    %c0_i32 = arith.constant 0 : i32
    %c0_i32_0 = arith.constant 0 : i32
    return %arg0, %c0_i32 : i32, i32
  }
  func.func @transform_3(%arg0: i32, %arg1: i32) -> (i32, i32) {
    %c0_i32 = arith.constant 0 : i32
    %c0_i32_0 = arith.constant 0 : i32
    %c0_i32_1 = arith.constant 0 : i32
    return %c0_i32, %c0_i32_0 : i32, i32
  }
  func.func @transform_4(%arg0: i32, %arg1: i32) -> (i32, i32) {
    %c0_i32 = arith.constant 0 : i32
    %c0_i32_0 = arith.constant 0 : i32
    %c0_i32_1 = arith.constant 0 : i32
    return %c0_i32, %c0_i32_0 : i32, i32
  }
  func.func @transform_5(%arg0: i32, %arg1: i32) -> (i32, i32) {
    %c0_i32 = arith.constant 0 : i32
    %c0_i32_0 = arith.constant 0 : i32
    %c0_i32_1 = arith.constant 0 : i32
    return %c0_i32, %c0_i32_0 : i32, i32
  }
  func.func @transform_6(%arg0: i32, %arg1: i32) -> (i32, i32) {
    %c0_i32 = arith.constant 0 : i32
    %c0_i32_0 = arith.constant 0 : i32
    return %arg0, %c0_i32 : i32, i32
  }
}

</mosaic_0001>

<bundles_post_ra>
// kernel: sgformer_forward.6
= control target key start
LH: loop header
LB: loop body
LE: loop exit
PB: predicated region body
PF: predicated region fallthrough
CT: control target
= control target key end

     0   :  { %s653_s0 = inlined_call_operand.<no memory space> [shape: s32[1], index: 0, kind: input, shape index: {}]   ;;  %s654_s1 = inlined_call_operand.vmem [shape: bf16[16,32], index: 1, kind: input, shape index: {}]   ;;  %s655_s2 = inlined_call_operand.hbm [shape: f32[32,32], index: 2, kind: input, shape index: {}]   ;;  %s656_s3 = inlined_call_operand.hbm [shape: f32[32,32], index: 3, kind: input, shape index: {}]   ;;  %s657_s4 = inlined_call_operand.hbm [shape: f32[32,32], index: 4, kind: input, shape index: {}]   ;;  %s658_s5 = inlined_call_operand.vmem [shape: f32[1,32], index: 5, kind: input, shape index: {}]   ;;  %s659_s6 = inlined_call_operand.vmem [shape: f32[1,32], index: 6, kind: input, shape index: {}]   ;;  %s660_s7 = inlined_call_operand.vmem [shape: f32[1,32], index: 7, kind: input, shape index: {}]   ;;  %s661_s8 = inlined_call_operand.vmem [shape: f32[32,32], index: 8, kind: input, shape index: {}]   ;;  %s662_s9 = inlined_call_operand.vmem [shape: f32[1,32], index: 9, kind: input, shape index: {}]   ;;  %s663_s10 = inlined_call_operand.<no memory space> [shape: f32[1,1], index: 10, kind: input, shape index: {}]   ;;  %s664_s12 = inlined_call_operand.vmem [shape: f32[1,32], index: 12, kind: input, shape index: {}]   ;;  %s665_s13 = inlined_call_operand.vmem [shape: f32[1,32], index: 13, kind: input, shape index: {}]   ;;  %s666_s14 = inlined_call_operand.vmem [shape: bf16[16,32], index: 14, kind: output, shape index: {}]   ;;  %s667_s11 = inlined_call_operand.<no memory space> [shape: f32[1,1], index: 11, kind: input, shape index: {}]  }
   0x1   :  { %v20_v0 = vstv %s663_s10  ;;  %v22_v1 = vstv %s667_s11 }
   0x2   :  { %21 = vst [vmem:[#allocation4] sm:$0x1] %v20_v0 }
   0x3   :  { %23 = vst [vmem:[#allocation5] sm:$0x1] %v22_v1 }
   0x4   :  { %24 = vsyncpa [#allocation7], 0 }
   0x5   :  { %25 = vsyncpa [#allocation9], 0  ;;  %s45_s18 = sshll.u32 %s656_s3, 4  ;;  %s495_s19 = smov [#allocation8]   ;;  %s46_s18 = int_to_ptr.hbm [resolvable:$true] %s45_s18 }
   0x6   :  { %s47_s20 = sshll.u32 %s495_s19, 4  ;;  %s32_s10 = sshll.u32 %s655_s2, 4  ;;  %s48_s20 = int_to_ptr.vmem [resolvable:$true] %s47_s20  ;;  %s33_s10 = int_to_ptr.hbm [resolvable:$true] %s32_s10 }
   0x7   :  { %s496_s23 = smov 128   ;;  %s497_s24 = smov 8  }
   0x8   :  { %53 = dma.hbm_to_vmem [thread:$0]  %s46_s18, 512, %s48_s20, [#allocation9], %s496_s23, %s496_s23, %s497_s24  }
   0x9   :  { %s498_s11 = smov [#allocation6]   ;;  %s58_s27 = sshll.u32 %s657_s4, 4  ;;  %s59_s27 = int_to_ptr.hbm [resolvable:$true] %s58_s27 }
   0xa   :  { %s34_s25 = sshll.u32 %s498_s11, 4  ;;  %s499_s3 = smov [#allocation10]   ;;  %s35_s25 = int_to_ptr.vmem [resolvable:$true] %s34_s25 }
   0xb   :  { %40 = dma.hbm_to_vmem [thread:$0]  %s33_s10, 512, %s35_s25, [#allocation7], %s496_s23, %s496_s23, %s497_s24  }
   0xc   :  { %s60_s28 = sshll.u32 %s499_s3, 4  ;;  %s61_s28 = int_to_ptr.vmem [resolvable:$true] %s60_s28 }
   0xd   :  { %66 = dma.hbm_to_vmem [thread:$0]  %s59_s27, 512, %s61_s28, [#allocation9], %s496_s23, %s496_s23, %s497_s24  }
   0xe   :  { %491 = dma.done.wait [#allocation7], 512  }
   0xf   :  { %492 = vsyncadd [#allocation7], 4294966784 }
  0x10   :  { %493 = dma.done.wait [#allocation9], 1024  }
  0x11   :  { %494 = vsyncadd [#allocation9], 4294966272  ;;  %v500_v2 = vmov 0   ;;  %v106_v3 = vld [vmem:[#allocation6 + $0x18] sm:$0xff]  ;;  %v105_v4 = vld [vmem:[#allocation6 + $0x10] sm:$0xff]  ;;  %vm111_vm0 = vcmask 261120   ;;  %s102_s10 = scvt.s32.f32 %s653_s0 }
  0x12   :  { %399 = vset.pattern.permute.xlu0 %v500_v2  ;;  %400 = vset.pattern.permute.xlu1 %v500_v2  ;;  %v104_v5 = vld [vmem:[#allocation6 + $0x8] sm:$0xff]  ;;  %v385_v6 = vld [vmem:[%s654_s1] sm:$0xff]   ;;  %v143_v29 = vld [vmem:[#allocation10 + $0x10] sm:$0xff] }
  0x13   :  { %388 = vmatpush.msra.mxu3 %v106_v3  ;;  %130 = vmatpush.msra.mxu0 %v106_v3  ;;  %v183_v7 = vld [vmem:[#allocation5] sm:$0x1]  ;;  %v172_v8 = vld [vmem:[#allocation4] sm:$0x1]  ;;  %v103_v9 = vld [vmem:[#allocation6] sm:$0xff]  ;;  %v595_v10 = vunpack.c.h.bf16 %v385_v6  ;;  %v597_v11 = vunpack.c.l.bf16 %v385_v6  ;;  %v223_v58 = vstv %s102_s10 }
  0x14   :  { %405 = vrsqrt.f32 %v183_v7  ;;  %vm190_vm1 = vweird.f32 %v183_v7  ;;  %vm179_vm4 = vweird.f32 %v172_v8  ;;  %v144_v28 = vld [vmem:[#allocation10 + $0x18] sm:$0xff]  ;;  %v142_v30 = vld [vmem:[#allocation10 + $0x8] sm:$0xff]  ;;  %v141_v31 = vld [vmem:[#allocation10] sm:$0xff] }
  0x15   :  { %389 = vmatpush.msra.mxu3 %v105_v4  ;;  %131 = vmatpush.msra.mxu0 %v105_v4  ;;  %407 = vrsqrt.f32 %v172_v8  ;;  %v205_v32 = vld [vmem:[%s661_s8 + $0x18] sm:$0xff]  ;;  %v216_v36 = vld [vmem:[%s662_s9] sm:$0x1]  ;;  %v204_v37 = vld [vmem:[%s661_s8 + $0x10] sm:$0xff] }
  0x16   :  { %161 = vmatpush.msra.mxu1 %v144_v28  ;;  %v401_v39 = vld [vmem:[%s658_s5] ss:$0 sm:$0xff]  ;;  %v203_v41 = vld [vmem:[%s661_s8 + $0x8] sm:$0xff] }
  0x17   :  { %390 = vmatpush.msra.mxu3 %v104_v5  ;;  %132 = vmatpush.msra.mxu0 %v104_v5  ;;  %v202_v45 = vld [vmem:[%s661_s8] sm:$0xff] }
  0x18   :  { %162 = vmatpush.msra.mxu1 %v143_v29  ;;  %v402_v0 = vld [vmem:[%s660_s7] ss:$0 sm:$0xff] }
  0x19   :  { %391 = vmatpush.msra.mxu3 %v103_v9  ;;  %133 = vmatpush.msra.mxu0 %v103_v9 }
  0x1a   :  { %v406_v12 = vpop.eup %405  ;;  %379 = vmatmul.msk.f32.vlgmr.msra.gmra.mxu3 %vm111_vm0, %v595_v10  ;;  %378 = vmatmul.msk.f32.vlgmr.msra.gmra.mxu0 %vm111_vm0, %v597_v11 }
  0x1b   :  { %v408_v13 = vpop.eup %407  ;;  %v185_v14 = vmul.f32 %v406_v12, %v183_v7  ;;  %vm191_vm2 = vweird.f32 %v406_v12  ;;  %163 = vmatpush.msra.mxu1 %v142_v30 }
  0x1c   :  { %v174_v15 = vmul.f32 %v408_v13, %v172_v8  ;;  %vm192_vm3 = vmor %vm190_vm1, %vm191_vm2  ;;  %vm180_vm5 = vweird.f32 %v408_v13 }
  0x1d   :  { %v186_v16 = vmul.f32 %v406_v12, %v185_v14  ;;  %vm181_vm6 = vmor %vm179_vm4, %vm180_vm5  ;;  %164 = vmatpush.msra.mxu1 %v141_v31  ;;  %v300_v31 = vmul.f32 0.5, %v597_v11  ;;  %vm369_vm4 = vcmask 257024  }
  0x1e   :  { %v175_v17 = vmul.f32 %v408_v13, %v174_v15  ;;  %380 = vmatmul.msk.f32.vlgmr.msra.gmra.mxu1 %vm111_vm0, %v597_v11 }
  0x1f   :  { %v187_v18 = vmul.f32 0.5, %v186_v16 }
  0x20   :  { %v176_v19 = vmul.f32 0.5, %v175_v17 }
  0x21   :  { %v188_v20 = vsub.f32 1.5, %v187_v18 }
  0x22   :  { %v177_v21 = vsub.f32 1.5, %v176_v19 }
  0x23   :  { %v189_v22 = vmul.f32 %v406_v12, %v188_v20 }
  0x24   :  { %v178_v24 = vmul.f32 %v408_v13, %v177_v21 }
  0x25   :  { %v193_v23 = vsel %vm192_vm3, %v406_v12, %v189_v22 }
  0x26   :  { %v207_v25 = vperm.slane %v193_v23, 0  ;;  %218 = vperm.xlu1 %400, %v193_v23   ;;  %v182_v26 = vsel %vm181_vm6, %v408_v13, %v178_v24  ;;  %381 = vmatmul.msk.f32.gmra.mxu1 %vm111_vm0, %v595_v10 }
  0x27   :  { %v195_v27 = vperm.slane %v182_v26, 0 }
  0x28   :  { %209 = vperm.xlu0 %399, %v207_v25  }
  0x30   :  { %197 = vperm.xlu0 %399, %v195_v27  }
  0x97   :  { %v135_v40 = vpop.f32.mrf.mxu0 }
  0x98   :  { %v219_v33 = vpop.permute.xlu1 %218  ;;  %v136_v46 = vadd.f32 %v401_v39, %v135_v40 }
  0x99   :  { %v221_v34 = vperm.slane %v219_v33, 0 }
  0x9a   :  { %v210_v35 = vpop.permute.xlu0 %209 }
  0x9b   :  { %v215_v38 = vmul.f32 %v210_v35, %v205_v32  ;;  %v222_v42 = vmul.f32 %v221_v34, %v216_v36  ;;  %v214_v43 = vmul.f32 %v210_v35, %v204_v37  ;;  %v213_v48 = vmul.f32 %v210_v35, %v203_v41  ;;  %v166_v63 = vpop.f32.mrf.mxu1 }
  0x9c   :  { %v212_v50 = vmul.f32 %v210_v35, %v202_v45  ;;  %v167_v5 = vadd.f32 %v402_v0, %v166_v63  ;;  %v301_v36 = vmul.f32 0.5, %v595_v10 }
  0x9d   :  { %244 = vmatpush.msra.mxu2 %v215_v38  ;;  %v138_v44 = vpop.f32.mrf.mxu3  ;;  %v256_v49 = vperm.slane %v222_v42, 0  ;;  %v501_v42 = vmov 32.0  }
  0x9e   :  { %v139_v47 = vadd.f32 %v401_v39, %v138_v44  ;;  %v224_v15 = vmul.f32 %v223_v58, %v167_v5 }
  0x9f   :  { %245 = vmatpush.msra.mxu2 %v214_v43 }
  0xa1   :  { %246 = vmatpush.msra.mxu2 %v213_v48 }
  0xa2   :  { %v198_v51 = vpop.permute.xlu0 %197 }
  0xa3   :  { %v200_v52 = vmul.f32 %v198_v51, %v136_v46  ;;  %v201_v53 = vmul.f32 %v198_v51, %v139_v47  ;;  %247 = vmatpush.msra.mxu2 %v212_v50  ;;  %v169_v6 = vpop.f32.mrf.mxu1 }
  0xa4   :  { %v170_v13 = vadd.f32 %v402_v0, %v169_v6 }
  0xa5   :  { %382 = vmatmul.msk.f32.vlgmr.msra.gmra.mxu2 %vm111_vm0, %v200_v52  ;;  %v259_v54 = vmul.f32 %v256_v49, %v201_v53  ;;  %v258_v55 = vmul.f32 %v256_v49, %v200_v52 }
  0xa6   :  { %v225_v22 = vmul.f32 %v223_v58, %v170_v13 }
  0xa7   :  { %v263_v56 = vsel %vm111_vm0, %v259_v54, 0.0  ;;  %v260_v57 = vsel %vm111_vm0, %v258_v55, 0.0 }
  0xa8   :  { %264 = vadd.xlane.f32.xlu2 %v263_v56  ;;  %261 = vadd.xlane.f32.xlu1 %v260_v57 }
  0xad   :  { %383 = vmatmul.msk.f32.gmra.mxu2 %vm111_vm0, %v201_v53 }
 0x11b   :  { %v265_v59 = vpop.xlane.xlu2 %264  ;;  %v262_v60 = vpop.xlane.xlu1 %261 }
 0x11c   :  { %v267_v61 = vadd.f32 %v265_v59, %v223_v58  ;;  %v266_v62 = vadd.f32 %v262_v60, %v223_v58 }
 0x11e   :  { %409 = vrcp.f32 %v267_v61  ;;  %v279_v12 = vand.u32 2147483648, %v266_v62  ;;  %v277_v17 = vand.u32 2147483647, %v266_v62  ;;  %vm273_vm9 = vweird.f32 %v266_v62 }
 0x11f   :  { %411 = vrcp.f32 %v266_v62  ;;  %v294_v20 = vand.u32 2147483648, %v267_v61  ;;  %vm288_vm11 = vweird.f32 %v267_v61  ;;  %v292_v23 = vand.u32 2147483647, %v267_v61 }
 0x120   :  { %v280_v21 = vor.u32 1.1754944e-38, %v279_v12  ;;  %vm278_vm12 = vcmp.eq.f32.partialorder %v277_v17, 8.507059e+37  ;;  %413 = vrcp.f32 %v501_v42  ;;  %v404_v12 = vld [vmem:[%s665_s13] ss:$0 sm:$0xff] }
 0x121   :  { %v295_v30 = vor.u32 1.1754944e-38, %v294_v20  ;;  %vm293_vm14 = vcmp.eq.f32.partialorder %v292_v23, 8.507059e+37 }
 0x124   :  { %v410_v1 = vpop.eup %409 }
 0x125   :  { %v412_v2 = vpop.eup %411  ;;  %v284_v3 = vmul.f32 %v410_v1, %v267_v61  ;;  %vm289_vm8 = vweird.f32 %v410_v1 }
 0x126   :  { %v269_v4 = vmul.f32 %v412_v2, %v266_v62  ;;  %vm274_vm7 = vweird.f32 %v412_v2  ;;  %vm290_vm13 = vmor %vm288_vm11, %vm289_vm8  ;;  %v414_v43 = vpop.eup %413 }
 0x127   :  { %v285_v7 = vsub.f32 1.0, %v284_v3  ;;  %vm275_vm10 = vmor %vm273_vm9, %vm274_vm7  ;;  %v313_v11 = vmul.f32 32.0, %v414_v43  ;;  %vm317_vm15 = vweird.f32 %v414_v43 }
 0x128   :  { %v270_v8 = vsub.f32 1.0, %v269_v4  ;;  %v249_v9 = vpop.f32.mrf.mxu2 }
 0x129   :  { %v286_v14 = vmul.f32 %v410_v1, %v285_v7  ;;  %v250_v24 = vadd.f32 %v249_v9, %v224_v15  ;;  %v314_v44 = vsub.f32 1.0, %v313_v11  ;;  %v403_v7 = vld [vmem:[%s664_s12] ss:$0 sm:$0xff] }
 0x12a   :  { %v271_v16 = vmul.f32 %v412_v2, %v270_v8 }
 0x12b   :  { %v287_v18 = vadd.f32 %v410_v1, %v286_v14  ;;  %v315_v45 = vmul.f32 %v414_v43, %v314_v44 }
 0x12c   :  { %v272_v19 = vadd.f32 %v412_v2, %v271_v16 }
 0x12d   :  { %v291_v27 = vsel %vm290_vm13, %v410_v1, %v287_v18  ;;  %v316_v46 = vadd.f32 %v414_v43, %v315_v45 }
 0x12e   :  { %v276_v25 = vsel %vm275_vm10, %v412_v2, %v272_v19  ;;  %v296_v34 = vsel %vm293_vm14, %v295_v30, %v291_v27 }
 0x12f   :  { %v281_v26 = vsel %vm278_vm12, %v280_v21, %v276_v25  ;;  %v318_v47 = vsel %vm317_vm15, %v414_v43, %v316_v46 }
 0x130   :  { %v282_v28 = vmul.f32 %v281_v26, %v250_v24  ;;  %v252_v29 = vpop.f32.mrf.mxu2 }
 0x131   :  { %v253_v32 = vadd.f32 %v252_v29, %v225_v22 }
 0x132   :  { %v298_v33 = vmul.f32 0.5, %v282_v28 }
 0x133   :  { %v297_v35 = vmul.f32 %v296_v34, %v253_v32 }
 0x134   :  { %v302_v37 = vadd.f32 %v300_v31, %v298_v33 }
 0x135   :  { %v299_v38 = vmul.f32 0.5, %v297_v35 }
 0x136   :  { %v306_v39 = vsel %vm111_vm0, %v302_v37, 0.0 }
 0x137   :  { %307 = vadd.xlane.f32.xlu2 %v306_v39  ;;  %v303_v40 = vadd.f32 %v301_v36, %v299_v38 }
 0x139   :  { %v309_v41 = vsel %vm111_vm0, %v303_v40, 0.0 }
 0x13a   :  { %310 = vadd.xlane.f32.xlu0 %v309_v41 }
 0x1aa   :  { %v308_v48 = vpop.xlane.xlu2 %307 }
 0x1ab   :  { %v319_v10 = vmul.f32 %v318_v47, %v308_v48 }
 0x1ad   :  { %v321_v49 = vsub.f32 %v302_v37, %v319_v10  ;;  %v311_v50 = vpop.xlane.xlu0 %310 }
 0x1ae   :  { %v320_v51 = vmul.f32 %v318_v47, %v311_v50 }
 0x1af   :  { %v323_v52 = vmul.f32 %v321_v49, %v321_v49 }
 0x1b0   :  { %v322_v53 = vsub.f32 %v303_v40, %v320_v51 }
 0x1b1   :  { %v325_v54 = vsel %vm111_vm0, %v323_v52, 0.0 }
 0x1b2   :  { %326 = vadd.xlane.f32.xlu2 %v325_v54  ;;  %v324_v55 = vmul.f32 %v322_v53, %v322_v53 }
 0x1b4   :  { %v328_v56 = vsel %vm111_vm0, %v324_v55, 0.0 }
 0x1ba   :  { %329 = vadd.xlane.f32.xlu2 %v328_v56 }
 0x225   :  { %v327_v57 = vpop.xlane.xlu2 %326 }
 0x226   :  { %v331_v58 = vmul.f32 %v327_v57, %v318_v47 }
 0x228   :  { %v333_v59 = vadd.f32 1e-05, %v331_v58 }
 0x22a   :  { %415 = vrsqrt.f32 %v333_v59  ;;  %vm341_vm2 = vweird.f32 %v333_v59 }
 0x22d   :  { %v330_v60 = vpop.xlane.xlu2 %329 }
 0x22e   :  { %v332_v61 = vmul.f32 %v330_v60, %v318_v47 }
 0x230   :  { %v416_v62 = vpop.eup %415  ;;  %v334_v63 = vadd.f32 1e-05, %v332_v61 }
 0x231   :  { %v336_v0 = vmul.f32 %v416_v62, %v333_v59  ;;  %vm342_vm1 = vweird.f32 %v416_v62 }
 0x232   :  { %417 = vrsqrt.f32 %v334_v63  ;;  %vm343_vm0 = vmor %vm341_vm2, %vm342_vm1  ;;  %vm351_vm5 = vweird.f32 %v334_v63 }
 0x233   :  { %v337_v1 = vmul.f32 %v416_v62, %v336_v0 }
 0x235   :  { %v338_v2 = vmul.f32 0.5, %v337_v1 }
 0x237   :  { %v339_v3 = vsub.f32 1.5, %v338_v2 }
 0x238   :  { %v418_v4 = vpop.eup %417 }
 0x239   :  { %v340_v5 = vmul.f32 %v416_v62, %v339_v3  ;;  %v346_v6 = vmul.f32 %v418_v4, %v334_v63  ;;  %vm352_vm3 = vweird.f32 %v418_v4 }
 0x23a   :  { %vm353_vm6 = vmor %vm351_vm5, %vm352_vm3 }
 0x23b   :  { %v344_v8 = vsel %vm343_vm0, %v416_v62, %v340_v5  ;;  %v347_v9 = vmul.f32 %v418_v4, %v346_v6 }
 0x23c   :  { %v355_v13 = vmul.f32 %v344_v8, %v321_v49 }
 0x23d   :  { %v348_v14 = vmul.f32 0.5, %v347_v9 }
 0x23e   :  { %v360_v15 = vmul.f32 %v403_v7, %v355_v13 }
 0x23f   :  { %v349_v16 = vsub.f32 1.5, %v348_v14 }
 0x240   :  { %v365_v17 = vadd.f32 %v404_v12, %v360_v15 }
 0x241   :  { %v350_v18 = vmul.f32 %v418_v4, %v349_v16 }
 0x242   :  { %v367_v19 = vpack.c.bf16 %v365_v17, %v365_v17 }
 0x243   :  { %v354_v20 = vsel %vm353_vm6, %v418_v4, %v350_v18 }
 0x244   :  { %370 = vst.msk [vmem:[%s666_s14] sm:$0xf] %vm369_vm4, %v367_v19  ;;  %v356_v21 = vmul.f32 %v354_v20, %v322_v53 }
 0x246   :  { %v361_v22 = vmul.f32 %v403_v7, %v356_v21 }
 0x248   :  { %v366_v23 = vadd.f32 %v404_v12, %v361_v22 }
 0x24a   :  { %v368_v24 = vpack.c.bf16 %v366_v23, %v366_v23 }
 0x24c   :  { %371 = vst.msk [vmem:[%s666_s14 + $0x4] sm:$0xf] %vm369_vm4, %v368_v24 }
 0x24d   :  { %376 = vsyncpa [#allocation7], 1 }
 0x24e   :  { %377 = vsyncpa [#allocation9], 1 }

// kernel: sgformer_forward.4
= control target key start
LH: loop header
LB: loop body
LE: loop exit
PB: predicated region body
PF: predicated region fallthrough
CT: control target
= control target key end

     0   :  { %s1224_s0 = inlined_call_operand.<no memory space> [shape: s32[1], index: 0, kind: input, shape index: {}]   ;;  %s1225_s1 = inlined_call_operand.hbm [shape: f32[16,12], index: 1, kind: input, shape index: {}]   ;;  %s1226_s2 = inlined_call_operand.vmem [shape: f32[12,32], index: 2, kind: input, shape index: {}]   ;;  %s1227_s3 = inlined_call_operand.vmem [shape: f32[1,32], index: 3, kind: input, shape index: {}]   ;;  %s1228_s4 = inlined_call_operand.hbm [shape: f32[32,32], index: 4, kind: input, shape index: {}]   ;;  %s1229_s5 = inlined_call_operand.vmem [shape: f32[1,32], index: 5, kind: input, shape index: {}]   ;;  %s1230_s6 = inlined_call_operand.hbm [shape: f32[32,32], index: 6, kind: input, shape index: {}]   ;;  %s1231_s7 = inlined_call_operand.vmem [shape: f32[1,32], index: 7, kind: input, shape index: {}]   ;;  %s1232_s8 = inlined_call_operand.vmem [shape: f32[1,32], index: 8, kind: input, shape index: {}]   ;;  %s1233_s9 = inlined_call_operand.hbm [shape: f32[32,32], index: 9, kind: input, shape index: {}]   ;;  %s1234_s10 = inlined_call_operand.hbm [shape: f32[32,32], index: 10, kind: input, shape index: {}]   ;;  %s1235_s11 = inlined_call_operand.hbm [shape: f32[32,32], index: 11, kind: input, shape index: {}]   ;;  %s1236_s12 = inlined_call_operand.vmem [shape: f32[1,32], index: 12, kind: input, shape index: {}]   ;;  %s1237_s13 = inlined_call_operand.vmem [shape: f32[1,32], index: 13, kind: input, shape index: {}]   ;;  %s1238_s14 = inlined_call_operand.vmem [shape: f32[1,32], index: 14, kind: input, shape index: {}]   ;;  %s1239_s15 = inlined_call_operand.vmem [shape: bf16[16,32], index: 15, kind: output, shape index: {0}]   ;;  %s1240_s16 = inlined_call_operand.vmem [shape: bf16[16,32], index: 16, kind: output, shape index: {1}]   ;;  %s1241_s17 = inlined_call_operand.vmem [shape: f32[32,32], index: 17, kind: output, shape index: {2}]   ;;  %s1242_s18 = inlined_call_operand.vmem [shape: f32[1,32], index: 18, kind: output, shape index: {3}]   ;;  %s1243_s19 = inlined_call_operand.hbm [shape: f32[1,1], index: 19, kind: output, shape index: {4}]   ;;  %s1244_s20 = inlined_call_operand.hbm [shape: f32[1,1], index: 20, kind: output, shape index: {5}]  }
   0x1   :  { %1246 = sst [smem:[#allocation24_spill]] %s1224_s0 }
   0x2   :  { %1247 = sst [smem:[#allocation25_spill]] %s1225_s1 }
   0x3   :  { %1248 = sst [smem:[#allocation26_spill]] %s1226_s2 }
   0x4   :  { %1249 = sst [smem:[#allocation27_spill]] %s1227_s3 }
   0x5   :  { %1250 = sst [smem:[#allocation28_spill]] %s1228_s4 }
   0x6   :  { %27 = vsyncpa [#allocation5], 0 }
   0x7   :  { %28 = vsyncpa [#allocation8], 0 }
   0x8   :  { %29 = vsyncpa [#allocation11], 0 }
   0x9   :  { %30 = vsyncpa [#allocation14], 0 }
   0xa   :  { %31 = vsyncpa [#allocation6], 0 }
   0xb   :  { %32 = vsyncpa [#allocation17], 0  ;;  %s1251_s23 = sld [smem:[#allocation28_spill]]  ;;  %s908_s2 = smov [#allocation7]  }
   0xc   :  { %s56_s25 = sshll.u32 %s908_s2, 4  ;;  %s86_s27 = sshll.u32 %s1233_s9, 4  ;;  %s57_s25 = int_to_ptr.vmem [resolvable:$true] %s56_s25  ;;  %s87_s27 = int_to_ptr.hbm [resolvable:$true] %s86_s27 }
   0xd   :  { %s909_s28 = smov 128   ;;  %s910_s4 = smov 8  }
   0xe   :  { %s911_s29 = smov [#allocation10]   ;;  %s1252_s1 = sld [smem:[#allocation25_spill]] }
   0xf   :  { %s88_s30 = sshll.u32 %s911_s29, 4  ;;  %s69_s2 = sshll.u32 %s1230_s6, 4  ;;  %s89_s30 = int_to_ptr.vmem [resolvable:$true] %s88_s30  ;;  %s70_s2 = int_to_ptr.hbm [resolvable:$true] %s69_s2 }
  0x10   :  { %94 = dma.hbm_to_vmem [thread:$0]  %s87_s27, 512, %s89_s30, [#allocation11], %s909_s28, %s909_s28, %s910_s4  }
  0x11   :  { %s54_s24 = sshll.u32 %s1251_s23, 4  ;;  %s912_s3 = smov [#allocation4]   ;;  %s55_s24 = int_to_ptr.hbm [resolvable:$true] %s54_s24 }
  0x12   :  { %62 = dma.hbm_to_vmem [thread:$0]  %s55_s24, 512, %s57_s25, [#allocation8], %s909_s28, %s909_s28, %s910_s4  }
  0x13   :  { %s39_s26 = sshll.u32 %s912_s3, 4  ;;  %s913_s24 = smov [#allocation9]   ;;  %s40_s26 = int_to_ptr.vmem [resolvable:$true] %s39_s26 }
  0x14   :  { %s37_s22 = sshll.u32 %s1252_s1, 4  ;;  %s71_s25 = sshll.u32 %s913_s24, 4  ;;  %s38_s22 = int_to_ptr.hbm [resolvable:$true] %s37_s22  ;;  %s72_s25 = int_to_ptr.vmem [resolvable:$true] %s71_s25 }
  0x15   :  { %45 = dma.hbm_to_vmem [thread:$0]  %s38_s22, 256, %s40_s26, [#allocation5], %s909_s28, %s909_s28, %s910_s4  }
  0x16   :  { %s99_s21 = sshll.u32 %s1234_s10, 4  ;;  %s112_s30 = sshll.u32 %s1235_s11, 4  ;;  %s100_s21 = int_to_ptr.hbm [resolvable:$true] %s99_s21  ;;  %s113_s30 = int_to_ptr.hbm [resolvable:$true] %s112_s30 }
  0x17   :  { %77 = dma.hbm_to_vmem [thread:$0]  %s70_s2, 512, %s72_s25, [#allocation8], %s909_s28, %s909_s28, %s910_s4  }
  0x18   :  { %s914_s1 = smov [#allocation12]   ;;  %s915_s22 = smov [#allocation13]  }
  0x19   :  { %s101_s9 = sshll.u32 %s914_s1, 4  ;;  %s114_s10 = sshll.u32 %s915_s22, 4  ;;  %s102_s9 = int_to_ptr.vmem [resolvable:$true] %s101_s9  ;;  %s115_s10 = int_to_ptr.vmem [resolvable:$true] %s114_s10 }
  0x1a   :  { %107 = dma.hbm_to_vmem [thread:$0]  %s100_s21, 512, %s102_s9, [#allocation11], %s909_s28, %s909_s28, %s910_s4  }
  0x1b   :  { %120 = dma.hbm_to_vmem [thread:$0]  %s113_s30, 512, %s115_s10, [#allocation14], %s909_s28, %s909_s28, %s910_s4  }
  0x1c   :  { %896 = dma.done.wait [#allocation5], 256  }
  0x1d   :  { %897 = vsyncadd [#allocation5], 4294967040 }
  0x1e   :  { %898 = dma.done.wait [#allocation8], 1024  }
  0x1f   :  { %899 = vsyncadd [#allocation8], 4294966272 }
  0x20   :  { %900 = dma.done.wait [#allocation11], 1024  }
  0x21   :  { %901 = vsyncadd [#allocation11], 4294966272 }
  0x22   :  { %902 = dma.done.wait [#allocation14], 512  }
  0x23   :  { %903 = vsyncadd [#allocation14], 4294966784  ;;  %vm180_vm0 = vcmask 1043456   ;;  %s1253_s2 = sld [smem:[#allocation26_spill]]  ;;  %v165_v2 = vld [vmem:[#allocation4] sm:$0xff]  ;;  %vm173_vm1 = vcmask 97280  }
  0x24   :  { %v210_v3 = vld [vmem:[#allocation7 + $0x18] sm:$0xff]  ;;  %v209_v5 = vld [vmem:[#allocation7 + $0x10] sm:$0xff]  ;;  %v208_v8 = vld [vmem:[#allocation7 + $0x8] sm:$0xff]  ;;  %s1254_s24 = sld [smem:[#allocation27_spill]]  ;;  %vm155_vm2 = vcmask 261120   ;;  %vm312_vm3 = vcmask 257024  }
  0x25   :  { %v318_v4 = vld [vmem:[#allocation9 + $0x18] sm:$0xff]  ;;  %234 = vmatpush.msra.mxu1 %v210_v3  ;;  %v317_v6 = vld [vmem:[#allocation9 + $0x10] sm:$0xff]  ;;  %v316_v9 = vld [vmem:[#allocation9 + $0x8] sm:$0xff]  ;;  %v916_v28 = vmov 32.0   ;;  %vm160_vm11 = vcmask 253952   ;;  %vm162_vm14 = vcmask 0  }
  0x26   :  { %331 = vmatpush.msra.mxu3 %v318_v4  ;;  %v166_v7 = vld [vmem:[#allocation4 + $0x8] sm:$0xff]  ;;  %v207_v10 = vld [vmem:[#allocation7] sm:$0xff]  ;;  %v692_v17 = vld [vmem:[%s1229_s5] ss:$0 sm:$0xff]  ;;  %698 = vrcp.f32 %v916_v28  ;;  %s1255_s5 = sld [smem:[#allocation24_spill]]  ;;  %vm504_vm15 = vcmask 130048  }
  0x27   :  { %235 = vmatpush.msra.mxu1 %v209_v5  ;;  %v315_v11 = vld [vmem:[#allocation9] sm:$0xff]  ;;  %v399_v45 = vld [vmem:[#allocation12 + $0x18] sm:$0xff]  ;;  %v398_v48 = vld [vmem:[#allocation12 + $0x10] sm:$0xff]  ;;  %s619_s22 = sshll.u32 %s1243_s19, 4  ;;  %s919_s10 = smov [#allocation16]   ;;  %s620_s22 = int_to_ptr.hbm [resolvable:$true] %s619_s22 }
  0x28   :  { %332 = vmatpush.msra.mxu3 %v317_v6  ;;  %v362_v46 = vld [vmem:[#allocation10 + $0x18] sm:$0xff]  ;;  %v361_v49 = vld [vmem:[#allocation10 + $0x10] sm:$0xff]  ;;  %v397_v51 = vld [vmem:[#allocation12 + $0x8] sm:$0xff]  ;;  %s628_s11 = sshll.u32 %s919_s10, 4  ;;  %s630_s26 = sshll.u32 %s1244_s20, 4  ;;  %s629_s11 = int_to_ptr.vmem [resolvable:$true] %s628_s11  ;;  %s631_s26 = int_to_ptr.hbm [resolvable:$true] %s630_s26 }
  0x29   :  { %v168_v0 = vld [vmem:[%s1253_s2 + $0x8] sm:$0xf]  ;;  %v167_v1 = vld [vmem:[%s1253_s2] sm:$0xff]  ;;  %236 = vmatpush.msra.mxu1 %v208_v8  ;;  %v360_v52 = vld [vmem:[#allocation10 + $0x8] sm:$0xff] }
  0x2a   :  { %656 = vmatpush.msk.msra.mxu0 %vm180_vm0, %v168_v0  ;;  %333 = vmatpush.msra.mxu3 %v316_v9  ;;  %v691_v12 = vld [vmem:[%s1254_s24] ss:$0 sm:$0xff]  ;;  %v430_v47 = vld [vmem:[#allocation13 + $0x18] sm:$0xff]  ;;  %v428_v53 = vld [vmem:[#allocation13 + $0x8] sm:$0xff] }
  0x2b   :  { %237 = vmatpush.msra.mxu1 %v207_v10  ;;  %v429_v50 = vld [vmem:[#allocation13 + $0x10] sm:$0xff]  ;;  %v396_v54 = vld [vmem:[#allocation12] sm:$0xff] }
  0x2c   :  { %199 = vmatpush.msra.mxu0 %v167_v1  ;;  %334 = vmatpush.msra.mxu3 %v315_v11  ;;  %v699_v29 = vpop.eup %698  ;;  %v359_v55 = vld [vmem:[#allocation10] sm:$0xff]  ;;  %v694_v11 = vld [vmem:[%s1232_s8] ss:$0 sm:$0xff] }
  0x2d   :  { %657 = vmatmul.msk.f32.vlgmr.msra.gmra.mxu0 %vm173_vm1, %v165_v2  ;;  %v254_v30 = vmul.f32 32.0, %v699_v29  ;;  %vm258_vm4 = vweird.f32 %v699_v29  ;;  %447 = vmatpush.msrb.mxu1 %v430_v47  ;;  %v427_v56 = vld [vmem:[#allocation13] sm:$0xff]  ;;  %v695_v28 = vld [vmem:[%s1237_s13] ss:$0 sm:$0xff] }
  0x2e   :  { %416 = vmatpush.msrb.mxu0 %v399_v45  ;;  %385 = vmatpush.msrb.mxu3 %v362_v46 }
  0x2f   :  { %v255_v31 = vsub.f32 1.0, %v254_v30  ;;  %448 = vmatpush.msrb.mxu1 %v429_v50 }
  0x30   :  { %417 = vmatpush.msrb.mxu0 %v398_v48  ;;  %386 = vmatpush.msrb.mxu3 %v361_v49 }
  0x31   :  { %v256_v32 = vmul.f32 %v699_v29, %v255_v31  ;;  %449 = vmatpush.msrb.mxu1 %v428_v53 }
  0x32   :  { %418 = vmatpush.msrb.mxu0 %v397_v51  ;;  %387 = vmatpush.msrb.mxu3 %v360_v52 }
  0x33   :  { %v257_v33 = vadd.f32 %v699_v29, %v256_v32  ;;  %450 = vmatpush.msrb.mxu1 %v427_v56 }
  0x34   :  { %419 = vmatpush.msrb.mxu0 %v396_v54  ;;  %388 = vmatpush.msrb.mxu3 %v359_v55 }
  0x35   :  { %658 = vmatmul.msk.f32.gmra.mxu0 %vm173_vm1, %v166_v7  ;;  %v259_v34 = vsel %vm258_vm4, %v699_v29, %v257_v33  ;;  %v693_v7 = vld [vmem:[%s1231_s7] ss:$0 sm:$0xff]  ;;  %v354_v29 = vstv %s1255_s5 }
  0xaa   :  { %v201_v13 = vpop.f32.mrf.mxu0 }
  0xab   :  { %v202_v14 = vadd.f32 %v691_v12, %v201_v13 }
  0xad   :  { %659 = vmatmul.msk.f32.vlgmr.msra.gmra.mxu1 %vm155_vm2, %v202_v14  ;;  %661 = vmatmul.msk.f32.vlgmr.msra.gmra.mxu3 %vm155_vm2, %v202_v14 }
  0xb2   :  { %v204_v15 = vpop.f32.mrf.mxu0 }
  0xb3   :  { %v205_v16 = vadd.f32 %v691_v12, %v204_v15 }
  0xb5   :  { %660 = vmatmul.msk.f32.gmra.mxu1 %vm155_vm2, %v205_v16  ;;  %662 = vmatmul.msk.f32.gmra.mxu3 %vm155_vm2, %v205_v16 }
 0x12a   :  { %v239_v18 = vpop.f32.mrf.mxu1 }
 0x12b   :  { %v240_v19 = vadd.f32 %v692_v17, %v239_v18 }
 0x12d   :  { %v247_v20 = vsel %vm155_vm2, %v240_v19, 0.0 }
 0x12e   :  { %248 = vadd.xlane.f32.xlu0 %v247_v20 }
 0x130   :  { %v336_v21 = vpop.f32.mrf.mxu3 }
 0x131   :  { %v342_v22 = vpack.c.bf16 %v336_v21, %v336_v21 }
 0x132   :  { %v242_v23 = vpop.f32.mrf.mxu1 }
 0x133   :  { %344 = vst.msk [vmem:[%s1240_s16] sm:$0xf] %vm312_vm3, %v342_v22  ;;  %v243_v24 = vadd.f32 %v692_v17, %v242_v23 }
 0x135   :  { %v250_v25 = vsel %vm155_vm2, %v243_v24, 0.0 }
 0x136   :  { %251 = vadd.xlane.f32.xlu0 %v250_v25  ;;  %v917_v25 = vmov 0.0  }
 0x137   :  { %161 = vst.msk [vmem:[%s1242_s18] sm:$0x1] %vm160_vm11, %v917_v25 }
 0x138   :  { %v339_v26 = vpop.f32.mrf.mxu3  ;;  %156 = vst.msk [vmem:[%s1241_s17] sm:$0xff] %vm155_vm2, %v917_v25 }
 0x139   :  { %v343_v27 = vpack.c.bf16 %v339_v26, %v339_v26  ;;  %157 = vst.msk [vmem:[%s1241_s17 + $0x8] sm:$0xff] %vm155_vm2, %v917_v25  ;;  %v347_v26 = vlaneseq }
 0x13a   :  { %158 = vst.msk [vmem:[%s1241_s17 + $0x10] sm:$0xff] %vm155_vm2, %v917_v25 }
 0x13b   :  { %345 = vst.msk [vmem:[%s1240_s16 + $0x4] sm:$0xf] %vm312_vm3, %v343_v27  ;;  %v348_v27 = vshrl.u32 %v347_v26, 7 }
 0x13c   :  { %159 = vst.msk [vmem:[%s1241_s17 + $0x18] sm:$0xff] %vm155_vm2, %v917_v25 }
 0x13d   :  { %vm1145_vm12 = vcmp.lt.s32.totalorder %v348_v27, %v354_v29  ;;  %163 = vst.msk [vmem:[#allocation15] sm:$0x1] %vm162_vm14, %v917_v25 }
 0x13e   :  { %164 = vst.msk [vmem:[#allocation16] sm:$0x1] %vm162_vm14, %v917_v25 }
 0x145   :  { %v586_v25 = vld [vmem:[#allocation16] sm:$0x1] }
 0x1a1   :  { %v249_v35 = vpop.xlane.xlu0 %248 }
 0x1a2   :  { %v260_v36 = vmul.f32 %v259_v34, %v249_v35  ;;  %v349_v35 = vadd.s32 8, %v348_v27  ;;  %v567_v27 = vld [vmem:[#allocation15] sm:$0x1] }
 0x1a4   :  { %v262_v37 = vsub.f32 %v240_v19, %v260_v36  ;;  %v697_v36 = vld [vmem:[%s1236_s12] ss:$0 sm:$0xff]  ;;  %vm1157_vm13 = vcmp.lt.s32.totalorder %v349_v35, %v354_v29  ;;  %v469_v35 = vld [vmem:[%s1241_s17 + $0x8] sm:$0xff] }
 0x1a6   :  { %v264_v38 = vmul.f32 %v262_v37, %v262_v37 }
 0x1a8   :  { %v266_v39 = vsel %vm155_vm2, %v264_v38, 0.0  ;;  %v696_v38 = vld [vmem:[%s1238_s14] ss:$0 sm:$0xff] }
 0x1a9   :  { %267 = vadd.xlane.f32.xlu1 %v266_v39  ;;  %v252_v40 = vpop.xlane.xlu0 %251 }
 0x1aa   :  { %v261_v41 = vmul.f32 %v259_v34, %v252_v40 }
 0x1ac   :  { %v1088_v42 = vsub.f32 %v243_v24, %v261_v41 }
 0x1ae   :  { %v265_v43 = vmul.f32 %v1088_v42, %v1088_v42 }
 0x1b0   :  { %v269_v44 = vsel %vm155_vm2, %v265_v43, 0.0 }
 0x1b1   :  { %270 = vadd.xlane.f32.xlu1 %v269_v44 }
 0x21c   :  { %v268_v57 = vpop.xlane.xlu1 %267 }
 0x21d   :  { %v272_v58 = vmul.f32 %v268_v57, %v259_v34 }
 0x21f   :  { %v274_v59 = vadd.f32 1e-05, %v272_v58 }
 0x221   :  { %700 = vrsqrt.f32 %v274_v59  ;;  %vm282_vm6 = vweird.f32 %v274_v59 }
 0x224   :  { %v271_v60 = vpop.xlane.xlu1 %270 }
 0x225   :  { %v273_v61 = vmul.f32 %v271_v60, %v259_v34 }
 0x227   :  { %v701_v62 = vpop.eup %700  ;;  %v275_v63 = vadd.f32 1e-05, %v273_v61 }
 0x228   :  { %v277_v0 = vmul.f32 %v701_v62, %v274_v59  ;;  %vm283_vm5 = vweird.f32 %v701_v62 }
 0x229   :  { %702 = vrsqrt.f32 %v275_v63  ;;  %vm284_vm7 = vmor %vm282_vm6, %vm283_vm5  ;;  %vm292_vm9 = vweird.f32 %v275_v63 }
 0x22a   :  { %v278_v1 = vmul.f32 %v701_v62, %v277_v0 }
 0x22c   :  { %v279_v2 = vmul.f32 0.5, %v278_v1 }
 0x22e   :  { %v280_v3 = vsub.f32 1.5, %v279_v2 }
 0x22f   :  { %v703_v4 = vpop.eup %702 }
 0x230   :  { %v281_v5 = vmul.f32 %v701_v62, %v280_v3  ;;  %v287_v6 = vmul.f32 %v703_v4, %v275_v63  ;;  %vm293_vm8 = vweird.f32 %v703_v4 }
 0x231   :  { %vm294_vm10 = vmor %vm292_vm9, %vm293_vm8 }
 0x232   :  { %v285_v8 = vsel %vm284_vm7, %v701_v62, %v281_v5  ;;  %v288_v9 = vmul.f32 %v703_v4, %v287_v6  ;;  %v554_v5 = vld [vmem:[%s1242_s18] sm:$0x1] }
 0x233   :  { %v296_v10 = vmul.f32 %v285_v8, %v262_v37 }
 0x234   :  { %v289_v12 = vmul.f32 0.5, %v288_v9 }
 0x235   :  { %v301_v13 = vmul.f32 %v693_v7, %v296_v10 }
 0x236   :  { %v290_v14 = vsub.f32 1.5, %v289_v12 }
 0x237   :  { %v306_v15 = vadd.f32 %v694_v11, %v301_v13 }
 0x238   :  { %v291_v16 = vmul.f32 %v703_v4, %v290_v14 }
 0x239   :  { %v308_v17 = vmax.f32 %v306_v15, 0.0 }
 0x23a   :  { %v295_v18 = vsel %vm294_vm10, %v703_v4, %v291_v16 }
 0x23b   :  { %v297_v19 = vmul.f32 %v295_v18, %v1088_v42  ;;  %v310_v20 = vpack.c.bf16 %v308_v17, %v308_v17  ;;  %663 = vmatmul.msk.f32.vlgmr.msrb.gmra.mxu3 %vm155_vm2, %v308_v17  ;;  %665 = vmatmul.msk.f32.vlgmr.msrb.gmra.mxu0 %vm155_vm2, %v308_v17 }
 0x23c   :  { %667 = vmatmul.msk.f32.vlgmr.msrb.gmra.mxu1 %vm155_vm2, %v308_v17 }
 0x23d   :  { %313 = vst.msk [vmem:[%s1239_s15] sm:$0xf] %vm312_vm3, %v310_v20  ;;  %v302_v21 = vmul.f32 %v693_v7, %v297_v19 }
 0x23f   :  { %v307_v22 = vadd.f32 %v694_v11, %v302_v21 }
 0x241   :  { %v309_v23 = vmax.f32 %v307_v22, 0.0 }
 0x243   :  { %v311_v24 = vpack.c.bf16 %v309_v23, %v309_v23  ;;  %664 = vmatmul.msk.f32.gmra.mxu3 %vm155_vm2, %v309_v23  ;;  %666 = vmatmul.msk.f32.gmra.mxu0 %vm155_vm2, %v309_v23 }
 0x244   :  { %668 = vmatmul.msk.f32.gmra.mxu1 %vm155_vm2, %v309_v23 }
 0x245   :  { %314 = vst.msk [vmem:[%s1239_s15 + $0x4] sm:$0xf] %vm312_vm3, %v311_v24 }
 0x2b8   :  { %v421_v30 = vpop.f32.mrf.mxu0 }
 0x2b9   :  { %v422_v32 = vadd.f32 %v695_v28, %v421_v30  ;;  %v452_v33 = vpop.f32.mrf.mxu1 }
 0x2ba   :  { %v453_v47 = vadd.f32 %v696_v38, %v452_v33 }
 0x2bb   :  { %v464_v34 = vsel %vm1145_vm12, %v422_v32, 0.0  ;;  %v468_v32 = vld [vmem:[%s1241_s17] sm:$0xff] }
 0x2bc   :  { %472 = vxpose.xlu2.b32.start [1/2] (short) (narrow) %v464_v34, 32  ;;  %v587_v44 = vmul.f32 %v464_v34, %v464_v34  ;;  %v555_v48 = vsel %vm155_vm2, %v464_v34, 0.0 }
 0x2be   :  { %v390_v37 = vpop.f32.mrf.mxu3  ;;  %v589_v54 = vsel %vm155_vm2, %v587_v44, 0.0 }
 0x2bf   :  { %v391_v41 = vadd.f32 %v697_v36, %v390_v37 }
 0x2c0   :  { %v424_v39 = vpop.f32.mrf.mxu0 }
 0x2c1   :  { %v425_v42 = vadd.f32 %v695_v28, %v424_v39  ;;  %v455_v43 = vpop.f32.mrf.mxu1  ;;  %v462_v51 = vsel %vm1145_vm12, %v391_v41, 0.0  ;;  %v471_v41 = vld [vmem:[%s1241_s17 + $0x18] sm:$0xff] }
 0x2c2   :  { %v456_v45 = vadd.f32 %v696_v38, %v455_v43  ;;  %v568_v59 = vmul.f32 %v462_v51, %v462_v51  ;;  %v470_v38 = vld [vmem:[%s1241_s17 + $0x10] sm:$0xff] }
 0x2c3   :  { %v465_v46 = vsel %vm1157_vm13, %v425_v42, 0.0 }
 0x2c4   :  { %669 = vmatpush.msk.msra.mxu2 %vm1157_vm13, %v456_v45  ;;  %473 = vxpose.xlu2.b32.end [2/2] (short) (narrow) %v465_v46, 32  ;;  %v556_v49 = vsel %vm155_vm2, %v465_v46, 0.0  ;;  %v588_v50 = vmul.f32 %v465_v46, %v465_v46  ;;  %v570_v0 = vsel %vm155_vm2, %v568_v59, 0.0 }
 0x2c5   :  { %v557_v52 = vadd.f32 %v556_v49, %v555_v48 }
 0x2c6   :  { %670 = vmatpush.msk.msra.mxu2 %vm1145_vm12, %v453_v47  ;;  %v393_v53 = vpop.f32.mrf.mxu3  ;;  %v590_v55 = vsel %vm155_vm2, %v588_v50, 0.0 }
 0x2c7   :  { %v558_v56 = vrot.slane %v557_v52, 4  ;;  %v394_v57 = vadd.f32 %v697_v36, %v393_v53  ;;  %v591_v58 = vadd.f32 %v590_v55, %v589_v54 }
 0x2c9   :  { %v559_v60 = vadd.f32 %v558_v56, %v557_v52  ;;  %v463_v61 = vsel %vm1157_vm13, %v394_v57, 0.0  ;;  %592 = vadd.xlane.f32.xlu1 %v591_v58 }
 0x2ca   :  { %v569_v62 = vmul.f32 %v463_v61, %v463_v61 }
 0x2cb   :  { %v560_v63 = vrot.slane %v559_v60, 2 }
 0x2cc   :  { %v571_v1 = vsel %vm155_vm2, %v569_v62, 0.0 }
 0x2cd   :  { %v561_v2 = vadd.f32 %v560_v63, %v559_v60  ;;  %v572_v3 = vadd.f32 %v571_v1, %v570_v0 }
 0x2cf   :  { %v562_v4 = vrot.slane %v561_v2, 1  ;;  %573 = vadd.xlane.f32.xlu0 %v572_v3 }
 0x2d1   :  { %v563_v6 = vadd.f32 %v562_v4, %v561_v2 }
 0x2d3   :  { %v564_v7 = vadd.f32 %v563_v6, %v554_v5 }
 0x2d5   :  { %566 = vst.msk [vmem:[%s1242_s18] sm:$0x1] %vm160_vm11, %v564_v7  ;;  %s918_s18 = smov [#allocation15]  }
 0x2d6   :  { %s617_s7 = sshll.u32 %s918_s18, 4  ;;  %s618_s7 = int_to_ptr.vmem [resolvable:$true] %s617_s7 }
 0x33c   :  { %v593_v8 = vpop.xlane.xlu1 %592 }
 0x33d   :  { %v594_v9 = vrot.slane %v593_v8, 4 }
 0x33f   :  { %v595_v10 = vadd.f32 %v594_v9, %v593_v8 }
 0x341   :  { %v596_v11 = vrot.slane %v595_v10, 2 }
 0x342   :  { %v574_v12 = vpop.xlane.xlu0 %573 }
 0x343   :  { %v575_v13 = vrot.slane %v574_v12, 4  ;;  %v597_v15 = vadd.f32 %v596_v11, %v595_v10 }
 0x345   :  { %v576_v14 = vadd.f32 %v575_v13, %v574_v12  ;;  %v598_v18 = vrot.slane %v597_v15, 1 }
 0x347   :  { %v577_v16 = vrot.slane %v576_v14, 2  ;;  %v599_v21 = vadd.f32 %v598_v18, %v597_v15 }
 0x349   :  { %v578_v17 = vadd.f32 %v577_v16, %v576_v14 }
 0x34b   :  { %v579_v19 = vrot.slane %v578_v17, 1 }
 0x34d   :  { %v580_v20 = vadd.f32 %v579_v19, %v578_v17 }
 0x34f   :  { %675 = vpush %v580_v20 }
 0x350   :  { %677 = vpush %v599_v21 }
 0x355   :  { %v488_v22 = vpop.trf.xlu2 }
 0x356   :  { %671 = vmatmul.msk.f32.vlgmr.msra.gmra.mxu2 %vm504_vm15, %v488_v22 }
 0x35d   :  { %v489_v23 = vpop.trf.xlu2 }
 0x35e   :  { %672 = vmatmul.msk.f32.gmra.mxu2 %vm504_vm15, %v489_v23 }
 0x365   :  { %v490_v24 = vpop.trf.xlu2 }
 0x366   :  { %673 = vmatmul.msk.f32.gmra.mxu2 %vm504_vm15, %v490_v24 }
 0x36d   :  { %v491_v26 = vpop.trf.xlu2 }
 0x36e   :  { %674 = vmatmul.msk.f32.gmra.mxu2 %vm504_vm15, %v491_v26 }
 0x380   :  { %s676_s23 = spop %675 }
 0x381   :  { %v582_v28 = vstv %s676_s23  ;;  %s678_s15 = spop %677 }
 0x382   :  { %v583_v29 = vadd.f32 %v582_v28, %v567_v27  ;;  %v601_v30 = vstv %s678_s15 }
 0x383   :  { %v602_v31 = vadd.f32 %v601_v30, %v586_v25 }
 0x384   :  { %585 = vst.msk [vmem:[#allocation15] sm:$0x1] %vm162_vm14, %v583_v29 }
 0x385   :  { %603 = vst.msk [vmem:[#allocation16] sm:$0x1] %vm162_vm14, %v602_v31  ;;  %622 = dma.vmem_to_hbm [thread:$0]  %s618_s7, 16, %s620_s22, [#allocation6]  }
 0x386   :  { %633 = dma.vmem_to_hbm [thread:$0]  %s629_s11, 16, %s631_s26, [#allocation17]  }
 0x3d9   :  { %v534_v33 = vpop.f32.mrf.mxu2 }
 0x3da   :  { %v546_v34 = vadd.f32 %v534_v33, %v468_v32 }
 0x3dc   :  { %550 = vst.msk [vmem:[%s1241_s17] sm:$0xff] %vm155_vm2, %v546_v34 }
 0x3e1   :  { %v537_v36 = vpop.f32.mrf.mxu2 }
 0x3e2   :  { %v547_v37 = vadd.f32 %v537_v36, %v469_v35 }
 0x3e4   :  { %551 = vst.msk [vmem:[%s1241_s17 + $0x8] sm:$0xff] %vm155_vm2, %v547_v37 }
 0x3e9   :  { %v540_v39 = vpop.f32.mrf.mxu2 }
 0x3ea   :  { %v548_v40 = vadd.f32 %v540_v39, %v470_v38 }
 0x3ec   :  { %552 = vst.msk [vmem:[%s1241_s17 + $0x10] sm:$0xff] %vm155_vm2, %v548_v40 }
 0x3f1   :  { %v543_v42 = vpop.f32.mrf.mxu2 }
 0x3f2   :  { %v549_v43 = vadd.f32 %v543_v42, %v471_v41 }
 0x3f4   :  { %553 = vst.msk [vmem:[%s1241_s17 + $0x18] sm:$0xff] %vm155_vm2, %v549_v43 }
 0x3f5   :  { %904 = dma.done.wait [#allocation6], 16  }
 0x3f6   :  { %905 = vsyncadd [#allocation6], 4294967280 }
 0x3f7   :  { %906 = dma.done.wait [#allocation17], 16  }
 0x3f8   :  { %907 = vsyncadd [#allocation17], 4294967280 }
 0x3f9   :  { %650 = vsyncpa [#allocation5], 1 }
 0x3fa   :  { %651 = vsyncpa [#allocation8], 1 }
 0x3fb   :  { %652 = vsyncpa [#allocation11], 1 }
 0x3fc   :  { %653 = vsyncpa [#allocation14], 1 }
 0x3fd   :  { %654 = vsyncpa [#allocation6], 1 }
 0x3fe   :  { %655 = vsyncpa [#allocation17], 1 }

// kernel: sgformer_forward.5
= control target key start
LH: loop header
LB: loop body
LE: loop exit
PB: predicated region body
PF: predicated region fallthrough
CT: control target
= control target key end

     0   :  { %s1392_s0 = inlined_call_operand.<no memory space> [shape: s32[1], index: 0, kind: input, shape index: {}]   ;;  %s1393_s1 = inlined_call_operand.vmem [shape: bf16[16,32], index: 1, kind: input, shape index: {}]   ;;  %s1394_s2 = inlined_call_operand.hbm [shape: f32[32,32], index: 2, kind: input, shape index: {}]   ;;  %s1395_s3 = inlined_call_operand.hbm [shape: f32[32,32], index: 3, kind: input, shape index: {}]   ;;  %s1396_s4 = inlined_call_operand.hbm [shape: f32[32,32], index: 4, kind: input, shape index: {}]   ;;  %s1397_s5 = inlined_call_operand.vmem [shape: f32[1,32], index: 5, kind: input, shape index: {}]   ;;  %s1398_s6 = inlined_call_operand.vmem [shape: f32[1,32], index: 6, kind: input, shape index: {}]   ;;  %s1399_s7 = inlined_call_operand.vmem [shape: f32[1,32], index: 7, kind: input, shape index: {}]   ;;  %s1400_s8 = inlined_call_operand.vmem [shape: f32[32,32], index: 8, kind: input, shape index: {}]   ;;  %s1401_s9 = inlined_call_operand.vmem [shape: f32[1,32], index: 9, kind: input, shape index: {}]   ;;  %s1402_s10 = inlined_call_operand.<no memory space> [shape: f32[1,1], index: 10, kind: input, shape index: {}]   ;;  %s1403_s12 = inlined_call_operand.vmem [shape: f32[1,32], index: 12, kind: input, shape index: {}]   ;;  %s1404_s13 = inlined_call_operand.vmem [shape: f32[1,32], index: 13, kind: input, shape index: {}]   ;;  %s1405_s14 = inlined_call_operand.hbm [shape: f32[32,32], index: 14, kind: input, shape index: {}]   ;;  %s1406_s15 = inlined_call_operand.hbm [shape: f32[32,32], index: 15, kind: input, shape index: {}]   ;;  %s1407_s16 = inlined_call_operand.hbm [shape: f32[32,32], index: 16, kind: input, shape index: {}]   ;;  %s1408_s17 = inlined_call_operand.vmem [shape: f32[1,32], index: 17, kind: input, shape index: {}]   ;;  %s1409_s18 = inlined_call_operand.vmem [shape: f32[1,32], index: 18, kind: input, shape index: {}]   ;;  %s1410_s19 = inlined_call_operand.vmem [shape: f32[1,32], index: 19, kind: input, shape index: {}]   ;;  %s1411_s20 = inlined_call_operand.vmem [shape: bf16[16,32], index: 20, kind: output, shape index: {0}]   ;;  %s1412_s21 = inlined_call_operand.vmem [shape: f32[32,32], index: 21, kind: output, shape index: {1}]   ;;  %s1413_s22 = inlined_call_operand.vmem [shape: f32[1,32], index: 22, kind: output, shape index: {2}]   ;;  %s1414_s23 = inlined_call_operand.hbm [shape: f32[1,1], index: 23, kind: output, shape index: {3}]   ;;  %s1415_s24 = inlined_call_operand.hbm [shape: f32[1,1], index: 24, kind: output, shape index: {4}]   ;;  %s1416_s11 = inlined_call_operand.<no memory space> [shape: f32[1,1], index: 11, kind: input, shape index: {}]  }
   0x1   :  { %1419 = sst [smem:[#allocation26_spill]] %s1392_s0  ;;  %v31_v0 = vstv %s1402_s10  ;;  %v33_v1 = vstv %s1416_s11 }
   0x2   :  { %1420 = sst [smem:[#allocation27_spill]] %s1393_s1  ;;  %32 = vst [vmem:[#allocation4] sm:$0x1] %v31_v0 }
   0x3   :  { %1421 = sst [smem:[#allocation28_spill]] %s1394_s2  ;;  %34 = vst [vmem:[#allocation5] sm:$0x1] %v33_v1 }
   0x4   :  { %1422 = sst [smem:[#allocation29_spill]] %s1395_s3 }
   0x5   :  { %1423 = sst [smem:[#allocation30_spill]] %s1396_s4 }
   0x6   :  { %1424 = sst [smem:[#allocation31_spill]] %s1397_s5 }
   0x7   :  { %1425 = sst [smem:[#allocation32_spill]] %s1399_s7 }
   0x8   :  { %1426 = sst [smem:[#allocation33_spill]] %s1400_s8 }
   0x9   :  { %35 = vsyncpa [#allocation7], 0 }
   0xa   :  { %36 = vsyncpa [#allocation10], 0 }
   0xb   :  { %37 = vsyncpa [#allocation13], 0 }
   0xc   :  { %38 = vsyncpa [#allocation16], 0 }
   0xd   :  { %39 = vsyncpa [#allocation8], 0 }
   0xe   :  { %40 = vsyncpa [#allocation19], 0  ;;  %s1427_s29 = sld [smem:[#allocation29_spill]]  ;;  %s1030_s7 = smov [#allocation9]  }
   0xf   :  { %s62_s30 = sshll.u32 %s1030_s7, 4  ;;  %s104_s11 = sshll.u32 %s1405_s14, 4  ;;  %s63_s30 = int_to_ptr.vmem [resolvable:$true] %s62_s30  ;;  %s105_s11 = int_to_ptr.hbm [resolvable:$true] %s104_s11 }
  0x10   :  { %s1031_s25 = smov 128   ;;  %s1032_s8 = smov 8  }
  0x11   :  { %s1033_s4 = smov [#allocation12]   ;;  %s1428_s27 = sld [smem:[#allocation28_spill]] }
  0x12   :  { %s106_s1 = sshll.u32 %s1033_s4, 4  ;;  %s1429_s6 = sld [smem:[#allocation30_spill]]  ;;  %s107_s1 = int_to_ptr.vmem [resolvable:$true] %s106_s1 }
  0x13   :  { %112 = dma.hbm_to_vmem [thread:$0]  %s105_s11, 512, %s107_s1, [#allocation13], %s1031_s25, %s1031_s25, %s1032_s8  }
  0x14   :  { %s60_s0 = sshll.u32 %s1427_s29, 4  ;;  %s1034_s7 = smov [#allocation6]   ;;  %s61_s0 = int_to_ptr.hbm [resolvable:$true] %s60_s0 }
  0x15   :  { %68 = dma.hbm_to_vmem [thread:$0]  %s61_s0, 512, %s63_s30, [#allocation10], %s1031_s25, %s1031_s25, %s1032_s8  }
  0x16   :  { %s49_s10 = sshll.u32 %s1034_s7, 4  ;;  %s1035_s0 = smov [#allocation11]   ;;  %s50_s10 = int_to_ptr.vmem [resolvable:$true] %s49_s10 }
  0x17   :  { %s47_s28 = sshll.u32 %s1428_s27, 4  ;;  %s75_s30 = sshll.u32 %s1035_s0, 4  ;;  %s48_s28 = int_to_ptr.hbm [resolvable:$true] %s47_s28  ;;  %s76_s30 = int_to_ptr.vmem [resolvable:$true] %s75_s30 }
  0x18   :  { %s73_s29 = sshll.u32 %s1429_s6, 4  ;;  %s117_s5 = sshll.u32 %s1406_s15, 4  ;;  %s74_s29 = int_to_ptr.hbm [resolvable:$true] %s73_s29  ;;  %s118_s5 = int_to_ptr.hbm [resolvable:$true] %s117_s5 }
  0x19   :  { %55 = dma.hbm_to_vmem [thread:$0]  %s48_s28, 512, %s50_s10, [#allocation7], %s1031_s25, %s1031_s25, %s1032_s8  }
  0x1a   :  { %81 = dma.hbm_to_vmem [thread:$0]  %s74_s29, 512, %s76_s30, [#allocation10], %s1031_s25, %s1031_s25, %s1032_s8  }
  0x1b   :  { %s130_s26 = sshll.u32 %s1407_s16, 4  ;;  %s1036_s27 = smov [#allocation14]   ;;  %s131_s26 = int_to_ptr.hbm [resolvable:$true] %s130_s26 }
  0x1c   :  { %s119_s14 = sshll.u32 %s1036_s27, 4  ;;  %s1037_s28 = smov [#allocation15]   ;;  %s120_s14 = int_to_ptr.vmem [resolvable:$true] %s119_s14 }
  0x1d   :  { %125 = dma.hbm_to_vmem [thread:$0]  %s118_s5, 512, %s120_s14, [#allocation13], %s1031_s25, %s1031_s25, %s1032_s8  }
  0x1e   :  { %s132_s15 = sshll.u32 %s1037_s28, 4  ;;  %s133_s15 = int_to_ptr.vmem [resolvable:$true] %s132_s15 }
  0x1f   :  { %138 = dma.hbm_to_vmem [thread:$0]  %s131_s26, 512, %s133_s15, [#allocation16], %s1031_s25, %s1031_s25, %s1032_s8  }
  0x20   :  { %1018 = dma.done.wait [#allocation7], 512  }
  0x21   :  { %1019 = vsyncadd [#allocation7], 4294966784 }
  0x22   :  { %1020 = dma.done.wait [#allocation10], 1024  }
  0x23   :  { %1021 = vsyncadd [#allocation10], 4294966272 }
  0x24   :  { %1022 = dma.done.wait [#allocation13], 1024  }
  0x25   :  { %1023 = vsyncadd [#allocation13], 4294966272 }
  0x26   :  { %1024 = dma.done.wait [#allocation16], 512  }
  0x27   :  { %1025 = vsyncadd [#allocation16], 4294966784  ;;  %v1038_v2 = vmov 0   ;;  %v192_v3 = vld [vmem:[#allocation6 + $0x18] sm:$0xff]  ;;  %v191_v4 = vld [vmem:[#allocation6 + $0x10] sm:$0xff]  ;;  %s1430_s6 = sld [smem:[#allocation27_spill]] }
  0x28   :  { %803 = vset.pattern.permute.xlu0 %v1038_v2  ;;  %804 = vset.pattern.permute.xlu1 %v1038_v2  ;;  %v190_v5 = vld [vmem:[#allocation6 + $0x8] sm:$0xff]  ;;  %v269_v7 = vld [vmem:[#allocation5] sm:$0x1]  ;;  %v189_v8 = vld [vmem:[#allocation6] sm:$0xff]  ;;  %vm173_vm0 = vcmask 261120   ;;  %s1431_s29 = sld [smem:[#allocation33_spill]] }
  0x29   :  { %216 = vmatpush.msra.mxu0 %v192_v3  ;;  %812 = vrsqrt.f32 %v269_v7  ;;  %v258_v9 = vld [vmem:[#allocation4] sm:$0x1]  ;;  %vm276_vm1 = vweird.f32 %v269_v7  ;;  %v229_v29 = vld [vmem:[#allocation11 + $0x10] sm:$0xff]  ;;  %v228_v30 = vld [vmem:[#allocation11 + $0x8] sm:$0xff]  ;;  %s1432_s5 = sld [smem:[#allocation31_spill]]  ;;  %s729_s10 = sshll.u32 %s1414_s23, 4  ;;  %s730_s10 = int_to_ptr.hbm [resolvable:$true] %s729_s10 }
  0x2a   :  { %814 = vrsqrt.f32 %v258_v9  ;;  %vm265_vm4 = vweird.f32 %v258_v9  ;;  %v230_v28 = vld [vmem:[#allocation11 + $0x18] sm:$0xff]  ;;  %v227_v31 = vld [vmem:[#allocation11] sm:$0xff]  ;;  %s1433_s28 = sld [smem:[#allocation26_spill]]  ;;  %s1042_s0 = smov [#allocation18]  }
  0x2b   :  { %217 = vmatpush.msra.mxu0 %v191_v4  ;;  %247 = vmatpush.msra.mxu1 %v230_v28  ;;  %v302_v37 = vld [vmem:[%s1401_s9] sm:$0x1]  ;;  %s738_s30 = sshll.u32 %s1042_s0, 4  ;;  %s740_s11 = sshll.u32 %s1415_s24, 4  ;;  %s739_s30 = int_to_ptr.vmem [resolvable:$true] %s738_s30  ;;  %s741_s11 = int_to_ptr.hbm [resolvable:$true] %s740_s11 }
  0x2d   :  { %v783_v6 = vld [vmem:[%s1430_s6] sm:$0xff]   ;;  %218 = vmatpush.msra.mxu0 %v190_v5  ;;  %248 = vmatpush.msra.mxu1 %v229_v29  ;;  %s1434_s6 = sld [smem:[#allocation32_spill]] }
  0x2e   :  { %v1213_v10 = vunpack.c.l.bf16 %v783_v6  ;;  %v1217_v16 = vunpack.c.h.bf16 %v783_v6  ;;  %v291_v33 = vld [vmem:[%s1431_s29 + $0x18] sm:$0xff]  ;;  %v290_v38 = vld [vmem:[%s1431_s29 + $0x10] sm:$0xff]  ;;  %v289_v41 = vld [vmem:[%s1431_s29 + $0x8] sm:$0xff] }
  0x2f   :  { %219 = vmatpush.msra.mxu0 %v189_v8  ;;  %v813_v11 = vpop.eup %812  ;;  %249 = vmatpush.msra.mxu1 %v228_v30  ;;  %v805_v39 = vld [vmem:[%s1432_s5] ss:$0 sm:$0xff] }
  0x30   :  { %764 = vmatmul.msk.f32.vlgmr.msra.gmra.mxu0 %vm173_vm0, %v1213_v10  ;;  %v815_v12 = vpop.eup %814  ;;  %v271_v13 = vmul.f32 %v813_v11, %v269_v7  ;;  %vm277_vm2 = vweird.f32 %v813_v11  ;;  %v288_v44 = vld [vmem:[%s1431_s29] sm:$0xff]  ;;  %s188_s15 = scvt.s32.f32 %s1433_s28 }
  0x31   :  { %v260_v14 = vmul.f32 %v815_v12, %v258_v9  ;;  %vm278_vm3 = vmor %vm276_vm1, %vm277_vm2  ;;  %vm266_vm5 = vweird.f32 %v815_v12  ;;  %250 = vmatpush.msra.mxu1 %v227_v31  ;;  %v386_v31 = vmul.f32 0.5, %v1213_v10 }
  0x32   :  { %v272_v15 = vmul.f32 %v813_v11, %v271_v13  ;;  %vm267_vm6 = vmor %vm265_vm4, %vm266_vm5  ;;  %766 = vmatmul.msk.f32.vlgmr.msra.gmra.mxu1 %vm173_vm0, %v1213_v10  ;;  %v309_v58 = vstv %s188_s15 }
  0x33   :  { %v261_v17 = vmul.f32 %v815_v12, %v260_v14  ;;  %v806_v0 = vld [vmem:[%s1434_s6] ss:$0 sm:$0xff] }
  0x34   :  { %v273_v18 = vmul.f32 0.5, %v272_v15 }
  0x35   :  { %v262_v19 = vmul.f32 0.5, %v261_v17 }
  0x36   :  { %v274_v20 = vsub.f32 1.5, %v273_v18 }
  0x37   :  { %v263_v21 = vsub.f32 1.5, %v262_v19 }
  0x38   :  { %765 = vmatmul.msk.f32.gmra.mxu0 %vm173_vm0, %v1217_v16  ;;  %v275_v22 = vmul.f32 %v813_v11, %v274_v20 }
  0x39   :  { %v264_v24 = vmul.f32 %v815_v12, %v263_v21 }
  0x3a   :  { %v279_v23 = vsel %vm278_vm3, %v813_v11, %v275_v22  ;;  %767 = vmatmul.msk.f32.gmra.mxu1 %vm173_vm0, %v1217_v16 }
  0x3b   :  { %v293_v25 = vperm.slane %v279_v23, 0  ;;  %304 = vperm.xlu1 %804, %v279_v23   ;;  %v268_v26 = vsel %vm267_vm6, %v815_v12, %v264_v24  ;;  %vm455_vm6 = vcmask 257024  }
  0x3c   :  { %v281_v27 = vperm.slane %v268_v26, 0 }
  0x3d   :  { %295 = vperm.xlu0 %803, %v293_v25  }
  0x45   :  { %283 = vperm.xlu0 %803, %v281_v27  }
  0xad   :  { %v221_v32 = vpop.f32.mrf.mxu0  ;;  %v305_v34 = vpop.permute.xlu1 %304 }
  0xae   :  { %v307_v35 = vperm.slane %v305_v34, 0  ;;  %v222_v45 = vadd.f32 %v805_v39, %v221_v32 }
  0xaf   :  { %v296_v36 = vpop.permute.xlu0 %295  ;;  %v252_v63 = vpop.f32.mrf.mxu1 }
  0xb0   :  { %v301_v40 = vmul.f32 %v296_v36, %v291_v33  ;;  %v308_v42 = vmul.f32 %v307_v35, %v302_v37  ;;  %v300_v43 = vmul.f32 %v296_v36, %v290_v38  ;;  %v299_v47 = vmul.f32 %v296_v36, %v289_v41 }
  0xb1   :  { %v298_v50 = vmul.f32 %v296_v36, %v288_v44  ;;  %v253_v5 = vadd.f32 %v806_v0, %v252_v63  ;;  %v387_v36 = vmul.f32 0.5, %v1217_v16  ;;  %v509_v63 = vld [vmem:[#allocation14 + $0x8] sm:$0xff] }
  0xb2   :  { %330 = vmatpush.msra.mxu3 %v301_v40  ;;  %v342_v49 = vperm.slane %v308_v42, 0  ;;  %v1039_v42 = vmov 32.0  }
  0xb3   :  { %v310_v14 = vmul.f32 %v309_v58, %v253_v5 }
  0xb4   :  { %331 = vmatpush.msra.mxu3 %v300_v43 }
  0xb5   :  { %v224_v46 = vpop.f32.mrf.mxu0 }
  0xb6   :  { %v225_v48 = vadd.f32 %v805_v39, %v224_v46  ;;  %332 = vmatpush.msra.mxu3 %v299_v47 }
  0xb7   :  { %v284_v51 = vpop.permute.xlu0 %283  ;;  %v255_v6 = vpop.f32.mrf.mxu1 }
  0xb8   :  { %v286_v52 = vmul.f32 %v284_v51, %v222_v45  ;;  %v287_v53 = vmul.f32 %v284_v51, %v225_v48  ;;  %333 = vmatpush.msra.mxu3 %v298_v50  ;;  %v256_v12 = vadd.f32 %v806_v0, %v255_v6  ;;  %v472_v0 = vld [vmem:[#allocation12 + $0x8] sm:$0xff] }
  0xba   :  { %768 = vmatmul.msk.f32.vlgmr.msra.gmra.mxu3 %vm173_vm0, %v286_v52  ;;  %v345_v54 = vmul.f32 %v342_v49, %v287_v53  ;;  %v344_v55 = vmul.f32 %v342_v49, %v286_v52  ;;  %v311_v22 = vmul.f32 %v309_v58, %v256_v12 }
  0xbc   :  { %v349_v56 = vsel %vm173_vm0, %v345_v54, 0.0  ;;  %v346_v57 = vsel %vm173_vm0, %v344_v55, 0.0 }
  0xbd   :  { %350 = vadd.xlane.f32.xlu2 %v349_v56  ;;  %347 = vadd.xlane.f32.xlu1 %v346_v57  ;;  %v511_v57 = vld [vmem:[#allocation14 + $0x18] sm:$0xff] }
  0xbe   :  { %528 = vmatpush.msrb.mxu0 %v511_v57 }
  0xc2   :  { %769 = vmatmul.msk.f32.gmra.mxu3 %vm173_vm0, %v287_v53 }
 0x130   :  { %v351_v59 = vpop.xlane.xlu2 %350  ;;  %v348_v60 = vpop.xlane.xlu1 %347 }
 0x131   :  { %v353_v61 = vadd.f32 %v351_v59, %v309_v58  ;;  %v352_v62 = vadd.f32 %v348_v60, %v309_v58  ;;  %v474_v58 = vld [vmem:[#allocation12 + $0x18] sm:$0xff]  ;;  %v510_v60 = vld [vmem:[#allocation14 + $0x10] sm:$0xff] }
 0x132   :  { %v542_v59 = vld [vmem:[#allocation15 + $0x18] sm:$0xff]  ;;  %497 = vmatpush.msrb.mxu3 %v474_v58  ;;  %529 = vmatpush.msrb.mxu0 %v510_v60 }
 0x133   :  { %816 = vrcp.f32 %v353_v61  ;;  %v365_v11 = vand.u32 2147483648, %v352_v62  ;;  %v363_v17 = vand.u32 2147483647, %v352_v62  ;;  %vm359_vm9 = vweird.f32 %v352_v62  ;;  %559 = vmatpush.msrb.mxu1 %v542_v59 }
 0x134   :  { %818 = vrcp.f32 %v352_v62  ;;  %v380_v20 = vand.u32 2147483648, %v353_v61  ;;  %vm374_vm11 = vweird.f32 %v353_v61  ;;  %v378_v23 = vand.u32 2147483647, %v353_v61  ;;  %530 = vmatpush.msrb.mxu0 %v509_v63 }
 0x135   :  { %v366_v21 = vor.u32 1.1754944e-38, %v365_v11  ;;  %vm364_vm12 = vcmp.eq.f32.partialorder %v363_v17, 8.507059e+37  ;;  %820 = vrcp.f32 %v1039_v42 }
 0x136   :  { %v381_v30 = vor.u32 1.1754944e-38, %v380_v20  ;;  %vm379_vm14 = vcmp.eq.f32.partialorder %v378_v23, 8.507059e+37 }
 0x139   :  { %v817_v1 = vpop.eup %816 }
 0x13a   :  { %v819_v2 = vpop.eup %818  ;;  %v370_v3 = vmul.f32 %v817_v1, %v353_v61  ;;  %vm375_vm8 = vweird.f32 %v817_v1  ;;  %v473_v61 = vld [vmem:[#allocation12 + $0x10] sm:$0xff] }
 0x13b   :  { %v355_v4 = vmul.f32 %v819_v2, %v352_v62  ;;  %vm360_vm7 = vweird.f32 %v819_v2  ;;  %vm376_vm13 = vmor %vm374_vm11, %vm375_vm8  ;;  %v821_v43 = vpop.eup %820  ;;  %v541_v62 = vld [vmem:[#allocation15 + $0x10] sm:$0xff]  ;;  %498 = vmatpush.msrb.mxu3 %v473_v61  ;;  %vm178_vm8 = vcmask 253952   ;;  %vm180_vm11 = vcmask 0  }
 0x13c   :  { %v371_v7 = vsub.f32 1.0, %v370_v3  ;;  %vm361_vm10 = vmor %vm359_vm9, %vm360_vm7  ;;  %v399_v10 = vmul.f32 32.0, %v821_v43  ;;  %vm403_vm15 = vweird.f32 %v821_v43  ;;  %560 = vmatpush.msrb.mxu1 %v541_v62  ;;  %v471_v3 = vld [vmem:[#allocation12] sm:$0xff] }
 0x13d   :  { %v356_v8 = vsub.f32 1.0, %v355_v4  ;;  %v335_v9 = vpop.f32.mrf.mxu3  ;;  %499 = vmatpush.msrb.mxu3 %v472_v0  ;;  %v539_v4 = vld [vmem:[#allocation15] sm:$0xff] }
 0x13e   :  { %v372_v13 = vmul.f32 %v817_v1, %v371_v7  ;;  %v336_v24 = vadd.f32 %v335_v9, %v310_v14  ;;  %v400_v44 = vsub.f32 1.0, %v399_v10 }
 0x13f   :  { %v357_v15 = vmul.f32 %v819_v2, %v356_v8  ;;  %500 = vmatpush.msrb.mxu3 %v471_v3 }
 0x140   :  { %v373_v18 = vadd.f32 %v817_v1, %v372_v13  ;;  %v401_v45 = vmul.f32 %v821_v43, %v400_v44 }
 0x141   :  { %v358_v19 = vadd.f32 %v819_v2, %v357_v15 }
 0x142   :  { %v377_v27 = vsel %vm376_vm13, %v817_v1, %v373_v18  ;;  %v402_v46 = vadd.f32 %v821_v43, %v401_v45  ;;  %v540_v1 = vld [vmem:[#allocation15 + $0x8] sm:$0xff] }
 0x143   :  { %v362_v25 = vsel %vm361_vm10, %v819_v2, %v358_v19  ;;  %v382_v34 = vsel %vm379_vm14, %v381_v30, %v377_v27  ;;  %v508_v2 = vld [vmem:[#allocation14] sm:$0xff]  ;;  %561 = vmatpush.msrb.mxu1 %v540_v1 }
 0x144   :  { %v367_v26 = vsel %vm364_vm12, %v366_v21, %v362_v25  ;;  %v404_v47 = vsel %vm403_vm15, %v821_v43, %v402_v46  ;;  %531 = vmatpush.msrb.mxu0 %v508_v2  ;;  %v807_v21 = vld [vmem:[%s1403_s12] ss:$0 sm:$0xff]  ;;  %vm616_vm12 = vcmask 130048  }
 0x145   :  { %v368_v28 = vmul.f32 %v367_v26, %v336_v24  ;;  %v338_v29 = vpop.f32.mrf.mxu3  ;;  %562 = vmatpush.msrb.mxu1 %v539_v4  ;;  %v808_v25 = vld [vmem:[%s1404_s13] ss:$0 sm:$0xff] }
 0x146   :  { %v339_v32 = vadd.f32 %v338_v29, %v311_v22 }
 0x147   :  { %v384_v33 = vmul.f32 0.5, %v368_v28 }
 0x148   :  { %v383_v35 = vmul.f32 %v382_v34, %v339_v32 }
 0x149   :  { %v388_v37 = vadd.f32 %v386_v31, %v384_v33 }
 0x14a   :  { %v385_v38 = vmul.f32 0.5, %v383_v35 }
 0x14b   :  { %v392_v39 = vsel %vm173_vm0, %v388_v37, 0.0 }
 0x14c   :  { %393 = vadd.xlane.f32.xlu2 %v392_v39  ;;  %v389_v40 = vadd.f32 %v387_v36, %v385_v38  ;;  %v459_v38 = vlaneseq }
 0x14e   :  { %v395_v41 = vsel %vm173_vm0, %v389_v40, 0.0  ;;  %v460_v39 = vshrl.u32 %v459_v38, 7 }
 0x14f   :  { %396 = vadd.xlane.f32.xlu0 %v395_v41  ;;  %v466_v41 = vstv %s1433_s28 }
 0x150   :  { %vm1313_vm9 = vcmp.lt.s32.totalorder %v460_v39, %v466_v41  ;;  %v461_v46 = vadd.s32 8, %v460_v39 }
 0x152   :  { %vm1325_vm10 = vcmp.lt.s32.totalorder %v461_v46, %v466_v41 }
 0x1bf   :  { %v394_v48 = vpop.xlane.xlu2 %393 }
 0x1c0   :  { %v405_v16 = vmul.f32 %v404_v47, %v394_v48 }
 0x1c2   :  { %v407_v49 = vsub.f32 %v388_v37, %v405_v16  ;;  %v397_v50 = vpop.xlane.xlu0 %396  ;;  %v1040_v37 = vmov 0.0   ;;  %v810_v16 = vld [vmem:[%s1410_s19] ss:$0 sm:$0xff] }
 0x1c3   :  { %v406_v51 = vmul.f32 %v404_v47, %v397_v50  ;;  %179 = vst.msk [vmem:[%s1413_s22] sm:$0x1] %vm178_vm8, %v1040_v37 }
 0x1c4   :  { %v409_v52 = vmul.f32 %v407_v49, %v407_v49  ;;  %174 = vst.msk [vmem:[%s1412_s21] sm:$0xff] %vm173_vm0, %v1040_v37 }
 0x1c5   :  { %v1257_v53 = vsub.f32 %v389_v40, %v406_v51  ;;  %175 = vst.msk [vmem:[%s1412_s21 + $0x8] sm:$0xff] %vm173_vm0, %v1040_v37  ;;  %v809_v40 = vld [vmem:[%s1409_s18] ss:$0 sm:$0xff] }
 0x1c6   :  { %v411_v54 = vsel %vm173_vm0, %v409_v52, 0.0  ;;  %176 = vst.msk [vmem:[%s1412_s21 + $0x10] sm:$0xff] %vm173_vm0, %v1040_v37 }
 0x1c7   :  { %412 = vadd.xlane.f32.xlu2 %v411_v54  ;;  %v410_v55 = vmul.f32 %v1257_v53, %v1257_v53  ;;  %177 = vst.msk [vmem:[%s1412_s21 + $0x18] sm:$0xff] %vm173_vm0, %v1040_v37 }
 0x1c8   :  { %181 = vst.msk [vmem:[#allocation17] sm:$0x1] %vm180_vm11, %v1040_v37 }
 0x1c9   :  { %v414_v56 = vsel %vm173_vm0, %v410_v55, 0.0  ;;  %182 = vst.msk [vmem:[#allocation18] sm:$0x1] %vm180_vm11, %v1040_v37 }
 0x1cc   :  { %v581_v46 = vld [vmem:[%s1412_s21 + $0x8] sm:$0xff] }
 0x1cf   :  { %415 = vadd.xlane.f32.xlu2 %v414_v56  ;;  %v679_v39 = vld [vmem:[#allocation17] sm:$0x1] }
 0x1d0   :  { %v698_v37 = vld [vmem:[#allocation18] sm:$0x1] }
 0x23a   :  { %v413_v5 = vpop.xlane.xlu2 %412 }
 0x23b   :  { %v417_v6 = vmul.f32 %v413_v5, %v404_v47 }
 0x23d   :  { %v419_v7 = vadd.f32 1e-05, %v417_v6 }
 0x23f   :  { %822 = vrsqrt.f32 %v419_v7  ;;  %vm427_vm2 = vweird.f32 %v419_v7 }
 0x242   :  { %v416_v8 = vpop.xlane.xlu2 %415 }
 0x243   :  { %v418_v9 = vmul.f32 %v416_v8, %v404_v47  ;;  %v811_v47 = vld [vmem:[%s1408_s17] ss:$0 sm:$0xff] }
 0x245   :  { %v823_v11 = vpop.eup %822  ;;  %v420_v12 = vadd.f32 1e-05, %v418_v9 }
 0x246   :  { %v422_v13 = vmul.f32 %v823_v11, %v419_v7  ;;  %vm428_vm1 = vweird.f32 %v823_v11 }
 0x247   :  { %824 = vrsqrt.f32 %v420_v12  ;;  %vm429_vm3 = vmor %vm427_vm2, %vm428_vm1  ;;  %vm437_vm5 = vweird.f32 %v420_v12 }
 0x248   :  { %v423_v14 = vmul.f32 %v823_v11, %v422_v13 }
 0x24a   :  { %v424_v15 = vmul.f32 0.5, %v423_v14 }
 0x24c   :  { %v425_v17 = vsub.f32 1.5, %v424_v15 }
 0x24d   :  { %v825_v18 = vpop.eup %824 }
 0x24e   :  { %v426_v19 = vmul.f32 %v823_v11, %v425_v17  ;;  %v432_v20 = vmul.f32 %v825_v18, %v420_v12  ;;  %vm438_vm4 = vweird.f32 %v825_v18  ;;  %v666_v17 = vld [vmem:[%s1413_s22] sm:$0x1] }
 0x24f   :  { %vm439_vm7 = vmor %vm437_vm5, %vm438_vm4 }
 0x250   :  { %v430_v22 = vsel %vm429_vm3, %v823_v11, %v426_v19  ;;  %v433_v23 = vmul.f32 %v825_v18, %v432_v20 }
 0x251   :  { %v441_v24 = vmul.f32 %v430_v22, %v407_v49 }
 0x252   :  { %v434_v26 = vmul.f32 0.5, %v433_v23 }
 0x253   :  { %v446_v27 = vmul.f32 %v807_v21, %v441_v24 }
 0x254   :  { %v435_v28 = vsub.f32 1.5, %v434_v26 }
 0x255   :  { %v451_v29 = vadd.f32 %v808_v25, %v446_v27 }
 0x256   :  { %v436_v30 = vmul.f32 %v825_v18, %v435_v28 }
 0x257   :  { %v453_v31 = vpack.c.bf16 %v451_v29, %v451_v29  ;;  %770 = vmatmul.msk.f32.vlgmr.msrb.gmra.mxu3 %vm173_vm0, %v451_v29  ;;  %772 = vmatmul.msk.f32.vlgmr.msrb.gmra.mxu0 %vm173_vm0, %v451_v29 }
 0x258   :  { %v440_v32 = vsel %vm439_vm7, %v825_v18, %v436_v30  ;;  %774 = vmatmul.msk.f32.vlgmr.msrb.gmra.mxu1 %vm173_vm0, %v451_v29 }
 0x259   :  { %v442_v33 = vmul.f32 %v440_v32, %v1257_v53  ;;  %456 = vst.msk [vmem:[%s1411_s20] sm:$0xf] %vm455_vm6, %v453_v31 }
 0x25b   :  { %v447_v34 = vmul.f32 %v807_v21, %v442_v33 }
 0x25d   :  { %v452_v35 = vadd.f32 %v808_v25, %v447_v34 }
 0x25f   :  { %v454_v36 = vpack.c.bf16 %v452_v35, %v452_v35  ;;  %771 = vmatmul.msk.f32.gmra.mxu3 %vm173_vm0, %v452_v35  ;;  %773 = vmatmul.msk.f32.gmra.mxu0 %vm173_vm0, %v452_v35 }
 0x260   :  { %775 = vmatmul.msk.f32.gmra.mxu1 %vm173_vm0, %v452_v35 }
 0x261   :  { %457 = vst.msk [vmem:[%s1411_s20 + $0x4] sm:$0xf] %vm455_vm6, %v454_v36 }
 0x2d4   :  { %v533_v42 = vpop.f32.mrf.mxu0 }
 0x2d5   :  { %v534_v10 = vadd.f32 %v809_v40, %v533_v42  ;;  %v564_v44 = vpop.f32.mrf.mxu1 }
 0x2d6   :  { %v565_v57 = vadd.f32 %v810_v16, %v564_v44 }
 0x2d7   :  { %v576_v45 = vsel %vm1313_vm9, %v534_v10, 0.0  ;;  %v580_v10 = vld [vmem:[%s1412_s21] sm:$0xff] }
 0x2d8   :  { %584 = vxpose.xlu2.b32.start [1/2] (short) (narrow) %v576_v45, 32  ;;  %v699_v54 = vmul.f32 %v576_v45, %v576_v45  ;;  %v667_v58 = vsel %vm173_vm0, %v576_v45, 0.0 }
 0x2da   :  { %v502_v48 = vpop.f32.mrf.mxu3  ;;  %v701_v0 = vsel %vm173_vm0, %v699_v54, 0.0 }
 0x2db   :  { %v503_v51 = vadd.f32 %v811_v47, %v502_v48 }
 0x2dc   :  { %v536_v49 = vpop.f32.mrf.mxu0 }
 0x2dd   :  { %v537_v52 = vadd.f32 %v809_v40, %v536_v49  ;;  %v567_v53 = vpop.f32.mrf.mxu1  ;;  %v574_v61 = vsel %vm1313_vm9, %v503_v51, 0.0  ;;  %v583_v51 = vld [vmem:[%s1412_s21 + $0x18] sm:$0xff] }
 0x2de   :  { %v568_v55 = vadd.f32 %v810_v16, %v567_v53  ;;  %v680_v5 = vmul.f32 %v574_v61, %v574_v61  ;;  %v582_v16 = vld [vmem:[%s1412_s21 + $0x10] sm:$0xff] }
 0x2df   :  { %v577_v56 = vsel %vm1325_vm10, %v537_v52, 0.0 }
 0x2e0   :  { %776 = vmatpush.msk.msra.mxu2 %vm1325_vm10, %v568_v55  ;;  %585 = vxpose.xlu2.b32.end [2/2] (short) (narrow) %v577_v56, 32  ;;  %v668_v59 = vsel %vm173_vm0, %v577_v56, 0.0  ;;  %v700_v60 = vmul.f32 %v577_v56, %v577_v56  ;;  %v682_v11 = vsel %vm173_vm0, %v680_v5, 0.0 }
 0x2e1   :  { %v669_v62 = vadd.f32 %v668_v59, %v667_v58 }
 0x2e2   :  { %777 = vmatpush.msk.msra.mxu2 %vm1313_vm9, %v565_v57  ;;  %v505_v63 = vpop.f32.mrf.mxu3  ;;  %v702_v1 = vsel %vm173_vm0, %v700_v60, 0.0 }
 0x2e3   :  { %v670_v2 = vrot.slane %v669_v62, 4  ;;  %v506_v3 = vadd.f32 %v811_v47, %v505_v63  ;;  %v703_v4 = vadd.f32 %v702_v1, %v701_v0 }
 0x2e5   :  { %v671_v6 = vadd.f32 %v670_v2, %v669_v62  ;;  %v575_v7 = vsel %vm1325_vm10, %v506_v3, 0.0  ;;  %704 = vadd.xlane.f32.xlu0 %v703_v4 }
 0x2e6   :  { %v681_v8 = vmul.f32 %v575_v7, %v575_v7 }
 0x2e7   :  { %v672_v9 = vrot.slane %v671_v6, 2 }
 0x2e8   :  { %v683_v12 = vsel %vm173_vm0, %v681_v8, 0.0 }
 0x2e9   :  { %v673_v13 = vadd.f32 %v672_v9, %v671_v6  ;;  %v684_v14 = vadd.f32 %v683_v12, %v682_v11 }
 0x2eb   :  { %v674_v15 = vrot.slane %v673_v13, 1  ;;  %685 = vadd.xlane.f32.xlu1 %v684_v14 }
 0x2ed   :  { %v675_v18 = vadd.f32 %v674_v15, %v673_v13 }
 0x2ef   :  { %v676_v19 = vadd.f32 %v675_v18, %v666_v17 }
 0x2f1   :  { %678 = vst.msk [vmem:[%s1413_s22] sm:$0x1] %vm178_vm8, %v676_v19  ;;  %s1041_s22 = smov [#allocation17]  }
 0x2f2   :  { %s727_s7 = sshll.u32 %s1041_s22, 4  ;;  %s728_s7 = int_to_ptr.vmem [resolvable:$true] %s727_s7 }
 0x358   :  { %v705_v20 = vpop.xlane.xlu0 %704 }
 0x359   :  { %v706_v21 = vrot.slane %v705_v20, 4 }
 0x35b   :  { %v707_v22 = vadd.f32 %v706_v21, %v705_v20 }
 0x35d   :  { %v708_v23 = vrot.slane %v707_v22, 2 }
 0x35e   :  { %v686_v24 = vpop.xlane.xlu1 %685 }
 0x35f   :  { %v687_v25 = vrot.slane %v686_v24, 4  ;;  %v709_v27 = vadd.f32 %v708_v23, %v707_v22 }
 0x361   :  { %v688_v26 = vadd.f32 %v687_v25, %v686_v24  ;;  %v710_v30 = vrot.slane %v709_v27, 1 }
 0x363   :  { %v689_v28 = vrot.slane %v688_v26, 2  ;;  %v711_v33 = vadd.f32 %v710_v30, %v709_v27 }
 0x365   :  { %v690_v29 = vadd.f32 %v689_v28, %v688_v26 }
 0x367   :  { %v691_v31 = vrot.slane %v690_v29, 1 }
 0x369   :  { %v692_v32 = vadd.f32 %v691_v31, %v690_v29 }
 0x36b   :  { %786 = vpush %v692_v32 }
 0x36c   :  { %788 = vpush %v711_v33 }
 0x371   :  { %v600_v34 = vpop.trf.xlu2 }
 0x372   :  { %778 = vmatmul.msk.f32.vlgmr.msra.gmra.mxu2 %vm616_vm12, %v600_v34 }
 0x379   :  { %v601_v35 = vpop.trf.xlu2 }
 0x37a   :  { %779 = vmatmul.msk.f32.gmra.mxu2 %vm616_vm12, %v601_v35 }
 0x381   :  { %v602_v36 = vpop.trf.xlu2 }
 0x382   :  { %780 = vmatmul.msk.f32.gmra.mxu2 %vm616_vm12, %v602_v36 }
 0x389   :  { %v603_v38 = vpop.trf.xlu2 }
 0x38a   :  { %781 = vmatmul.msk.f32.gmra.mxu2 %vm616_vm12, %v603_v38 }
 0x39c   :  { %s787_s3 = spop %786 }
 0x39d   :  { %v694_v40 = vstv %s787_s3  ;;  %s789_s1 = spop %788 }
 0x39e   :  { %v695_v41 = vadd.f32 %v694_v40, %v679_v39  ;;  %v713_v42 = vstv %s789_s1 }
 0x39f   :  { %v714_v43 = vadd.f32 %v713_v42, %v698_v37 }
 0x3a0   :  { %697 = vst.msk [vmem:[#allocation17] sm:$0x1] %vm180_vm11, %v695_v41 }
 0x3a1   :  { %715 = vst.msk [vmem:[#allocation18] sm:$0x1] %vm180_vm11, %v714_v43  ;;  %732 = dma.vmem_to_hbm [thread:$0]  %s728_s7, 16, %s730_s10, [#allocation8]  }
 0x3a2   :  { %743 = dma.vmem_to_hbm [thread:$0]  %s739_s30, 16, %s741_s11, [#allocation19]  }
 0x3f5   :  { %v646_v44 = vpop.f32.mrf.mxu2 }
 0x3f6   :  { %v658_v45 = vadd.f32 %v646_v44, %v580_v10 }
 0x3f8   :  { %662 = vst.msk [vmem:[%s1412_s21] sm:$0xff] %vm173_vm0, %v658_v45 }
 0x3fd   :  { %v649_v47 = vpop.f32.mrf.mxu2 }
 0x3fe   :  { %v659_v48 = vadd.f32 %v649_v47, %v581_v46 }
 0x400   :  { %663 = vst.msk [vmem:[%s1412_s21 + $0x8] sm:$0xff] %vm173_vm0, %v659_v48 }
 0x405   :  { %v652_v49 = vpop.f32.mrf.mxu2 }
 0x406   :  { %v660_v50 = vadd.f32 %v652_v49, %v582_v16 }
 0x408   :  { %664 = vst.msk [vmem:[%s1412_s21 + $0x10] sm:$0xff] %vm173_vm0, %v660_v50 }
 0x40d   :  { %v655_v52 = vpop.f32.mrf.mxu2 }
 0x40e   :  { %v661_v53 = vadd.f32 %v655_v52, %v583_v51 }
 0x410   :  { %665 = vst.msk [vmem:[%s1412_s21 + $0x18] sm:$0xff] %vm173_vm0, %v661_v53 }
 0x411   :  { %1026 = dma.done.wait [#allocation8], 16  }
 0x412   :  { %1027 = vsyncadd [#allocation8], 4294967280 }
 0x413   :  { %1028 = dma.done.wait [#allocation19], 16  }
 0x414   :  { %1029 = vsyncadd [#allocation19], 4294967280 }
 0x415   :  { %758 = vsyncpa [#allocation7], 1 }
 0x416   :  { %759 = vsyncpa [#allocation10], 1 }
 0x417   :  { %760 = vsyncpa [#allocation13], 1 }
 0x418   :  { %761 = vsyncpa [#allocation16], 1 }
 0x419   :  { %762 = vsyncpa [#allocation8], 1 }
 0x41a   :  { %763 = vsyncpa [#allocation19], 1 }

// kernel: sgformer_forward.7
= control target key start
LH: loop header
LB: loop body
LE: loop exit
PB: predicated region body
PF: predicated region fallthrough
CT: control target
= control target key end

     0   :  { %vm28_vm0 = vcmask 261120   ;;  %v160_v1 = vmov 0.0   ;;  %vm48_vm1 = vcmask 130048   ;;  %vm129_vm2 = vcmask 31744   ;;  %s235_s1 = inlined_call_operand.vmem [shape: bf16[16,32], index: 1, kind: input, shape index: {}]   ;;  %s236_s0 = inlined_call_operand.vmem [shape: bf16[16,16], index: 0, kind: input, shape index: {}]   ;;  %s237_s3 = inlined_call_operand.vmem [shape: f32[1,32], index: 3, kind: input, shape index: {}]   ;;  %s238_s5 = inlined_call_operand.vmem [shape: f32[1,4], index: 5, kind: input, shape index: {}]   ;;  %s239_s4 = inlined_call_operand.vmem [shape: f32[32,4], index: 4, kind: input, shape index: {}]   ;;  %s240_s2 = inlined_call_operand.vmem [shape: bf16[16,32], index: 2, kind: input, shape index: {}]   ;;  %s241_s6 = inlined_call_operand.vmem [shape: f32[16,4], index: 6, kind: output, shape index: {}]  }
   0x1   :  { %v148_v0 = vld [vmem:[%s235_s1] sm:$0xff]  ;;  %29 = vst.msk [vmem:[#allocation2] sm:$0xff] %vm28_vm0, %v160_v1  ;;  %v95_v3 = vld [vmem:[%s239_s4 + $0x18] sm:$0xff]  ;;  %v94_v4 = vld [vmem:[%s239_s4 + $0x10] sm:$0xff] }
   0x2   :  { %v147_v2 = vld [vmem:[%s236_s0] sm:$0xff]  ;;  %30 = vst.msk [vmem:[#allocation2 + $0x8] sm:$0xff] %vm28_vm0, %v160_v1  ;;  %59 = vmatpush.bf16.msra.mxu0 %v148_v0  ;;  %118 = vmatpush.msra.mxu1 %v95_v3  ;;  %v93_v5 = vld [vmem:[%s239_s4 + $0x8] sm:$0xff] }
   0x3   :  { %153 = vmatpush.msra.mxu2 %v95_v3  ;;  %v92_v6 = vld [vmem:[%s239_s4] sm:$0xff] }
   0x4   :  { %119 = vmatpush.msra.mxu1 %v94_v4  ;;  %v150_v10 = vld [vmem:[%s240_s2] sm:$0xff]  }
   0x5   :  { %144 = vmatmul.msk.bf16.vlgmr.msra.gmra.mxu0 %vm48_vm1, %v147_v2  ;;  %154 = vmatpush.msra.mxu2 %v94_v4  ;;  %v158_v12 = vld [vmem:[%s237_s3] ss:$0 sm:$0xff]  ;;  %v151_v13 = vunpack.c.l.bf16 %v150_v10  ;;  %v152_v21 = vunpack.c.h.bf16 %v150_v10 }
   0x6   :  { %120 = vmatpush.msra.mxu1 %v93_v5  ;;  %v159_v27 = vld [vmem:[%s238_s5] ss:$0 sm:$0xff] }
   0x7   :  { %155 = vmatpush.msra.mxu2 %v93_v5  ;;  %v88_v18 = vmul.f32 0.5, %v151_v13  ;;  %v89_v24 = vmul.f32 0.5, %v152_v21 }
   0x8   :  { %121 = vmatpush.msra.mxu1 %v92_v6  ;;  %v31_v7 = vld [vmem:[#allocation2] sm:$0xff] }
   0x9   :  { %156 = vmatpush.msra.mxu2 %v92_v6  ;;  %v32_v11 = vld [vmem:[#allocation2 + $0x8] sm:$0xff] }
  0x82   :  { %v61_v8 = vpop.f32.mrf.mxu0 }
  0x83   :  { %v66_v9 = vadd.f32 %v61_v8, %v31_v7 }
  0x85   :  { %69 = vst.msk [vmem:[#allocation2] sm:$0xff] %vm28_vm0, %v66_v9 }
  0x8a   :  { %v63_v14 = vpop.f32.mrf.mxu0 }
  0x8b   :  { %v67_v15 = vadd.f32 %v63_v14, %v32_v11 }
  0x8c   :  { %v74_v16 = vld [vmem:[#allocation2] sm:$0xff] }
  0x8d   :  { %70 = vst.msk [vmem:[#allocation2 + $0x8] sm:$0xff] %vm28_vm0, %v67_v15  ;;  %v80_v17 = vadd.f32 %v158_v12, %v74_v16 }
  0x8f   :  { %v82_v19 = vmul.f32 0.5, %v80_v17 }
  0x91   :  { %v90_v20 = vadd.f32 %v88_v18, %v82_v19 }
  0x93   :  { %145 = vmatmul.msk.f32.vlgmr.msra.gmra.mxu1 %vm28_vm0, %v90_v20 }
  0x94   :  { %v75_v22 = vld [vmem:[#allocation2 + $0x8] sm:$0xff] }
  0x95   :  { %v81_v23 = vadd.f32 %v158_v12, %v75_v22 }
  0x97   :  { %v83_v25 = vmul.f32 0.5, %v81_v23 }
  0x99   :  { %v91_v26 = vadd.f32 %v89_v24, %v83_v25 }
  0x9b   :  { %146 = vmatmul.msk.f32.vlgmr.msra.gmra.mxu2 %vm28_vm0, %v91_v26 }
 0x110   :  { %v123_v28 = vpop.f32.mrf.mxu1 }
 0x111   :  { %v124_v29 = vadd.f32 %v159_v27, %v123_v28 }
 0x113   :  { %130 = vst.msk [vmem:[%s241_s6] sm:$0xff] %vm129_vm2, %v124_v29 }
 0x11e   :  { %v126_v30 = vpop.f32.mrf.mxu2 }
 0x11f   :  { %v127_v31 = vadd.f32 %v159_v27, %v126_v30 }
 0x121   :  { %131 = vst.msk [vmem:[%s241_s6 + $0x8] sm:$0xff] %vm129_vm2, %v127_v31 }

</bundles_post_ra>
